<compile_context>
chip_gen: v7x
topology: tpu7x:2x2x1
jax: 0.10.0
libtpu: 0.0.40
codegen_flags: <defaults>
</compile_context>

<pallas_src>
import functools
import math
import jax
import jax.numpy as jnp
from jax.experimental import pallas as pl
from jax.experimental.pallas import tpu as pltpu

# ----- configuration mirroring AllLearnedOcc.__init__ defaults -----
WITH_DIR = False
IN_SIZE = 5 + (3 if WITH_DIR else 0)   # pts(3) + elev/azim(2)
FREQS = 16                             # FourierEncoder default freqs
ENC_DIM = 2 * FREQS                    # sin + cos
DIM_P = IN_SIZE + ENC_DIM              # 37 = MLP input size after encoding concat
HIDDEN = 512                           # SkipConnMLP(hidden_size=512)
NUM_LAYERS = 6                         # SkipConnMLP(num_layers=6)
SKIP = 3                               # skip connections before layers 0 and 3
NEG_SLOPE = 0.01                       # LeakyReLU default slope


# ----- chip-dependent tuning (decided once, at trace time) -----
def _device_kind():
    try:
        return jax.devices()[0].device_kind.lower()
    except Exception:
        return ""


_KIND = _device_kind()
_MODERN = any(tag in _KIND for tag in ("v6", "v7", "7x"))   # v6e / v7x class
BF16_EW = _MODERN                        # bf16 VALU present -> pack elementwise
TM_BASE = 1024 if _MODERN else 512       # points per tile on the large-N path
VMEM_LIMIT_BYTES = (48 if _MODERN else 32) * 1024 * 1024
P_DTYPE = jnp.bfloat16 if BF16_EW else jnp.float32


def _choose_tm(n):
    """Tile size: TM_BASE for large N; for small N shrink so the grid has >=2
    steps (both v7x TensorCores get work, no oversized padded tile)."""
    if n >= 2 * TM_BASE:
        return TM_BASE
    half = (n + 1) // 2
    return max(8, min(TM_BASE, ((half + 7) // 8) * 8))   # sublane-aligned


def _leaky_f32(x):
    # max-form LeakyReLU: identical to where(x>=0, x, s*x) for 0 < s < 1.
    return jnp.maximum(x, NEG_SLOPE * x)


# ------------------------- Pallas kernel (hot path) -------------------------
def occ_mlp_kernel(p_ref, spec_ref,
                   wi_ref, bi_ref,
                   wskip_ref,                 # fused [w0p | w3p] : (DIM_P, 2*HIDDEN)
                   w0x_ref, b0_ref,
                   w1_ref, b1_ref,
                   w2_ref, b2_ref,
                   w3x_ref, b3_ref,
                   w4_ref, b4_ref,
                   w5_ref, b5_ref,
                   wo_ref, bo_ref,
                   out_ref,
                   *, bf16_ew):
    p = p_ref[...]                                    # (TM, DIM_P); bf16 on v6e/v7x

    if bf16_ew:
        # p arrives in bf16: leaky directly on packed bf16 vregs.
        ap = jnp.maximum(p, NEG_SLOPE * p)            # bf16
        pb = p
    else:
        ap = _leaky_f32(p).astype(jnp.bfloat16)
        pb = p.astype(jnp.bfloat16)

    def act(x):
        # pre-activation for the next matmul; bf16 elementwise where the VPU
        # supports it (halves packed vector issues), f32 + cast otherwise.
        if bf16_ew:
            xb = x.astype(jnp.bfloat16)
            return jnp.maximum(xb, NEG_SLOPE * xb)
        return _leaky_f32(x).astype(jnp.bfloat16)

    # Fused skip projections: one (TM,37)x(37,1024) MXU pass instead of two.
    # (skip stays live until layer 3: <=4 MiB f32 at TM=1024 -- within budget.)
    skip = jnp.dot(ap, wskip_ref[...], preferred_element_type=jnp.float32)
    skip0 = skip[:, :HIDDEN]                          # p-part of layer 0
    skip3 = skip[:, HIDDEN:]                          # p-part of layer 3

    x = jnp.dot(pb, wi_ref[...], preferred_element_type=jnp.float32) + bi_ref[...]

    # layer 0 (skip: Linear(hidden + dim_p -> hidden), weight split x/p)
    h = act(x)
    x = jnp.dot(h, w0x_ref[...], preferred_element_type=jnp.float32) + skip0 + b0_ref[...]
    # layer 1
    h = act(x)
    x = jnp.dot(h, w1_ref[...], preferred_element_type=jnp.float32) + b1_ref[...]
    # layer 2
    h = act(x)
    x = jnp.dot(h, w2_ref[...], preferred_element_type=jnp.float32) + b2_ref[...]
    # layer 3 (skip)
    h = act(x)
    x = jnp.dot(h, w3x_ref[...], preferred_element_type=jnp.float32) + skip3 + b3_ref[...]
    # layer 4
    h = act(x)
    x = jnp.dot(h, w4_ref[...], preferred_element_type=jnp.float32) + b4_ref[...]
    # layer 5
    h = act(x)
    x = jnp.dot(h, w5_ref[...], preferred_element_type=jnp.float32) + b5_ref[...]

    # output head + sigmoid, then modulate the light spectrum.
    # (N=1 head column costs one mostly-padded MXU pass, ~2-4%; accepted.)
    h = act(x)
    logit = jnp.dot(h, wo_ref[...], preferred_element_type=jnp.float32) + bo_ref[...]
    att = jax.nn.sigmoid(logit)                       # (TM, 1)
    out_ref[...] = spec_ref[...] * att                # (TM, 3)


def _prep_weights(mlp_params):
    """Order weights for the kernel; matmul operands cast to bf16, biases f32."""
    bf = lambda a: a.astype(jnp.bfloat16)
    w = mlp_params
    wskip = jnp.concatenate([w["w0p"], w["w3p"]], axis=1)   # (DIM_P, 2*HIDDEN)
    return [bf(w["wi"]), w["bi"],
            bf(wskip),
            bf(w["w0x"]), w["b0"],
            bf(w["w1"]), w["b1"],
            bf(w["w2"]), w["b2"],
            bf(w["w3x"]), w["b3"],
            bf(w["w4"]), w["b4"],
            bf(w["w5"]), w["b5"],
            bf(w["wo"]), w["bo"]]


@jax.jit
def occ_mlp_pallas(p, spectrum, mlp_params):
    n = p.shape[0]
    tm = _choose_tm(n)                       # static under jit (shape-derived)
    n_pad = ((n + tm - 1) // tm) * tm

    p = p.astype(P_DTYPE)                    # bf16 on v6e/v7x: halves the p DMA
    if n_pad != n:
        p = jnp.pad(p, ((0, n_pad - n), (0, 0)))
        spectrum = jnp.pad(spectrum, ((0, n_pad - n), (0, 0)))

    weights = _prep_weights(mlp_params)
    in_specs = [pl.BlockSpec((tm, DIM_P), lambda i: (i, 0)),   # p tile
                pl.BlockSpec((tm, 3), lambda i: (i, 0))]       # spectrum tile
    # Weights stay resident: constant block index => DMA'd once, never re-fetched.
    in_specs += [pl.BlockSpec(w.shape, lambda i: (0, 0)) for w in weights]

    out = pl.pallas_call(
        functools.partial(occ_mlp_kernel, bf16_ew=BF16_EW),
        out_shape=jax.ShapeDtypeStruct((n_pad, 3), jnp.float32),
        grid_spec=pltpu.PrefetchScalarGridSpec(
            num_scalar_prefetch=0,
            grid=(n_pad // tm,),
            in_specs=in_specs,
            out_specs=pl.BlockSpec((tm, 3), lambda i: (i, 0))),
        compiler_params=pltpu.CompilerParams(
            dimension_semantics=("parallel",),
            vmem_limit_bytes=VMEM_LIMIT_BYTES),
    )(p, spectrum, *weights)
    # Padded rows carry zero spectrum, so their garbage attenuation is zeroed
    # and sliced off here -- keep both the spectrum padding and this slice.
    return out[:n]


# ------------------------------- JAX glue ------------------------------------
def dir_to_elev_azim(d):
    lim = 1.0 - 1e-6
    dc = jnp.clip(d, -lim, lim)
    elev = jnp.arcsin(dc[..., 2:3])
    azim = jnp.arctan2(dc[..., 0:1], dc[..., 1:2])
    return jnp.concatenate([elev, azim], axis=-1)


def elaz_and_3d(d):
    return jnp.concatenate([dir_to_elev_azim(d), d], axis=-1)


def point_lights(pts, light_pos, light_intensity):
    # simple point light: direction to light + inverse-square spectrum
    delta = light_pos - pts
    dist = jnp.linalg.norm(delta, axis=-1, keepdims=True)
    direction = delta / jnp.maximum(dist, 1e-6)
    spectrum = light_intensity / jnp.maximum(dist * dist, 1e-6)
    return direction, dist, spectrum


def fourier_encode(x, basis):
    # TODO(synk): the Fourier sin/cos could be folded into the kernel (EUP slot
    # is idle while the MXU is busy); kept in the wrapper since the kernel is
    # MXU-bound and the extra (N,37) HBM traffic is negligible at these sizes.
    raw = 2.0 * math.pi * (x @ basis)           # (N, FREQS)
    return jnp.concatenate([jnp.sin(raw), jnp.cos(raw)], axis=-1)


def all_learned_occ_forward(params, pts, light_pos, light_intensity,
                            latent=None, mask=None):
    # TODO(synk): boolean-mask compaction `pts[mask]` is a data-dependent gather;
    # only mask=None (and latent_size=0) is supported here.
    assert mask is None and latent is None
    batch_shape = pts.shape[:-1]
    pts_flat = pts.reshape(-1, 3)
    direction, _, spectrum = point_lights(pts_flat, light_pos, light_intensity)
    encode_dir = elaz_and_3d if WITH_DIR else dir_to_elev_azim
    feat = jnp.concatenate([pts_flat, encode_dir(direction)], axis=-1)        # (N, IN_SIZE)
    p = jnp.concatenate([feat, fourier_encode(feat, params["basis"])], -1)    # (N, DIM_P)
    mlp_params = {k: v for k, v in params.items() if k != "basis"}
    out = occ_mlp_pallas(p, spectrum, mlp_params)
    return (direction.reshape(batch_shape + (3,)),
            out.reshape(batch_shape + (3,)))


# ------------------------ deterministic parameter init -----------------------
def _glorot(key, shape):
    limit = math.sqrt(6.0 / (shape[0] + shape[1]))
    return jax.random.uniform(key, shape, jnp.float32, -limit, limit)


def init_params(key):
    ks = jax.random.split(key, 16)
    params = {
        "basis": jax.random.normal(ks[0], (IN_SIZE, FREQS), jnp.float32),
        "wi": _glorot(ks[1], (DIM_P, HIDDEN)),
        "bi": jnp.zeros((1, HIDDEN), jnp.float32),
        "w0x": _glorot(ks[2], (HIDDEN, HIDDEN)),
        "w0p": _glorot(ks[3], (DIM_P, HIDDEN)),
        "b0": jnp.zeros((1, HIDDEN), jnp.float32),
        "w1": _glorot(ks[4], (HIDDEN, HIDDEN)),
        "b1": jnp.zeros((1, HIDDEN), jnp.float32),
        "w2": _glorot(ks[5], (HIDDEN, HIDDEN)),
        "b2": jnp.zeros((1, HIDDEN), jnp.float32),
        "w3x": _glorot(ks[6], (HIDDEN, HIDDEN)),
        "w3p": _glorot(ks[7], (DIM_P, HIDDEN)),
        "b3": jnp.zeros((1, HIDDEN), jnp.float32),
        "w4": _glorot(ks[8], (HIDDEN, HIDDEN)),
        "b4": jnp.zeros((1, HIDDEN), jnp.float32),
        "w5": _glorot(ks[9], (HIDDEN, HIDDEN)),
        "b5": jnp.zeros((1, HIDDEN), jnp.float32),
        "wo": _glorot(ks[10], (HIDDEN, 1)),
        "bo": jnp.zeros((1, 1), jnp.float32),
    }
    return params


# --------------------------- pure-JAX reference -------------------------------
def attenuation_ref(params, p):
    ap = _leaky_f32(p)
    x = p @ params["wi"] + params["bi"]
    for i in range(NUM_LAYERS):
        h = _leaky_f32(x)
        if (i % SKIP) == 0 and i != NUM_LAYERS - 1:
            x = h @ params[f"w{i}x"] + ap @ params[f"w{i}p"] + params[f"b{i}"]
        else:
            x = h @ params[f"w{i}"] + params[f"b{i}"]
    return jax.nn.sigmoid(_leaky_f32(x) @ params["wo"] + params["bo"])


if __name__ == "__main__":
    key = jax.random.PRNGKey(0)
    kp, kx = jax.random.split(key)
    params = init_params(kp)

    B, R = 2, 64                               # batch of 2, 64 points each
    pts = jax.random.uniform(kx, (B, R, 3), jnp.float32, -1.0, 1.0)
    light_pos = jnp.array([1.5, 2.0, 3.0], jnp.float32)
    light_intensity = jnp.array([10.0, 8.0, 6.0], jnp.float32)

    direction, out = all_learned_occ_forward(params, pts, light_pos, light_intensity)
    out = jax.block_until_ready(out)
    direction = jax.block_until_ready(direction)

    # reference check (pure JAX, f32, no Pallas) -- kernel uses bf16 matmul
    # operands with f32 accumulation, which stays well inside 2e-2.
    pts_flat = pts.reshape(-1, 3)
    d_ref, _, spec_ref = point_lights(pts_flat, light_pos, light_intensity)
    feat = jnp.concatenate([pts_flat, dir_to_elev_azim(d_ref)], axis=-1)
    p_ref = jnp.concatenate([feat, fourier_encode(feat, params["basis"])], axis=-1)
    ref = (spec_ref * attenuation_ref(params, p_ref)).reshape(B, R, 3)

    err = float(jnp.max(jnp.abs(out - ref)))
    assert jnp.allclose(out, ref, rtol=2e-2, atol=2e-2), f"max abs err {err}"
    assert direction.shape == (B, R, 3) and out.shape == (B, R, 3)
    print("KERNEL_OK")
</pallas_src>

<mosaic_0001>
module attributes {stable_mosaic.version = 11 : i64} {
  func.func @occ_mlp_kernel(%arg0: i32, %arg1: memref<64x37xf32, #tpu.memory_space<vmem>>, %arg2: memref<64x3xf32, #tpu.memory_space<vmem>>, %arg3: memref<37x512xbf16, #tpu.memory_space<vmem>>, %arg4: memref<1x512xf32, #tpu.memory_space<vmem>>, %arg5: memref<37x1024xbf16, #tpu.memory_space<vmem>>, %arg6: memref<512x512xbf16, #tpu.memory_space<vmem>>, %arg7: memref<1x512xf32, #tpu.memory_space<vmem>>, %arg8: memref<512x512xbf16, #tpu.memory_space<vmem>>, %arg9: memref<1x512xf32, #tpu.memory_space<vmem>>, %arg10: memref<512x512xbf16, #tpu.memory_space<vmem>>, %arg11: memref<1x512xf32, #tpu.memory_space<vmem>>, %arg12: memref<512x512xbf16, #tpu.memory_space<vmem>>, %arg13: memref<1x512xf32, #tpu.memory_space<vmem>>, %arg14: memref<512x512xbf16, #tpu.memory_space<vmem>>, %arg15: memref<1x512xf32, #tpu.memory_space<vmem>>, %arg16: memref<512x512xbf16, #tpu.memory_space<vmem>>, %arg17: memref<1x512xf32, #tpu.memory_space<vmem>>, %arg18: memref<512x1xbf16, #tpu.memory_space<vmem>>, %arg19: memref<1x1xf32, #tpu.memory_space<vmem>>, %arg20: memref<64x3xf32, #tpu.memory_space<vmem>>) attributes {dimension_semantics = [#tpu.dimension_semantics<parallel>], iteration_bounds = array<i64: 2>, scalar_prefetch = 0 : i64, scratch_operands = 0 : i64, tpu.core_type = #tpu.core_type<tc>, window_params = [{transform_indices = @transform_0, window_bounds = array<i64: 64, 37>}, {transform_indices = @transform_1, window_bounds = array<i64: 64, 3>}, {pipeline_mode = #tpu.pipeline_mode<synchronous>, transform_indices = @transform_2, window_bounds = array<i64: 37, 512>}, {pipeline_mode = #tpu.pipeline_mode<synchronous>, transform_indices = @transform_3, window_bounds = array<i64: 1, 512>}, {pipeline_mode = #tpu.pipeline_mode<synchronous>, transform_indices = @transform_4, window_bounds = array<i64: 37, 1024>}, {pipeline_mode = #tpu.pipeline_mode<synchronous>, transform_indices = @transform_5, window_bounds = array<i64: 512, 512>}, {pipeline_mode = #tpu.pipeline_mode<synchronous>, transform_indices = @transform_6, window_bounds = array<i64: 1, 512>}, {pipeline_mode = #tpu.pipeline_mode<synchronous>, transform_indices = @transform_7, window_bounds = array<i64: 512, 512>}, {pipeline_mode = #tpu.pipeline_mode<synchronous>, transform_indices = @transform_8, window_bounds = array<i64: 1, 512>}, {pipeline_mode = #tpu.pipeline_mode<synchronous>, transform_indices = @transform_9, window_bounds = array<i64: 512, 512>}, {pipeline_mode = #tpu.pipeline_mode<synchronous>, transform_indices = @transform_10, window_bounds = array<i64: 1, 512>}, {pipeline_mode = #tpu.pipeline_mode<synchronous>, transform_indices = @transform_11, window_bounds = array<i64: 512, 512>}, {pipeline_mode = #tpu.pipeline_mode<synchronous>, transform_indices = @transform_12, window_bounds = array<i64: 1, 512>}, {pipeline_mode = #tpu.pipeline_mode<synchronous>, transform_indices = @transform_13, window_bounds = array<i64: 512, 512>}, {pipeline_mode = #tpu.pipeline_mode<synchronous>, transform_indices = @transform_14, window_bounds = array<i64: 1, 512>}, {pipeline_mode = #tpu.pipeline_mode<synchronous>, transform_indices = @transform_15, window_bounds = array<i64: 512, 512>}, {pipeline_mode = #tpu.pipeline_mode<synchronous>, transform_indices = @transform_16, window_bounds = array<i64: 1, 512>}, {pipeline_mode = #tpu.pipeline_mode<synchronous>, transform_indices = @transform_17, window_bounds = array<i64: 512, 1>}, {pipeline_mode = #tpu.pipeline_mode<synchronous>, transform_indices = @transform_18, window_bounds = array<i64: 1, 1>}, {transform_indices = @transform_19, window_bounds = array<i64: 64, 3>}]} {
    %c0 = arith.constant 0 : index
    %c0_0 = arith.constant 0 : index
    %0 = vector.load %arg1[%c0, %c0_0] : memref<64x37xf32, #tpu.memory_space<vmem>>, vector<64x37xf32>
    %cst = arith.constant 0.00999999977 : f32
    %1 = vector.broadcast %cst : f32 to vector<64x37xf32>
    %2 = arith.mulf %1, %0 : vector<64x37xf32>
    %3 = arith.maximumf %0, %2 : vector<64x37xf32>
    %4 = arith.truncf %3 : vector<64x37xf32> to vector<64x37xbf16>
    %5 = arith.truncf %0 : vector<64x37xf32> to vector<64x37xbf16>
    %c0_1 = arith.constant 0 : index
    %c0_2 = arith.constant 0 : index
    %6 = vector.load %arg5[%c0_1, %c0_2] : memref<37x1024xbf16, #tpu.memory_space<vmem>>, vector<37x1024xbf16>
    %cst_3 = arith.constant dense<0.000000e+00> : vector<64x1024xf32>
    %7 = tpu.matmul %4, %6, %cst_3 {dimension_numbers = #tpu.dot_dimension_numbers<[1], [0], [0], [1], [0, 0, 1, 1], [], []>} : vector<64x37xbf16>, vector<37x1024xbf16>, vector<64x1024xf32> -> vector<64x1024xf32>
    %8 = vector.extract_strided_slice %7 {offsets = [0, 0], sizes = [64, 512], strides = [1, 1]} : vector<64x1024xf32> to vector<64x512xf32>
    %9 = vector.extract_strided_slice %7 {offsets = [0, 512], sizes = [64, 512], strides = [1, 1]} : vector<64x1024xf32> to vector<64x512xf32>
    %c0_4 = arith.constant 0 : index
    %c0_5 = arith.constant 0 : index
    %10 = vector.load %arg3[%c0_4, %c0_5] : memref<37x512xbf16, #tpu.memory_space<vmem>>, vector<37x512xbf16>
    %cst_6 = arith.constant dense<0.000000e+00> : vector<64x512xf32>
    %11 = tpu.matmul %5, %10, %cst_6 {dimension_numbers = #tpu.dot_dimension_numbers<[1], [0], [0], [1], [0, 0, 1, 1], [], []>} : vector<64x37xbf16>, vector<37x512xbf16>, vector<64x512xf32> -> vector<64x512xf32>
    %c0_7 = arith.constant 0 : index
    %c0_8 = arith.constant 0 : index
    %12 = vector.load %arg4[%c0_7, %c0_8] : memref<1x512xf32, #tpu.memory_space<vmem>>, vector<1x512xf32>
    %13 = vector.broadcast %12 : vector<1x512xf32> to vector<64x512xf32>
    %14 = arith.addf %11, %13 : vector<64x512xf32>
    %cst_9 = arith.constant 0.00999999977 : f32
    %15 = vector.broadcast %cst_9 : f32 to vector<64x512xf32>
    %16 = arith.mulf %15, %14 : vector<64x512xf32>
    %17 = arith.maximumf %14, %16 : vector<64x512xf32>
    %18 = arith.truncf %17 : vector<64x512xf32> to vector<64x512xbf16>
    %c0_10 = arith.constant 0 : index
    %c0_11 = arith.constant 0 : index
    %19 = vector.load %arg6[%c0_10, %c0_11] : memref<512x512xbf16, #tpu.memory_space<vmem>>, vector<512x512xbf16>
    %cst_12 = arith.constant dense<0.000000e+00> : vector<64x512xf32>
    %20 = tpu.matmul %18, %19, %cst_12 {dimension_numbers = #tpu.dot_dimension_numbers<[1], [0], [0], [1], [0, 0, 1, 1], [], []>} : vector<64x512xbf16>, vector<512x512xbf16>, vector<64x512xf32> -> vector<64x512xf32>
    %21 = arith.addf %20, %8 : vector<64x512xf32>
    %c0_13 = arith.constant 0 : index
    %c0_14 = arith.constant 0 : index
    %22 = vector.load %arg7[%c0_13, %c0_14] : memref<1x512xf32, #tpu.memory_space<vmem>>, vector<1x512xf32>
    %23 = vector.broadcast %22 : vector<1x512xf32> to vector<64x512xf32>
    %24 = arith.addf %21, %23 : vector<64x512xf32>
    %cst_15 = arith.constant 0.00999999977 : f32
    %25 = vector.broadcast %cst_15 : f32 to vector<64x512xf32>
    %26 = arith.mulf %25, %24 : vector<64x512xf32>
    %27 = arith.maximumf %24, %26 : vector<64x512xf32>
    %28 = arith.truncf %27 : vector<64x512xf32> to vector<64x512xbf16>
    %c0_16 = arith.constant 0 : index
    %c0_17 = arith.constant 0 : index
    %29 = vector.load %arg8[%c0_16, %c0_17] : memref<512x512xbf16, #tpu.memory_space<vmem>>, vector<512x512xbf16>
    %cst_18 = arith.constant dense<0.000000e+00> : vector<64x512xf32>
    %30 = tpu.matmul %28, %29, %cst_18 {dimension_numbers = #tpu.dot_dimension_numbers<[1], [0], [0], [1], [0, 0, 1, 1], [], []>} : vector<64x512xbf16>, vector<512x512xbf16>, vector<64x512xf32> -> vector<64x512xf32>
    %c0_19 = arith.constant 0 : index
    %c0_20 = arith.constant 0 : index
    %31 = vector.load %arg9[%c0_19, %c0_20] : memref<1x512xf32, #tpu.memory_space<vmem>>, vector<1x512xf32>
    %32 = vector.broadcast %31 : vector<1x512xf32> to vector<64x512xf32>
    %33 = arith.addf %30, %32 : vector<64x512xf32>
    %cst_21 = arith.constant 0.00999999977 : f32
    %34 = vector.broadcast %cst_21 : f32 to vector<64x512xf32>
    %35 = arith.mulf %34, %33 : vector<64x512xf32>
    %36 = arith.maximumf %33, %35 : vector<64x512xf32>
    %37 = arith.truncf %36 : vector<64x512xf32> to vector<64x512xbf16>
    %c0_22 = arith.constant 0 : index
    %c0_23 = arith.constant 0 : index
    %38 = vector.load %arg10[%c0_22, %c0_23] : memref<512x512xbf16, #tpu.memory_space<vmem>>, vector<512x512xbf16>
    %cst_24 = arith.constant dense<0.000000e+00> : vector<64x512xf32>
    %39 = tpu.matmul %37, %38, %cst_24 {dimension_numbers = #tpu.dot_dimension_numbers<[1], [0], [0], [1], [0, 0, 1, 1], [], []>} : vector<64x512xbf16>, vector<512x512xbf16>, vector<64x512xf32> -> vector<64x512xf32>
    %c0_25 = arith.constant 0 : index
    %c0_26 = arith.constant 0 : index
    %40 = vector.load %arg11[%c0_25, %c0_26] : memref<1x512xf32, #tpu.memory_space<vmem>>, vector<1x512xf32>
    %41 = vector.broadcast %40 : vector<1x512xf32> to vector<64x512xf32>
    %42 = arith.addf %39, %41 : vector<64x512xf32>
    %cst_27 = arith.constant 0.00999999977 : f32
    %43 = vector.broadcast %cst_27 : f32 to vector<64x512xf32>
    %44 = arith.mulf %43, %42 : vector<64x512xf32>
    %45 = arith.maximumf %42, %44 : vector<64x512xf32>
    %46 = arith.truncf %45 : vector<64x512xf32> to vector<64x512xbf16>
    %c0_28 = arith.constant 0 : index
    %c0_29 = arith.constant 0 : index
    %47 = vector.load %arg12[%c0_28, %c0_29] : memref<512x512xbf16, #tpu.memory_space<vmem>>, vector<512x512xbf16>
    %cst_30 = arith.constant dense<0.000000e+00> : vector<64x512xf32>
    %48 = tpu.matmul %46, %47, %cst_30 {dimension_numbers = #tpu.dot_dimension_numbers<[1], [0], [0], [1], [0, 0, 1, 1], [], []>} : vector<64x512xbf16>, vector<512x512xbf16>, vector<64x512xf32> -> vector<64x512xf32>
    %49 = arith.addf %48, %9 : vector<64x512xf32>
    %c0_31 = arith.constant 0 : index
    %c0_32 = arith.constant 0 : index
    %50 = vector.load %arg13[%c0_31, %c0_32] : memref<1x512xf32, #tpu.memory_space<vmem>>, vector<1x512xf32>
    %51 = vector.broadcast %50 : vector<1x512xf32> to vector<64x512xf32>
    %52 = arith.addf %49, %51 : vector<64x512xf32>
    %cst_33 = arith.constant 0.00999999977 : f32
    %53 = vector.broadcast %cst_33 : f32 to vector<64x512xf32>
    %54 = arith.mulf %53, %52 : vector<64x512xf32>
    %55 = arith.maximumf %52, %54 : vector<64x512xf32>
    %56 = arith.truncf %55 : vector<64x512xf32> to vector<64x512xbf16>
    %c0_34 = arith.constant 0 : index
    %c0_35 = arith.constant 0 : index
    %57 = vector.load %arg14[%c0_34, %c0_35] : memref<512x512xbf16, #tpu.memory_space<vmem>>, vector<512x512xbf16>
    %cst_36 = arith.constant dense<0.000000e+00> : vector<64x512xf32>
    %58 = tpu.matmul %56, %57, %cst_36 {dimension_numbers = #tpu.dot_dimension_numbers<[1], [0], [0], [1], [0, 0, 1, 1], [], []>} : vector<64x512xbf16>, vector<512x512xbf16>, vector<64x512xf32> -> vector<64x512xf32>
    %c0_37 = arith.constant 0 : index
    %c0_38 = arith.constant 0 : index
    %59 = vector.load %arg15[%c0_37, %c0_38] : memref<1x512xf32, #tpu.memory_space<vmem>>, vector<1x512xf32>
    %60 = vector.broadcast %59 : vector<1x512xf32> to vector<64x512xf32>
    %61 = arith.addf %58, %60 : vector<64x512xf32>
    %cst_39 = arith.constant 0.00999999977 : f32
    %62 = vector.broadcast %cst_39 : f32 to vector<64x512xf32>
    %63 = arith.mulf %62, %61 : vector<64x512xf32>
    %64 = arith.maximumf %61, %63 : vector<64x512xf32>
    %65 = arith.truncf %64 : vector<64x512xf32> to vector<64x512xbf16>
    %c0_40 = arith.constant 0 : index
    %c0_41 = arith.constant 0 : index
    %66 = vector.load %arg16[%c0_40, %c0_41] : memref<512x512xbf16, #tpu.memory_space<vmem>>, vector<512x512xbf16>
    %cst_42 = arith.constant dense<0.000000e+00> : vector<64x512xf32>
    %67 = tpu.matmul %65, %66, %cst_42 {dimension_numbers = #tpu.dot_dimension_numbers<[1], [0], [0], [1], [0, 0, 1, 1], [], []>} : vector<64x512xbf16>, vector<512x512xbf16>, vector<64x512xf32> -> vector<64x512xf32>
    %c0_43 = arith.constant 0 : index
    %c0_44 = arith.constant 0 : index
    %68 = vector.load %arg17[%c0_43, %c0_44] : memref<1x512xf32, #tpu.memory_space<vmem>>, vector<1x512xf32>
    %69 = vector.broadcast %68 : vector<1x512xf32> to vector<64x512xf32>
    %70 = arith.addf %67, %69 : vector<64x512xf32>
    %cst_45 = arith.constant 0.00999999977 : f32
    %71 = vector.broadcast %cst_45 : f32 to vector<64x512xf32>
    %72 = arith.mulf %71, %70 : vector<64x512xf32>
    %73 = arith.maximumf %70, %72 : vector<64x512xf32>
    %74 = arith.truncf %73 : vector<64x512xf32> to vector<64x512xbf16>
    %c0_46 = arith.constant 0 : index
    %c0_47 = arith.constant 0 : index
    %75 = vector.load %arg18[%c0_46, %c0_47] : memref<512x1xbf16, #tpu.memory_space<vmem>>, vector<512x1xbf16>
    %cst_48 = arith.constant dense<0.000000e+00> : vector<64x1xf32>
    %76 = tpu.matmul %74, %75, %cst_48 {dimension_numbers = #tpu.dot_dimension_numbers<[1], [0], [0], [1], [0, 0, 1, 1], [], []>} : vector<64x512xbf16>, vector<512x1xbf16>, vector<64x1xf32> -> vector<64x1xf32>
    %c0_49 = arith.constant 0 : index
    %c0_50 = arith.constant 0 : index
    %77 = vector.load %arg19[%c0_49, %c0_50] : memref<1x1xf32, #tpu.memory_space<vmem>>, vector<1x1xf32>
    %78 = vector.broadcast %77 : vector<1x1xf32> to vector<64x1xf32>
    %79 = arith.addf %76, %78 : vector<64x1xf32>
    %80 = arith.negf %79 : vector<64x1xf32>
    %81 = math.exp %80 : vector<64x1xf32>
    %cst_51 = arith.constant 1.000000e+00 : f32
    %82 = vector.broadcast %cst_51 : f32 to vector<64x1xf32>
    %83 = arith.addf %82, %81 : vector<64x1xf32>
    %84 = arith.divf %82, %83 : vector<64x1xf32>
    %c0_52 = arith.constant 0 : index
    %c0_53 = arith.constant 0 : index
    %85 = vector.load %arg2[%c0_52, %c0_53] : memref<64x3xf32, #tpu.memory_space<vmem>>, vector<64x3xf32>
    %86 = vector.broadcast %84 : vector<64x1xf32> to vector<64x3xf32>
    %87 = arith.mulf %85, %86 : vector<64x3xf32>
    %c0_54 = arith.constant 0 : index
    %c0_55 = arith.constant 0 : index
    %88 = vector.load %arg20[%c0_54, %c0_55] : memref<64x3xf32, #tpu.memory_space<vmem>>, vector<64x3xf32>
    tpu.vector_store %arg20[%c0_54, %c0_55], %87 {strides = array<i32>} : memref<64x3xf32, #tpu.memory_space<vmem>>, vector<64x3xf32>,
    return
  }
  func.func @transform_0(%arg0: i32) -> (i32, i32) {
    %c0_i32 = arith.constant 0 : i32
    %c0_i32_0 = arith.constant 0 : i32
    return %arg0, %c0_i32 : i32, i32
  }
  func.func @transform_1(%arg0: i32) -> (i32, i32) {
    %c0_i32 = arith.constant 0 : i32
    %c0_i32_0 = arith.constant 0 : i32
    return %arg0, %c0_i32 : i32, i32
  }
  func.func @transform_2(%arg0: i32) -> (i32, i32) {
    %c0_i32 = arith.constant 0 : i32
    %c0_i32_0 = arith.constant 0 : i32
    %c0_i32_1 = arith.constant 0 : i32
    return %c0_i32, %c0_i32_0 : i32, i32
  }
  func.func @transform_3(%arg0: i32) -> (i32, i32) {
    %c0_i32 = arith.constant 0 : i32
    %c0_i32_0 = arith.constant 0 : i32
    %c0_i32_1 = arith.constant 0 : i32
    return %c0_i32, %c0_i32_0 : i32, i32
  }
  func.func @transform_4(%arg0: i32) -> (i32, i32) {
    %c0_i32 = arith.constant 0 : i32
    %c0_i32_0 = arith.constant 0 : i32
    %c0_i32_1 = arith.constant 0 : i32
    return %c0_i32, %c0_i32_0 : i32, i32
  }
  func.func @transform_5(%arg0: i32) -> (i32, i32) {
    %c0_i32 = arith.constant 0 : i32
    %c0_i32_0 = arith.constant 0 : i32
    %c0_i32_1 = arith.constant 0 : i32
    return %c0_i32, %c0_i32_0 : i32, i32
  }
  func.func @transform_6(%arg0: i32) -> (i32, i32) {
    %c0_i32 = arith.constant 0 : i32
    %c0_i32_0 = arith.constant 0 : i32
    %c0_i32_1 = arith.constant 0 : i32
    return %c0_i32, %c0_i32_0 : i32, i32
  }
  func.func @transform_7(%arg0: i32) -> (i32, i32) {
    %c0_i32 = arith.constant 0 : i32
    %c0_i32_0 = arith.constant 0 : i32
    %c0_i32_1 = arith.constant 0 : i32
    return %c0_i32, %c0_i32_0 : i32, i32
  }
  func.func @transform_8(%arg0: i32) -> (i32, i32) {
    %c0_i32 = arith.constant 0 : i32
    %c0_i32_0 = arith.constant 0 : i32
    %c0_i32_1 = arith.constant 0 : i32
    return %c0_i32, %c0_i32_0 : i32, i32
  }
  func.func @transform_9(%arg0: i32) -> (i32, i32) {
    %c0_i32 = arith.constant 0 : i32
    %c0_i32_0 = arith.constant 0 : i32
    %c0_i32_1 = arith.constant 0 : i32
    return %c0_i32, %c0_i32_0 : i32, i32
  }
  func.func @transform_10(%arg0: i32) -> (i32, i32) {
    %c0_i32 = arith.constant 0 : i32
    %c0_i32_0 = arith.constant 0 : i32
    %c0_i32_1 = arith.constant 0 : i32
    return %c0_i32, %c0_i32_0 : i32, i32
  }
  func.func @transform_11(%arg0: i32) -> (i32, i32) {
    %c0_i32 = arith.constant 0 : i32
    %c0_i32_0 = arith.constant 0 : i32
    %c0_i32_1 = arith.constant 0 : i32
    return %c0_i32, %c0_i32_0 : i32, i32
  }
  func.func @transform_12(%arg0: i32) -> (i32, i32) {
    %c0_i32 = arith.constant 0 : i32
    %c0_i32_0 = arith.constant 0 : i32
    %c0_i32_1 = arith.constant 0 : i32
    return %c0_i32, %c0_i32_0 : i32, i32
  }
  func.func @transform_13(%arg0: i32) -> (i32, i32) {
    %c0_i32 = arith.constant 0 : i32
    %c0_i32_0 = arith.constant 0 : i32
    %c0_i32_1 = arith.constant 0 : i32
    return %c0_i32, %c0_i32_0 : i32, i32
  }
  func.func @transform_14(%arg0: i32) -> (i32, i32) {
    %c0_i32 = arith.constant 0 : i32
    %c0_i32_0 = arith.constant 0 : i32
    %c0_i32_1 = arith.constant 0 : i32
    return %c0_i32, %c0_i32_0 : i32, i32
  }
  func.func @transform_15(%arg0: i32) -> (i32, i32) {
    %c0_i32 = arith.constant 0 : i32
    %c0_i32_0 = arith.constant 0 : i32
    %c0_i32_1 = arith.constant 0 : i32
    return %c0_i32, %c0_i32_0 : i32, i32
  }
  func.func @transform_16(%arg0: i32) -> (i32, i32) {
    %c0_i32 = arith.constant 0 : i32
    %c0_i32_0 = arith.constant 0 : i32
    %c0_i32_1 = arith.constant 0 : i32
    return %c0_i32, %c0_i32_0 : i32, i32
  }
  func.func @transform_17(%arg0: i32) -> (i32, i32) {
    %c0_i32 = arith.constant 0 : i32
    %c0_i32_0 = arith.constant 0 : i32
    %c0_i32_1 = arith.constant 0 : i32
    return %c0_i32, %c0_i32_0 : i32, i32
  }
  func.func @transform_18(%arg0: i32) -> (i32, i32) {
    %c0_i32 = arith.constant 0 : i32
    %c0_i32_0 = arith.constant 0 : i32
    %c0_i32_1 = arith.constant 0 : i32
    return %c0_i32, %c0_i32_0 : i32, i32
  }
  func.func @transform_19(%arg0: i32) -> (i32, i32) {
    %c0_i32 = arith.constant 0 : i32
    %c0_i32_0 = arith.constant 0 : i32
    return %arg0, %c0_i32 : i32, i32
  }
}

</mosaic_0001>

<bundles_post_ra>
// kernel: occ_mlp_pallas.1
= control target key start
LH: loop header
LB: loop body
LE: loop exit
PB: predicated region body
PF: predicated region fallthrough
CT: control target
= control target key end

     0   :  { %s11769_s20 = smov 0   ;;  %s15113_s0 = inlined_call_operand.vmem [shape: f32[128,37], index: 0, kind: input, shape index: {}]   ;;  %s15114_s1 = inlined_call_operand.vmem [shape: f32[128,3], index: 1, kind: input, shape index: {}]   ;;  %s15115_s2 = inlined_call_operand.vmem [shape: bf16[37,512], index: 2, kind: input, shape index: {}]   ;;  %s15116_s3 = inlined_call_operand.vmem [shape: f32[1,512], index: 3, kind: input, shape index: {}]   ;;  %s15117_s4 = inlined_call_operand.vmem [shape: bf16[37,1024], index: 4, kind: input, shape index: {}]   ;;  %s15118_s5 = inlined_call_operand.vmem [shape: bf16[512,512], index: 5, kind: input, shape index: {}]   ;;  %s15119_s6 = inlined_call_operand.vmem [shape: f32[1,512], index: 6, kind: input, shape index: {}]   ;;  %s15120_s7 = inlined_call_operand.vmem [shape: bf16[512,512], index: 7, kind: input, shape index: {}]   ;;  %s15121_s8 = inlined_call_operand.vmem [shape: f32[1,512], index: 8, kind: input, shape index: {}]   ;;  %s15122_s9 = inlined_call_operand.vmem [shape: bf16[512,512], index: 9, kind: input, shape index: {}]   ;;  %s15123_s10 = inlined_call_operand.vmem [shape: f32[1,512], index: 10, kind: input, shape index: {}]   ;;  %s15124_s11 = inlined_call_operand.vmem [shape: bf16[512,512], index: 11, kind: input, shape index: {}]   ;;  %s15125_s12 = inlined_call_operand.vmem [shape: f32[1,512], index: 12, kind: input, shape index: {}]   ;;  %s15126_s13 = inlined_call_operand.vmem [shape: bf16[512,512], index: 13, kind: input, shape index: {}]   ;;  %s15127_s14 = inlined_call_operand.vmem [shape: f32[1,512], index: 14, kind: input, shape index: {}]   ;;  %s15128_s15 = inlined_call_operand.vmem [shape: bf16[512,512], index: 15, kind: input, shape index: {}]   ;;  %s15129_s16 = inlined_call_operand.vmem [shape: f32[1,512], index: 16, kind: input, shape index: {}]   ;;  %s15130_s17 = inlined_call_operand.vmem [shape: bf16[512,1], index: 17, kind: input, shape index: {}]   ;;  %s15131_s18 = inlined_call_operand.<no memory space> [shape: f32[1,1], index: 18, kind: input, shape index: {}]   ;;  %s15132_s19 = inlined_call_operand.vmem [shape: f32[128,3], index: 19, kind: output, shape index: {}]  }
   0x1   :  { %15134 = sst [smem:[#allocation3_spill]] %s15113_s0  ;;  %v24_v0 = vstv %s15131_s18 }
   0x2   :  { %15135 = sst [smem:[#allocation4_spill]] %s15114_s1  ;;  %25 = vst [vmem:[#allocation2] sm:$0x1] %v24_v0 }
   0x3   :  { %15136 = sst [smem:[#allocation5_spill]] %s15115_s2 }
   0x4   :  { %15137 = sst [smem:[#allocation6_spill]] %s15116_s3 }
   0x5 LB: > { %s9058_s21 = sadd.s32 4294967295, %s11662_s20   ;;  %p9062_p0 = scmp.ge.s32.totalorder %s11662_s20, 1  ;;  %s11662_s20 = sphi %s11769_s20, %s31_s20  }
   0x6   : > { %p551_p1 = scmp.lt.s32.totalorder %s11662_s20, 3 }
   0x8   : > { %p552_p2 = pnand %p9062_p0, %p551_p1 }
   0x9   : > { %v663_v1 = vld [vmem:[%s15117_s4] sm:$0xff] (!%p552_p2)  ;;  %vm796_vm0 = vcmask (!%p552_p2), 1041408   ;;  %vm797_vm1 = vcmask (!%p552_p2), 1042432   ;;  %v11664_v8 = vmov (!%p552_p2), 65535   ;;  %s9063_s28 = sshll.u32 (!%p552_p2), %s9058_s21, 3  ;;  %v11665_v13 = vmov (!%p552_p2), 0  }
   0xa   : > { %555 = sbr.rel (%p552_p2) target bundleno = 2445 (0x98d), region = 96  ;;  %v667_v2 = vld [vmem:[%s15117_s4 + $0x20] sm:$0xff] (!%p552_p2)  ;;  %v798_v9 = vsel (!%p552_p2), %vm796_vm0, 4294967295, %v11664_v8  ;;  %856 = vmatprep.mubr.bf16.mxu0 (!%p552_p2), %v11665_v13  ;;  %p613_p3 = scmp.lt.s32.totalorder (!%p552_p2), %s9063_s28, 15  ;;  %929 = vmatprep.mubr.bf16.mxu1 (!%p552_p2), %v11665_v13  ;;  %v665_v17 = vld [vmem:[%s15117_s4 + $0x10] sm:$0xff] (!%p552_p2)  ;;  %v664_v19 = vld [vmem:[%s15117_s4 + $0x8] sm:$0xff] (!%p552_p2) }
   0xb   : > { %v671_v3 = vld [vmem:[%s15117_s4 + $0x40] sm:$0xff] (!%p552_p2)  ;;  %v9070_v4 = vcombine.high (!%p552_p2), %v663_v1, %v667_v2  ;;  %v9069_v5 = vcombine.low (!%p552_p2), %v663_v1, %v667_v2  ;;  %v11792_v12 = vsel (!%p552_p2), %vm797_vm1, %v798_v9, 0  ;;  %10414 = vset.pattern.permute.xlu0 (!%p552_p2), %v11665_v13  ;;  %10415 = vset.pattern.permute.xlu1 (!%p552_p2), %v11665_v13  ;;  %v669_v18 = vld [vmem:[%s15117_s4 + $0x30] sm:$0xff] (!%p552_p2)  ;;  %v668_v20 = vld [vmem:[%s15117_s4 + $0x28] sm:$0xff] (!%p552_p2)  ;;  %s15138_s3 = sld [smem:[#allocation3_spill]] (!%p552_p2)  ;;  %vm783_vm2 = vcmask (!%p552_p2), 302080  }
   0xc   : > { %v675_v6 = vld [vmem:[%s15117_s4 + $0x60] sm:$0xff] (!%p552_p2)  ;;  %v9072_v21 = vcombine.high (!%p552_p2), %v664_v19, %v668_v20  ;;  %v9071_v22 = vcombine.low (!%p552_p2), %v664_v19, %v668_v20  ;;  %v672_v23 = vld [vmem:[%s15117_s4 + $0x48] sm:$0xff] (!%p552_p2)  ;;  %v9074_v33 = vcombine.high (!%p552_p2), %v665_v17, %v669_v18  ;;  %v673_v35 = vld [vmem:[%s15117_s4 + $0x50] sm:$0xff] (!%p552_p2)  ;;  %v9073_v43 = vcombine.low (!%p552_p2), %v665_v17, %v669_v18  ;;  %s15139_s24 = sld [smem:[#allocation5_spill]] (!%p552_p2)  ;;  %s15140_s18 = sld [smem:[#allocation6_spill]] (!%p552_p2) }
   0xd   : > { %v679_v7 = vld [vmem:[%s15117_s4 + $0x80] sm:$0x77] (!%p552_p2)  ;;  %v9078_v10 = vcombine.high (!%p552_p2), %v671_v3, %v675_v6  ;;  %824 = vmatprep.subr.bf16.mxu0 (!%p552_p2), %v9070_v4  ;;  %v9077_v14 = vcombine.low (!%p552_p2), %v671_v3, %v675_v6  ;;  %v676_v24 = vld [vmem:[%s15117_s4 + $0x68] sm:$0xff] (!%p552_p2)  ;;  %v677_v36 = vld [vmem:[%s15117_s4 + $0x70] sm:$0xff] (!%p552_p2)  ;;  %s15141_s2 = sld [smem:[#allocation4_spill]] (!%p552_p2)  ;;  %vm8981_vm3 = vcmask (!%p552_p2), 23552  }
   0xe   : > { %v9086_v11 = vcombine.high (!%p552_p2), %v679_v7, %v679_v7  ;;  %825 = vmatpush1.bf16.msra.mxu0 (!%p552_p2), %v9069_v5  ;;  %v9085_v15 = vcombine.low (!%p552_p2), %v679_v7, %v679_v7  ;;  %v9080_v29 = vcombine.high (!%p552_p2), %v672_v23, %v676_v24  ;;  %897 = vmatprep.subr.bf16.mxu1 (!%p552_p2), %v9072_v21  ;;  %v681_v37 = vld [vmem:[%s15117_s4 + $0x90] sm:$0x77] (!%p552_p2)  ;;  %v680_v44 = vld [vmem:[%s15117_s4 + $0x88] sm:$0x77] (!%p552_p2)  ;;  %v666_v45 = vld [vmem:[%s15117_s4 + $0x18] sm:$0xff] (!%p552_p2) }
   0xf   : > { %826 = vmatprep.subr.bf16.mxu0 (!%p552_p2), %v9078_v10  ;;  %898 = vmatpush1.bf16.msra.mxu1 (!%p552_p2), %v9071_v22  ;;  %v9079_v38 = vcombine.low (!%p552_p2), %v672_v23, %v676_v24  ;;  %v9082_v47 = vcombine.high (!%p552_p2), %v673_v35, %v677_v36  ;;  %v9090_v49 = vcombine.high (!%p552_p2), %v681_v37, %v681_v37  ;;  %v670_v51 = vld [vmem:[%s15117_s4 + $0x38] sm:$0xff] (!%p552_p2) }
  0x10   : > { %v804_v16 = vand.u32 (!%p552_p2), %v9086_v11, %v11792_v12  ;;  %v801_v25 = vand.u32 (!%p552_p2), %v9085_v15, %v11792_v12  ;;  %899 = vmatprep.subr.bf16.mxu1 (!%p552_p2), %v9080_v29  ;;  %v9088_v50 = vcombine.high (!%p552_p2), %v680_v44, %v680_v44  ;;  %v9087_v53 = vcombine.low (!%p552_p2), %v680_v44, %v680_v44  ;;  %v674_v59 = vld [vmem:[%s15117_s4 + $0x58] sm:$0xff] (!%p552_p2) }
  0x11   : > { %s15143_s28 = smov (!%p613_p3, %s9063_s28), 15  ;;  %v9076_v58 = vcombine.high %v666_v45, %v670_v51  ;;  %v9081_v60 = vcombine.low %v673_v35, %v677_v36  ;;  %v9089_v61 = vcombine.low %v681_v37, %v681_v37  ;;  %v678_v63 = vld [vmem:[%s15117_s4 + $0x78] sm:$0xff]  ;;  %v816_v2 = vand.u32 %v9090_v49, %v11792_v12  ;;  %v10446_v49 = vld [vmem:[%s15118_s5 + $0x20] ss:$16 sps:$4 sm:$0xff]  }
  0x12   : > { %s11802_s30 = sshll.u32 %s15143_s28, 3  ;;  %827 = vmatpush1.bf16.msra.mxu0 %v9077_v14  ;;  %v810_v57 = vand.u32 %v9088_v50, %v11792_v12  ;;  %v807_v62 = vand.u32 %v9087_v53, %v11792_v12  ;;  %v682_v0 = vld [vmem:[%s15117_s4 + $0x98] sm:$0x77]  ;;  %v9075_v4 = vcombine.low %v666_v45, %v670_v51  ;;  %v9084_v10 = vcombine.high %v674_v59, %v678_v63  ;;  %v10422_v15 = vld [vmem:[%s15139_s24 + $0x4] ss:$16 sps:$4 sm:$0xff]  }
  0x13   : > { %s11817_s26 = scalar_lea.vmem %s15138_s3, %s11802_s30  ;;  %828 = vmatprep.subr.bf16.mxu0 %v804_v16  ;;  %900 = vmatpush1.bf16.msra.mxu1 %v9079_v38  ;;  %v9092_v11 = vcombine.high %v682_v0, %v682_v0  ;;  %v813_v14 = vand.u32 %v9089_v61, %v11792_v12  ;;  %v9083_v16 = vcombine.low %v674_v59, %v678_v63  ;;  %v1124_v29 = vld [vmem:[%s15139_s24 + $0x40] sm:$0x77]  ;;  %v1125_v36 = vld [vmem:[%s15139_s24 + $0x48] sm:$0x77]  ;;  %s15092_s3 = scalar_lea.vmem %s15132_s19, %s11802_s30 }
  0x14   : > { %v631_v26 = vld [vmem:[%s11817_s26] sm:$0xff]  ;;  %v632_v27 = vld [vmem:[%s11817_s26 + $0x8] sm:$0xff]  ;;  %v633_v28 = vld [vmem:[%s11817_s26 + $0x10] sm:$0xff]  ;;  %901 = vmatprep.subr.bf16.mxu1 %v810_v57  ;;  %v9091_v17 = vcombine.low %v682_v0, %v682_v0  ;;  %v9117_v35 = vcombine.low %v1124_v29, %v1124_v29  ;;  %v9119_v44 = vcombine.low %v1125_v36, %v1125_v36 }
  0x15   : > { %v639_v30 = vmul.f32 0.01, %v631_v26  ;;  %v640_v31 = vmul.f32 0.01, %v632_v27  ;;  %v11829_v32 = vpack.c.bf16 %v632_v27, %v631_v26  ;;  %v634_v34 = vld [vmem:[%s11817_s26 + $0x18] sm:$0xff]  ;;  %v635_v48 = vld [vmem:[%s11817_s26 + $0x20] sm:$0xff]  ;;  %v822_v20 = vand.u32 %v9092_v11, %v11792_v12 }
  0x16   : > { %v641_v41 = vmul.f32 0.01, %v633_v28  ;;  %v642_v42 = vmul.f32 0.01, %v634_v34  ;;  %829 = vmatpush1.bf16.msra.mxu0 %v801_v25  ;;  %v636_v52 = vld [vmem:[%s11817_s26 + $0x28] sm:$0xff]  ;;  %v637_v56 = vld [vmem:[%s11817_s26 + $0x30] sm:$0xff]  ;;  %v11871_v5 = vpack.c.bf16 %v634_v34, %v633_v28  ;;  %v819_v22 = vand.u32 %v9091_v17, %v11792_v12 }
  0x17   : > { %v647_v39 = vmax.f32 %v631_v26, %v639_v30  ;;  %v648_v40 = vmax.f32 %v632_v27, %v640_v31  ;;  %970 = vmatprep.subr.bf16.mxu0 %v9074_v33  ;;  %v643_v1 = vmul.f32 0.01, %v635_v48  ;;  %v638_v3 = vld [vmem:[%s11817_s26 + $0x38] sm:$0xff]  ;;  %902 = vmatpush1.bf16.msra.mxu1 %v807_v62  ;;  %v11873_v6 = vpack.c.bf16 %v636_v52, %v635_v48  ;;  %v10420_v30 = vld [vmem:[%s15139_s24] ss:$16 sps:$4 sm:$0xff]   ;;  %s622_s26 = scalar_lea.vmem %s15141_s2, %s11802_s30 }
  0x18   : > { %v649_v54 = vmax.f32 %v633_v28, %v641_v41  ;;  %v650_v55 = vmax.f32 %v634_v34, %v642_v42  ;;  %v11875_v7 = vpack.c.bf16 %v638_v3, %v637_v56  ;;  %v644_v9 = vmul.f32 0.01, %v636_v52  ;;  %1043 = vmatprep.subr.bf16.mxu1 %v9076_v58  ;;  %v10434_v25 = vld [vmem:[%s15139_s24 + $0xc] ss:$16 sps:$4 sm:$0xff]   ;;  %v10425_v31 = vld [vmem:[%s15139_s24 + $0x24] ss:$16 sps:$4 sm:$0xff]  }
  0x19   : > { %v11847_v46 = vpack.c.bf16 %v648_v40, %v647_v39  ;;  %v651_v18 = vmax.f32 %v635_v48, %v643_v1  ;;  %v645_v21 = vmul.f32 0.01, %v637_v56  ;;  %v646_v24 = vmul.f32 0.01, %v638_v3  ;;  %v10423_v34 = vld [vmem:[%s15139_s24 + $0x20] ss:$16 sps:$4 sm:$0xff]  }
  0x1a   : > { %v11877_v8 = vpack.c.bf16 %v650_v55, %v649_v54  ;;  %v652_v19 = vmax.f32 %v636_v52, %v644_v9  ;;  %v9118_v33 = vcombine.high %v1124_v29, %v1124_v29  ;;  %v10432_v38 = vld [vmem:[%s15139_s24 + $0x8] ss:$16 sps:$4 sm:$0xff]   ;;  %v10437_v39 = vld [vmem:[%s15139_s24 + $0x2c] ss:$16 sps:$4 sm:$0xff]   ;;  %v9120_v40 = vcombine.high %v1125_v36, %v1125_v36  ;;  %v10448_v48 = vld [vmem:[%s15118_s5 + $0x24] ss:$16 sps:$4 sm:$0xff]  }
  0x1b   : > { %9093 = vmatmul.mubr.msk.bf16.vlgmr.msra.gmra.mrb[0].mxu0 %vm783_vm2, %v11847_v46  ;;  %9097 = vmatmul.mubr.msk.bf16.vlgmr.msra.gmra.mrb[0].mxu1 %vm783_vm2, %v11847_v46  ;;  %v653_v26 = vmax.f32 %v637_v56, %v645_v21  ;;  %v654_v27 = vmax.f32 %v638_v3, %v646_v24  ;;  %v1211_v41 = vand.u32 %v9117_v35, %v11792_v12  ;;  %v10435_v42 = vld [vmem:[%s15139_s24 + $0x28] ss:$16 sps:$4 sm:$0xff]   ;;  %v10454_v50 = vld [vmem:[%s15118_s5 + $0x44] ss:$16 sps:$4 sm:$0xff]   ;;  %v10451_v52 = vld [vmem:[%s15118_s5 + $0x2c] ss:$16 sps:$4 sm:$0xff]  }
  0x1c   : > { %971 = vmatpush1.bf16.msra.mxu0 %v9073_v43  ;;  %866 = vmatprep.mubr.bf16.mxu0 %v11665_v13  ;;  %v657_v23 = vpack.c.bf16 %v652_v19, %v651_v18  ;;  %v1214_v37 = vand.u32 %v9118_v33, %v11792_v12  ;;  %v10442_v43 = vld [vmem:[%s15118_s5 + $0x4] ss:$16 sps:$4 sm:$0xff]   ;;  %v1220_v45 = vand.u32 %v9120_v40, %v11792_v12  ;;  %v10443_v51 = vld [vmem:[%s15118_s5 + $0x8] ss:$16 sps:$4 sm:$0xff]   ;;  %v10452_v53 = vld [vmem:[%s15118_s5 + $0x40] ss:$16 sps:$4 sm:$0xff]  }
  0x1d   : > { %972 = vmatprep.subr.bf16.mxu0 %v9082_v47  ;;  %1044 = vmatpush1.bf16.msra.mxu1 %v9075_v4  ;;  %v658_v28 = vpack.c.bf16 %v654_v27, %v653_v26  ;;  %v10445_v47 = vld [vmem:[%s15118_s5 + $0xc] ss:$16 sps:$4 sm:$0xff]   ;;  %v10460_v54 = vld [vmem:[%s15118_s5 + $0x64] ss:$16 sps:$4 sm:$0xff]   ;;  %v10449_v55 = vld [vmem:[%s15118_s5 + $0x28] ss:$16 sps:$4 sm:$0xff]  }
  0x1e   : > { %939 = vmatprep.mubr.bf16.mxu1 %v11665_v13  ;;  %1045 = vmatprep.subr.bf16.mxu1 %v9084_v10  ;;  %v10457_v56 = vld [vmem:[%s15118_s5 + $0x4c] ss:$16 sps:$4 sm:$0xff]   ;;  %v10458_v57 = vld [vmem:[%s15118_s5 + $0x60] ss:$16 sps:$4 sm:$0xff]   ;;  %v10455_v58 = vld [vmem:[%s15118_s5 + $0x48] ss:$16 sps:$4 sm:$0xff]  }
  0x1f   : > { %v10463_v59 = vld [vmem:[%s15118_s5 + $0x6c] ss:$16 sps:$4 sm:$0xff]   ;;  %v10472_v61 = vld [vmem:[%s15118_s5 + $0xa4] ss:$16 sps:$4 sm:$0xff]   ;;  %v10461_v62 = vld [vmem:[%s15118_s5 + $0x68] ss:$16 sps:$4 sm:$0xff]  }
  0x20   : > { %973 = vmatpush1.bf16.msra.mxu0 %v9081_v60  ;;  %v10464_v60 = vld [vmem:[%s15118_s5 + $0x80] ss:$16 sps:$4 sm:$0xff]   ;;  %v10469_v63 = vld [vmem:[%s15118_s5 + $0x8c] ss:$16 sps:$4 sm:$0xff]   ;;  %v10478_v1 = vld [vmem:[%s15118_s5 + $0xc4] ss:$16 sps:$4 sm:$0xff]  }
  0x21   : > { %974 = vmatprep.subr.bf16.mxu0 %v816_v2  ;;  %1046 = vmatpush1.bf16.msra.mxu1 %v9083_v16  ;;  %v10470_v0 = vld [vmem:[%s15118_s5 + $0xa0] ss:$16 sps:$4 sm:$0xff]   ;;  %v10467_v2 = vld [vmem:[%s15118_s5 + $0x88] ss:$16 sps:$4 sm:$0xff]   ;;  %v10475_v3 = vld [vmem:[%s15118_s5 + $0xac] ss:$16 sps:$4 sm:$0xff]  }
  0x22   : > { %1047 = vmatprep.subr.bf16.mxu1 %v822_v20  ;;  %v10476_v4 = vld [vmem:[%s15118_s5 + $0xc0] ss:$16 sps:$4 sm:$0xff]   ;;  %v10481_v9 = vld [vmem:[%s15118_s5 + $0xcc] ss:$16 sps:$4 sm:$0xff]   ;;  %v10479_v11 = vld [vmem:[%s15118_s5 + $0xc8] ss:$16 sps:$4 sm:$0xff]  }
  0x23   : > { %9094 = vmatmul.mubr.msk.bf16.gmra.mrb[4].mxu0 %vm783_vm2, %v11877_v8  ;;  %9098 = vmatmul.mubr.msk.bf16.gmra.mrb[4].mxu1 %vm783_vm2, %v11877_v8  ;;  %v10482_v10 = vld [vmem:[%s15118_s5 + $0xe0] ss:$16 sps:$4 sm:$0xff]   ;;  %v10485_v16 = vld [vmem:[%s15118_s5 + $0xe8] ss:$16 sps:$4 sm:$0xff]   ;;  %v10493_v17 = vld [vmem:[%s15118_s5 + $0x10c] ss:$16 sps:$4 sm:$0xff]  }
  0x24   : > { %876 = vmatprep.mubr.bf16.mxu0 %v11665_v13  ;;  %975 = vmatpush1.bf16.msra.mxu0 %v813_v14  ;;  %v10488_v14 = vld [vmem:[%s15118_s5 + $0x100] ss:$16 sps:$4 sm:$0xff]   ;;  %v10502_v19 = vld [vmem:[%s15118_s5 + $0x144] ss:$16 sps:$4 sm:$0xff]   ;;  %v10491_v20 = vld [vmem:[%s15118_s5 + $0x108] ss:$16 sps:$4 sm:$0xff]  }
  0x25   : > { %1222 = vmatprep.subr.bf16.mxu0 %v10422_v15  ;;  %949 = vmatprep.mubr.bf16.mxu1 %v11665_v13  ;;  %v10496_v15 = vld [vmem:[%s15118_s5 + $0x124] ss:$16 sps:$4 sm:$0xff]   ;;  %v10494_v18 = vld [vmem:[%s15118_s5 + $0x120] ss:$16 sps:$4 sm:$0xff]   ;;  %v10505_v24 = vld [vmem:[%s15118_s5 + $0x14c] ss:$16 sps:$4 sm:$0xff]  }
  0x26   : > { %1048 = vmatpush1.bf16.msra.mxu1 %v819_v22  ;;  %v10500_v21 = vld [vmem:[%s15118_s5 + $0x140] ss:$16 sps:$4 sm:$0xff]   ;;  %v10508_v22 = vld [vmem:[%s15118_s5 + $0x164] ss:$16 sps:$4 sm:$0xff]   ;;  %v10503_v27 = vld [vmem:[%s15118_s5 + $0x148] ss:$16 sps:$4 sm:$0xff]  }
  0x27   : > { %1295 = vmatprep.subr.bf16.mxu1 %v10434_v25  ;;  %v10506_v25 = vld [vmem:[%s15118_s5 + $0x160] ss:$16 sps:$4 sm:$0xff]   ;;  %v10514_v26 = vld [vmem:[%s15118_s5 + $0x184] ss:$16 sps:$4 sm:$0xff]   ;;  %v10515_v33 = vld [vmem:[%s15118_s5 + $0x188] ss:$16 sps:$4 sm:$0xff]  }
  0x28   : > { %v10512_v29 = vld [vmem:[%s15118_s5 + $0x180] ss:$16 sps:$4 sm:$0xff]   ;;  %v10523_v35 = vld [vmem:[%s15118_s5 + $0x1ac] ss:$16 sps:$4 sm:$0xff]  }
  0x29   : > { %v10518_v36 = vld [vmem:[%s15118_s5 + $0x1a0] ss:$16 sps:$4 sm:$0xff]  }
  0x2a   : > { %v10524_v40 = vld [vmem:[%s15118_s5 + $0x1c0] ss:$16 sps:$4 sm:$0xff]  }
  0x2b   : > { %9095 = vmatmul.mubr.msk.bf16.gmra.mrb[8].mxu0 %vm783_vm2, %v657_v23  ;;  %9099 = vmatmul.mubr.msk.bf16.gmra.mrb[8].mxu1 %vm783_vm2, %v657_v23 }
  0x2c   : > { %886 = vmatprep.mubr.bf16.mxu0 %v11665_v13  ;;  %959 = vmatprep.mubr.bf16.mxu1 %v11665_v13 }
  0x33   : > { %9096 = vmatmul.mubr.msk.bf16.gmra.mrb[12].mxu0 %vm783_vm2, %v658_v28  ;;  %9100 = vmatmul.mubr.msk.bf16.gmra.mrb[12].mxu1 %vm783_vm2, %v658_v28 }
  0x34   : > { %1002 = vmatprep.mubr.bf16.mxu0 %v11665_v13  ;;  %1075 = vmatprep.mubr.bf16.mxu1 %v11665_v13 }
  0x3b   : > { %9101 = vmatmul.mubr.msk.bf16.vlgmr.msra.gmra.mrb[16].mxu0 %vm783_vm2, %v11847_v46  ;;  %9105 = vmatmul.mubr.msk.bf16.vlgmr.msra.gmra.mrb[16].mxu1 %vm783_vm2, %v11847_v46  ;;  %v1217_v46 = vand.u32 %v9119_v44, %v11792_v12  ;;  %v10440_v12 = vld [vmem:[%s15118_s5] ss:$16 sps:$4 sm:$0xff]  }
  0x3c   : > { %1223 = vmatpush1.bf16.msra.mxu0 %v10420_v30  ;;  %1012 = vmatprep.mubr.bf16.mxu0 %v11665_v13  ;;  %v10509_v30 = vld [vmem:[%s15118_s5 + $0x168] ss:$16 sps:$4 sm:$0xff]   ;;  %v10530_v44 = vld [vmem:[%s15118_s5 + $0x1e0] ss:$16 sps:$4 sm:$0xff]  }
  0x3d   : > { %1224 = vmatprep.subr.bf16.mxu0 %v10425_v31  ;;  %1296 = vmatpush1.bf16.msra.mxu1 %v10432_v38  ;;  %v10517_v31 = vld [vmem:[%s15118_s5 + $0x18c] ss:$16 sps:$4 sm:$0xff]   ;;  %v10526_v38 = vld [vmem:[%s15118_s5 + $0x1c4] ss:$16 sps:$4 sm:$0xff]  }
  0x3e   : > { %1085 = vmatprep.mubr.bf16.mxu1 %v11665_v13  ;;  %1297 = vmatprep.subr.bf16.mxu1 %v10437_v39  ;;  %v10529_v39 = vld [vmem:[%s15118_s5 + $0x1cc] ss:$16 sps:$4 sm:$0xff]  }
  0x40   : > { %1225 = vmatpush1.bf16.msra.mxu0 %v10423_v34  ;;  %v10520_v34 = vld [vmem:[%s15118_s5 + $0x1a4] ss:$16 sps:$4 sm:$0xff]  }
  0x41   : > { %1226 = vmatprep.subr.bf16.mxu0 %v1214_v37  ;;  %1298 = vmatpush1.bf16.msra.mxu1 %v10435_v42  ;;  %v10521_v37 = vld [vmem:[%s15118_s5 + $0x1a8] ss:$16 sps:$4 sm:$0xff]   ;;  %v10532_v42 = vld [vmem:[%s15118_s5 + $0x1e4] ss:$16 sps:$4 sm:$0xff]  }
  0x42   : > { %1299 = vmatprep.subr.bf16.mxu1 %v1220_v45  ;;  %v10533_v45 = vld [vmem:[%s15118_s5 + $0x1e8] ss:$16 sps:$4 sm:$0xff]  }
  0x43   : > { %9102 = vmatmul.mubr.msk.bf16.gmra.mrb[20].mxu0 %vm783_vm2, %v11877_v8  ;;  %9106 = vmatmul.mubr.msk.bf16.gmra.mrb[20].mxu1 %vm783_vm2, %v11877_v8  ;;  %v10473_v8 = vld [vmem:[%s15118_s5 + $0xa8] ss:$16 sps:$4 sm:$0xff]  }
  0x44   : > { %1022 = vmatprep.mubr.bf16.mxu0 %v11665_v13  ;;  %1227 = vmatpush1.bf16.msra.mxu0 %v1211_v41  ;;  %v10527_v41 = vld [vmem:[%s15118_s5 + $0x1c8] ss:$16 sps:$4 sm:$0xff]  }
  0x45   : > { %2216 = vmatprep.subr.bf16.mxu0 %v10442_v43  ;;  %1095 = vmatprep.mubr.bf16.mxu1 %v11665_v13  ;;  %v10535_v43 = vld [vmem:[%s15118_s5 + $0x1ec] ss:$16 sps:$4 sm:$0xff]  }
  0x46   : > { %1300 = vmatpush1.bf16.msra.mxu1 %v1217_v46  ;;  %v10541_v46 = vld [vmem:[%s15118_s5 + $0x20c] ss:$16 sps:$4 sm:$0xff]  }
  0x47   : > { %2362 = vmatprep.subr.bf16.mxu1 %v10445_v47  ;;  %v10538_v47 = vld [vmem:[%s15118_s5 + $0x204] ss:$16 sps:$4 sm:$0xff]  }
  0x4b   : > { %9103 = vmatmul.mubr.msk.bf16.gmra.mrb[24].mxu0 %vm783_vm2, %v657_v23  ;;  %9107 = vmatmul.mubr.msk.bf16.gmra.mrb[24].mxu1 %vm783_vm2, %v657_v23  ;;  %v10497_v23 = vld [vmem:[%s15118_s5 + $0x128] ss:$16 sps:$4 sm:$0xff]  }
  0x4c   : > { %1032 = vmatprep.mubr.bf16.mxu0 %v11665_v13  ;;  %1105 = vmatprep.mubr.bf16.mxu1 %v11665_v13 }
  0x53   : > { %9104 = vmatmul.mubr.msk.bf16.gmra.mrb[28].mxu0 %vm783_vm2, %v658_v28  ;;  %9108 = vmatmul.mubr.msk.bf16.gmra.mrb[28].mxu1 %vm783_vm2, %v658_v28  ;;  %v10511_v28 = vld [vmem:[%s15118_s5 + $0x16c] ss:$16 sps:$4 sm:$0xff]  }
  0x54   : > { %1254 = vmatprep.mubr.bf16.mxu0 %v11665_v13  ;;  %1327 = vmatprep.mubr.bf16.mxu1 %v11665_v13 }
  0x5b   : > { %9121 = vmatmul.mubr.msk.bf16.vlgmr.msra.gmra.mrb[32].mxu0 %vm783_vm2, %v11829_v32  ;;  %9125 = vmatmul.mubr.msk.bf16.vlgmr.msra.gmra.mrb[32].mxu1 %vm783_vm2, %v11829_v32  ;;  %v10466_v32 = vld [vmem:[%s15118_s5 + $0x84] ss:$16 sps:$4 sm:$0xff]  }
  0x5c   : > { %1264 = vmatprep.mubr.bf16.mxu0 %v11665_v13  ;;  %2217 = vmatpush1.bf16.msra.mxu0 %v10440_v12  ;;  %v1128_v12 = vlaneseq }
  0x5d   : > { %2218 = vmatprep.subr.bf16.mxu0 %v10448_v48  ;;  %1337 = vmatprep.mubr.bf16.mxu1 %v11665_v13 }
  0x5e   : > { %2363 = vmatpush1.bf16.msra.mxu1 %v10443_v51  ;;  %v1129_v48 = vshrl.u32 %v1128_v12, 7 }
  0x5f   : > { %2364 = vmatprep.subr.bf16.mxu1 %v10451_v52 }
  0x60   : > { %2219 = vmatpush1.bf16.msra.mxu0 %v10446_v49  ;;  %v1126_v49 = vld [vmem:[%s15140_s18] sm:$0xf]  ;;  %v12178_v51 = vsub.s32 1, %v1129_v48 }
  0x61   : > { %2220 = vmatprep.subr.bf16.mxu0 %v10454_v50  ;;  %v12176_v50 = vsub.s32 0, %v1129_v48 }
  0x62   : > { %2365 = vmatpush1.bf16.msra.mxu1 %v10449_v55 }
  0x63   : > { %9122 = vmatmul.mubr.msk.bf16.gmra.mrb[36].mxu0 %vm783_vm2, %v11871_v5  ;;  %2366 = vmatprep.subr.bf16.mxu1 %v10457_v56  ;;  %v12181_v52 = vrot.slane %v1126_v49, %v12176_v50  ;;  %v12188_v56 = vsub.s32 3, %v1129_v48 }
  0x64   : > { %1274 = vmatprep.mubr.bf16.mxu0 %v11665_v13  ;;  %2221 = vmatpush1.bf16.msra.mxu0 %v10452_v53  ;;  %v12184_v53 = vrot.slane %v1126_v49, %v12178_v51 }
  0x65   : > { %2222 = vmatprep.subr.bf16.mxu0 %v10460_v54  ;;  %9126 = vmatmul.mubr.msk.bf16.gmra.mrb[36].mxu1 %vm783_vm2, %v11871_v5  ;;  %v10484_v5 = vld [vmem:[%s15118_s5 + $0xe4] ss:$16 sps:$4 sm:$0xff]   ;;  %v12186_v54 = vsub.s32 2, %v1129_v48 }
  0x66   : > { %1347 = vmatprep.mubr.bf16.mxu1 %v11665_v13  ;;  %2367 = vmatpush1.bf16.msra.mxu1 %v10455_v58 }
  0x67   : > { %2368 = vmatprep.subr.bf16.mxu1 %v10463_v59 }
  0x68   : > { %2223 = vmatpush1.bf16.msra.mxu0 %v10458_v57 }
  0x69   : > { %2224 = vmatprep.subr.bf16.mxu0 %v10466_v32 }
  0x6a   : > { %2369 = vmatpush1.bf16.msra.mxu1 %v10461_v62 }
  0x6b   : > { %9123 = vmatmul.mubr.msk.bf16.gmra.mrb[40].mxu0 %vm783_vm2, %v11873_v6  ;;  %2370 = vmatprep.subr.bf16.mxu1 %v10469_v63  ;;  %v12194_v63 = vrot.slane %v1126_v49, %v12186_v54 }
  0x6c   : > { %1284 = vmatprep.mubr.bf16.mxu0 %v11665_v13  ;;  %2225 = vmatpush1.bf16.msra.mxu0 %v10464_v60 }
  0x6d   : > { %2226 = vmatprep.subr.bf16.mxu0 %v10472_v61  ;;  %9127 = vmatmul.mubr.msk.bf16.gmra.mrb[40].mxu1 %vm783_vm2, %v11873_v6  ;;  %v10490_v6 = vld [vmem:[%s15118_s5 + $0x104] ss:$16 sps:$4 sm:$0xff]  }
  0x6e   : > { %1357 = vmatprep.mubr.bf16.mxu1 %v11665_v13  ;;  %2371 = vmatpush1.bf16.msra.mxu1 %v10467_v2  ;;  %v10487_v13 = vld [vmem:[%s15118_s5 + $0xec] ss:$16 sps:$4 sm:$0xff]   ;;  %v12198_v2 = vrot.slane %v1126_v49, %v12188_v56 }
  0x6f   : > { %2372 = vmatprep.subr.bf16.mxu1 %v10475_v3 }
  0x70   : > { %2227 = vmatpush1.bf16.msra.mxu0 %v10470_v0 }
  0x71   : > { %2228 = vmatprep.subr.bf16.mxu0 %v10478_v1 }
  0x72   : > { %2373 = vmatpush1.bf16.msra.mxu1 %v10473_v8 }
  0x73   : > { %9124 = vmatmul.mubr.msk.bf16.gmra.mrb[44].mxu0 %vm783_vm2, %v11875_v7  ;;  %2374 = vmatprep.subr.bf16.mxu1 %v10481_v9 }
  0x74   : > { %2229 = vmatpush1.bf16.msra.mxu0 %v10476_v4 }
  0x75   : > { %2230 = vmatprep.subr.bf16.mxu0 %v10484_v5  ;;  %9128 = vmatmul.mubr.msk.bf16.gmra.mrb[44].mxu1 %vm783_vm2, %v11875_v7  ;;  %v10499_v7 = vld [vmem:[%s15118_s5 + $0x12c] ss:$16 sps:$4 sm:$0xff]  }
  0x76   : > { %2375 = vmatpush1.bf16.msra.mxu1 %v10479_v11 }
  0x77   : > { %2376 = vmatprep.subr.bf16.mxu1 %v10487_v13 }
  0x78   : > { %2231 = vmatpush1.bf16.msra.mxu0 %v10482_v10 }
  0x79   : > { %2232 = vmatprep.subr.bf16.mxu0 %v10490_v6 }
  0x7a   : > { %2377 = vmatpush1.bf16.msra.mxu1 %v10485_v16 }
  0x7b   : > { %2378 = vmatprep.subr.bf16.mxu1 %v10493_v17 }
  0x7c   : > { %2233 = vmatpush1.bf16.msra.mxu0 %v10488_v14  ;;  %v10536_v14 = vld [vmem:[%s15118_s5 + $0x200] ss:$16 sps:$4 sm:$0xff]  }
  0x7d   : > { %2234 = vmatprep.subr.bf16.mxu0 %v10496_v15  ;;  %v10539_v15 = vld [vmem:[%s15118_s5 + $0x208] ss:$16 sps:$4 sm:$0xff]  }
  0x7e   : > { %2379 = vmatpush1.bf16.msra.mxu1 %v10491_v20  ;;  %v10544_v20 = vld [vmem:[%s15118_s5 + $0x224] ss:$16 sps:$4 sm:$0xff]  }
  0x7f   : > { %2380 = vmatprep.subr.bf16.mxu1 %v10499_v7  ;;  %v10547_v7 = vld [vmem:[%s15118_s5 + $0x22c] ss:$16 sps:$4 sm:$0xff]  }
  0x80   : > { %2235 = vmatpush1.bf16.msra.mxu0 %v10494_v18 }
  0x81   : > { %2236 = vmatprep.subr.bf16.mxu0 %v10502_v19 }
  0x82   : > { %2381 = vmatpush1.bf16.msra.mxu1 %v10497_v23 }
  0x83   : > { %2382 = vmatprep.subr.bf16.mxu1 %v10505_v24 }
  0x84   : > { %2237 = vmatpush1.bf16.msra.mxu0 %v10500_v21 }
  0x85   : > { %2238 = vmatprep.subr.bf16.mxu0 %v10508_v22 }
  0x86   : > { %2383 = vmatpush1.bf16.msra.mxu1 %v10503_v27 }
  0x87   : > { %2384 = vmatprep.subr.bf16.mxu1 %v10511_v28 }
  0x88   : > { %2239 = vmatpush1.bf16.msra.mxu0 %v10506_v25 }
  0x89   : > { %2240 = vmatprep.subr.bf16.mxu0 %v10514_v26 }
  0x8a   : > { %2385 = vmatpush1.bf16.msra.mxu1 %v10509_v30 }
  0x8b   : > { %2386 = vmatprep.subr.bf16.mxu1 %v10517_v31 }
  0x8c   : > { %2241 = vmatpush1.bf16.msra.mxu0 %v10512_v29 }
  0x8d   : > { %2242 = vmatprep.subr.bf16.mxu0 %v10520_v34 }
  0x8e   : > { %2387 = vmatpush1.bf16.msra.mxu1 %v10515_v33 }
  0x8f   : > { %2388 = vmatprep.subr.bf16.mxu1 %v10523_v35 }
  0x90   : > { %2243 = vmatpush1.bf16.msra.mxu0 %v10518_v36 }
  0x91   : > { %2244 = vmatprep.subr.bf16.mxu0 %v10526_v38  ;;  %v10545_v38 = vld [vmem:[%s15118_s5 + $0x228] ss:$16 sps:$4 sm:$0xff]  }
  0x92   : > { %2389 = vmatpush1.bf16.msra.mxu1 %v10521_v37  ;;  %v10542_v37 = vld [vmem:[%s15118_s5 + $0x220] ss:$16 sps:$4 sm:$0xff]  }
  0x93   : > { %2390 = vmatprep.subr.bf16.mxu1 %v10529_v39 }
  0x94   : > { %2245 = vmatpush1.bf16.msra.mxu0 %v10524_v40 }
  0x95   : > { %2246 = vmatprep.subr.bf16.mxu0 %v10532_v42 }
  0x96   : > { %2391 = vmatpush1.bf16.msra.mxu1 %v10527_v41 }
  0x97   : > { %2392 = vmatprep.subr.bf16.mxu1 %v10535_v43  ;;  %v10550_v43 = vld [vmem:[%s15118_s5 + $0x244] ss:$16 sps:$4 sm:$0xff]  }
  0x98   : > { %2247 = vmatpush1.bf16.msra.mxu0 %v10530_v44  ;;  %v10553_v44 = vld [vmem:[%s15118_s5 + $0x24c] ss:$16 sps:$4 sm:$0xff]  }
  0x99   : > { %2289 = vmatprep.subr.bf16.mxu0 %v10538_v47 }
  0x9a   : > { %2393 = vmatpush1.bf16.msra.mxu1 %v10533_v45 }
  0x9b   : > { %2435 = vmatprep.subr.bf16.mxu1 %v10541_v46 }
 0x12e   : > { %v1256_v55 = vpop.f32.mrb[32].mxu0  ;;  %v1329_v5 = vpop.f32.mrb[32].mxu1 }
 0x12f   : > { %v1257_v57 = vadd.f32 %v1256_v55, %v12181_v52  ;;  %v1258_v32 = vpop.f32.mrb[33].mxu0  ;;  %v1330_v10 = vadd.f32 %v1329_v5, %v12194_v63  ;;  %v1331_v6 = vpop.f32.mrb[33].mxu1  ;;  %v10556_v5 = vld [vmem:[%s15118_s5 + $0x264] ss:$16 sps:$4 sm:$0xff]  }
 0x130   : > { %v1259_v58 = vadd.f32 %v1258_v32, %v12184_v53  ;;  %v1260_v59 = vpop.f32.mrb[34].mxu0  ;;  %v1332_v17 = vadd.f32 %v1331_v6, %v12198_v2  ;;  %v1333_v18 = vpop.f32.mrb[34].mxu1 }
 0x131   : > { %v1368_v60 = vmul.f32 0.01, %v1257_v57  ;;  %v1261_v61 = vadd.f32 %v1260_v59, %v12181_v52  ;;  %v1262_v62 = vpop.f32.mrb[35].mxu0  ;;  %v1370_v23 = vmul.f32 0.01, %v1330_v10  ;;  %v1334_v24 = vadd.f32 %v1333_v18, %v12194_v63  ;;  %v1335_v25 = vpop.f32.mrb[35].mxu1 }
 0x132   : > { %v1369_v0 = vmul.f32 0.01, %v1259_v58  ;;  %v1263_v1 = vadd.f32 %v1262_v62, %v12184_v53  ;;  %v1371_v29 = vmul.f32 0.01, %v1332_v17  ;;  %v1336_v30 = vadd.f32 %v1335_v25, %v12198_v2  ;;  %v10557_v25 = vld [vmem:[%s15118_s5 + $0x268] ss:$16 sps:$4 sm:$0xff]  }
 0x133   : > { %v1372_v3 = vmul.f32 0.01, %v1261_v61  ;;  %v1400_v8 = vmax.f32 %v1257_v57, %v1368_v60  ;;  %v1402_v35 = vmax.f32 %v1330_v10, %v1370_v23  ;;  %v1374_v36 = vmul.f32 0.01, %v1334_v24  ;;  %v10548_v60 = vld [vmem:[%s15118_s5 + $0x240] ss:$16 sps:$4 sm:$0xff]  }
 0x134   : > { %v1373_v4 = vmul.f32 0.01, %v1263_v1  ;;  %v1401_v11 = vmax.f32 %v1259_v58, %v1369_v0  ;;  %v1403_v41 = vmax.f32 %v1332_v17, %v1371_v29  ;;  %v1375_v42 = vmul.f32 0.01, %v1336_v30 }
 0x135   : > { %v1404_v9 = vmax.f32 %v1261_v61, %v1372_v3  ;;  %v1406_v46 = vmax.f32 %v1334_v24, %v1374_v36  ;;  %v10551_v61 = vld [vmem:[%s15118_s5 + $0x248] ss:$16 sps:$4 sm:$0xff]   ;;  %v10554_v24 = vld [vmem:[%s15118_s5 + $0x260] ss:$16 sps:$4 sm:$0xff]  }
 0x136   : > { %v1405_v13 = vmax.f32 %v1263_v1, %v1373_v4  ;;  %v1266_v16 = vpop.f32.mrb[36].mxu0  ;;  %v1407_v49 = vmax.f32 %v1336_v30, %v1375_v42  ;;  %v10562_v30 = vld [vmem:[%s15118_s5 + $0x284] ss:$16 sps:$4 sm:$0xff]  }
 0x137   : > { %v1432_v19 = vpack.c.bf16 %v1404_v9, %v1400_v8  ;;  %v1267_v21 = vadd.f32 %v1266_v16, %v12181_v52  ;;  %v1268_v22 = vpop.f32.mrb[37].mxu0  ;;  %v12232_v32 = vpack.c.bf16 %v1406_v46, %v1402_v35  ;;  %v10559_v8 = vld [vmem:[%s15118_s5 + $0x26c] ss:$16 sps:$4 sm:$0xff]  }
 0x138   : > { %v1433_v26 = vpack.c.bf16 %v1405_v13, %v1401_v11  ;;  %v1269_v27 = vadd.f32 %v1268_v22, %v12184_v53  ;;  %v1270_v28 = vpop.f32.mrb[38].mxu0  ;;  %v1339_v55 = vpop.f32.mrb[36].mxu1  ;;  %v12241_v1 = vpack.c.bf16 %v1407_v49, %v1403_v41 }
 0x139   : > { %v1376_v31 = vmul.f32 0.01, %v1267_v21  ;;  %v1271_v33 = vadd.f32 %v1270_v28, %v12181_v52  ;;  %v1272_v34 = vpop.f32.mrb[39].mxu0  ;;  %v1340_v58 = vadd.f32 %v1339_v55, %v12194_v63  ;;  %v1341_v59 = vpop.f32.mrb[37].mxu1  ;;  %v10568_v55 = vld [vmem:[%s15118_s5 + $0x2a4] ss:$16 sps:$4 sm:$0xff]  }
 0x13a   : > { %2248 = vmatprep.mubr.bf16.mxu0 %v1433_v26  ;;  %2394 = vmatprep.mubr.bf16.mxu1 %v1433_v26  ;;  %v1377_v39 = vmul.f32 0.01, %v1269_v27  ;;  %v1273_v40 = vadd.f32 %v1272_v34, %v12184_v53  ;;  %v1342_v3 = vadd.f32 %v1341_v59, %v12198_v2  ;;  %v1343_v4 = vpop.f32.mrb[38].mxu1 }
 0x13b   : > { %2249 = vmatmul.mubr.bf16.vlgmr.msra.gmra.mrb[0].mxu0 %v1432_v19  ;;  %2395 = vmatmul.mubr.bf16.vlgmr.msra.gmra.mrb[0].mxu1 %v1432_v19  ;;  %v1408_v45 = vmax.f32 %v1267_v21, %v1376_v31  ;;  %v1380_v47 = vmul.f32 0.01, %v1271_v33  ;;  %v1378_v11 = vmul.f32 0.01, %v1340_v58  ;;  %v1344_v13 = vadd.f32 %v1343_v4, %v12194_v63  ;;  %v10565_v31 = vld [vmem:[%s15118_s5 + $0x28c] ss:$16 sps:$4 sm:$0xff]  }
 0x13c   : > { %2290 = vmatpush1.bf16.msra.mxu0 %v10536_v14  ;;  %2436 = vmatpush1.bf16.msra.mxu1 %v10539_v15  ;;  %v1409_v12 = vmax.f32 %v1269_v27, %v1377_v39  ;;  %v1381_v48 = vmul.f32 0.01, %v1273_v40  ;;  %v1345_v14 = vpop.f32.mrb[39].mxu1  ;;  %v1379_v18 = vmul.f32 0.01, %v1342_v3 }
 0x13d   : > { %2291 = vmatprep.subr.bf16.mxu0 %v10544_v20  ;;  %2437 = vmatprep.subr.bf16.mxu1 %v10547_v7  ;;  %v1412_v57 = vmax.f32 %v1271_v33, %v1380_v47  ;;  %v1346_v19 = vadd.f32 %v1345_v14, %v12198_v2  ;;  %v1410_v22 = vmax.f32 %v1340_v58, %v1378_v11  ;;  %v1382_v23 = vmul.f32 0.01, %v1344_v13 }
 0x13e   : > { %v1413_v62 = vmax.f32 %v1273_v40, %v1381_v48  ;;  %v1276_v0 = vpop.f32.mrb[40].mxu0  ;;  %v1411_v28 = vmax.f32 %v1342_v3, %v1379_v18 }
 0x13f   : > { %v1277_v9 = vadd.f32 %v1276_v0, %v12181_v52  ;;  %v1278_v10 = vpop.f32.mrb[41].mxu0  ;;  %v1436_v6 = vpack.c.bf16 %v1412_v57, %v1408_v45  ;;  %v1383_v29 = vmul.f32 0.01, %v1346_v19  ;;  %v1414_v35 = vmax.f32 %v1344_v13, %v1382_v23  ;;  %v10563_v45 = vld [vmem:[%s15118_s5 + $0x288] ss:$16 sps:$4 sm:$0xff]  }
 0x140   : > { %2292 = vmatpush1.bf16.msra.mxu0 %v10542_v37  ;;  %2438 = vmatpush1.bf16.msra.mxu1 %v10545_v38  ;;  %v1279_v15 = vadd.f32 %v1278_v10, %v12184_v53  ;;  %v1280_v16 = vpop.f32.mrb[42].mxu0  ;;  %v1437_v17 = vpack.c.bf16 %v1413_v62, %v1409_v12  ;;  %v1349_v39 = vpop.f32.mrb[40].mxu1  ;;  %v10571_v57 = vld [vmem:[%s15118_s5 + $0x2ac] ss:$16 sps:$4 sm:$0xff]  }
 0x141   : > { %2293 = vmatprep.subr.bf16.mxu0 %v10550_v43  ;;  %2439 = vmatprep.subr.bf16.mxu1 %v10553_v44  ;;  %v1384_v20 = vmul.f32 0.01, %v1277_v9  ;;  %v1281_v7 = vadd.f32 %v1280_v16, %v12181_v52  ;;  %v1282_v21 = vpop.f32.mrb[43].mxu0  ;;  %v1415_v38 = vmax.f32 %v1346_v19, %v1383_v29  ;;  %v1350_v41 = vadd.f32 %v1349_v39, %v12194_v63  ;;  %v1351_v42 = vpop.f32.mrb[41].mxu1  ;;  %v10560_v44 = vld [vmem:[%s15118_s5 + $0x280] ss:$16 sps:$4 sm:$0xff]  }
 0x142   : > { %v1385_v26 = vmul.f32 0.01, %v1279_v15  ;;  %v1283_v27 = vadd.f32 %v1282_v21, %v12184_v53  ;;  %2258 = vmatprep.mubr.bf16.mxu0 %v1437_v17  ;;  %2404 = vmatprep.mubr.bf16.mxu1 %v1437_v17  ;;  %v12269_v43 = vpack.c.bf16 %v1414_v35, %v1410_v22  ;;  %v1352_v12 = vadd.f32 %v1351_v42, %v12198_v2  ;;  %v1353_v48 = vpop.f32.mrb[42].mxu1  ;;  %v10569_v16 = vld [vmem:[%s15118_s5 + $0x2a8] ss:$16 sps:$4 sm:$0xff]  }
 0x143   : > { %v1416_v33 = vmax.f32 %v1277_v9, %v1384_v20  ;;  %v1388_v34 = vmul.f32 0.01, %v1281_v7  ;;  %2259 = vmatmul.mubr.bf16.gmra.mrb[4].mxu0 %v1436_v6  ;;  %2405 = vmatmul.mubr.bf16.gmra.mrb[4].mxu1 %v1436_v6  ;;  %v12278_v49 = vpack.c.bf16 %v1415_v38, %v1411_v28  ;;  %v1354_v62 = vadd.f32 %v1353_v48, %v12194_v63  ;;  %v1355_v0 = vpop.f32.mrb[43].mxu1  ;;  %v10580_v38 = vld [vmem:[%s15118_s5 + $0x2e4] ss:$16 sps:$4 sm:$0xff]  }
 0x144   : > { %2294 = vmatpush1.bf16.msra.mxu0 %v10548_v60  ;;  %2440 = vmatpush1.bf16.msra.mxu1 %v10551_v61  ;;  %v1417_v36 = vmax.f32 %v1279_v15, %v1385_v26  ;;  %v1389_v37 = vmul.f32 0.01, %v1283_v27  ;;  %v1386_v61 = vmul.f32 0.01, %v1350_v41  ;;  %v1356_v9 = vadd.f32 %v1355_v0, %v12198_v2  ;;  %v10566_v15 = vld [vmem:[%s15118_s5 + $0x2a0] ss:$16 sps:$4 sm:$0xff]  }
 0x145   : > { %2295 = vmatprep.subr.bf16.mxu0 %v10556_v5  ;;  %2441 = vmatprep.subr.bf16.mxu1 %v10559_v8  ;;  %v1420_v40 = vmax.f32 %v1281_v7, %v1388_v34  ;;  %v1387_v8 = vmul.f32 0.01, %v1352_v12  ;;  %v1390_v14 = vmul.f32 0.01, %v1354_v62  ;;  %v10577_v7 = vld [vmem:[%s15118_s5 + $0x2cc] ss:$16 sps:$4 sm:$0xff]  }
 0x146   : > { %v1421_v47 = vmax.f32 %v1283_v27, %v1389_v37  ;;  %v1286_v46 = vpop.f32.mrb[44].mxu0  ;;  %v1418_v13 = vmax.f32 %v1350_v41, %v1386_v61  ;;  %v1391_v20 = vmul.f32 0.01, %v1356_v9  ;;  %v10583_v39 = vld [vmem:[%s15118_s5 + $0x2ec] ss:$16 sps:$4 sm:$0xff]  }
 0x147   : > { %v1287_v58 = vadd.f32 %v1286_v46, %v12181_v52  ;;  %v1288_v59 = vpop.f32.mrb[45].mxu0  ;;  %v1440_v60 = vpack.c.bf16 %v1420_v40, %v1416_v33  ;;  %v1419_v19 = vmax.f32 %v1352_v12, %v1387_v8  ;;  %v1422_v23 = vmax.f32 %v1354_v62, %v1390_v14  ;;  %v10575_v33 = vld [vmem:[%s15118_s5 + $0x2c8] ss:$16 sps:$4 sm:$0xff]   ;;  %v10584_v0 = vld [vmem:[%s15118_s5 + $0x300] ss:$16 sps:$4 sm:$0xff]  }
 0x148   : > { %2296 = vmatpush1.bf16.msra.mxu0 %v10554_v24  ;;  %2442 = vmatpush1.bf16.msra.mxu1 %v10557_v25  ;;  %v1289_v3 = vadd.f32 %v1288_v59, %v12184_v53  ;;  %v1290_v4 = vpop.f32.mrb[46].mxu0  ;;  %v1441_v5 = vpack.c.bf16 %v1421_v47, %v1417_v36  ;;  %v1423_v25 = vmax.f32 %v1356_v9, %v1391_v20  ;;  %v1359_v26 = vpop.f32.mrb[44].mxu1  ;;  %v10589_v59 = vld [vmem:[%s15118_s5 + $0x30c] ss:$16 sps:$4 sm:$0xff]   ;;  %v10590_v9 = vld [vmem:[%s15118_s5 + $0x320] ss:$16 sps:$4 sm:$0xff]  }
 0x149   : > { %2297 = vmatprep.subr.bf16.mxu0 %v10562_v30  ;;  %2443 = vmatprep.subr.bf16.mxu1 %v10565_v31  ;;  %v1392_v10 = vmul.f32 0.01, %v1287_v58  ;;  %v1291_v6 = vadd.f32 %v1290_v4, %v12181_v52  ;;  %v1292_v11 = vpop.f32.mrb[47].mxu0  ;;  %v10574_v52 = vld [vmem:[%s15118_s5 + $0x2c4] ss:$16 sps:$4 sm:$0xff]   ;;  %v1360_v28 = vadd.f32 %v1359_v26, %v12194_v63  ;;  %v1361_v29 = vpop.f32.mrb[45].mxu1  ;;  %v12305_v30 = vpack.c.bf16 %v1422_v23, %v1418_v13 }
 0x14a   : > { %v1393_v17 = vmul.f32 0.01, %v1289_v3  ;;  %v1293_v18 = vadd.f32 %v1292_v11, %v12184_v53  ;;  %2268 = vmatprep.mubr.bf16.mxu0 %v1441_v5  ;;  %2414 = vmatprep.mubr.bf16.mxu1 %v1441_v5  ;;  %v10572_v31 = vld [vmem:[%s15118_s5 + $0x2c0] ss:$16 sps:$4 sm:$0xff]   ;;  %v1362_v35 = vadd.f32 %v1361_v29, %v12198_v2  ;;  %v1363_v36 = vpop.f32.mrb[46].mxu1  ;;  %v12314_v37 = vpack.c.bf16 %v1423_v25, %v1419_v19 }
 0x14b   : > { %v1424_v21 = vmax.f32 %v1287_v58, %v1392_v10  ;;  %v1396_v22 = vmul.f32 0.01, %v1291_v6  ;;  %2269 = vmatmul.mubr.bf16.gmra.mrb[8].mxu0 %v1440_v60  ;;  %2415 = vmatmul.mubr.bf16.gmra.mrb[8].mxu1 %v1440_v60  ;;  %v1394_v41 = vmul.f32 0.01, %v1360_v28  ;;  %v1364_v42 = vadd.f32 %v1363_v36, %v12194_v63  ;;  %v10592_v5 = vld [vmem:[%s15118_s5 + $0x324] ss:$16 sps:$4 sm:$0xff]  }
 0x14c   : > { %2298 = vmatpush1.bf16.msra.mxu0 %v10560_v44  ;;  %2444 = vmatpush1.bf16.msra.mxu1 %v10563_v45  ;;  %v1425_v53 = vmax.f32 %v1289_v3, %v1393_v17  ;;  %v1397_v24 = vmul.f32 0.01, %v1293_v18  ;;  %v1365_v44 = vpop.f32.mrb[47].mxu1  ;;  %v1395_v47 = vmul.f32 0.01, %v1362_v35 }
 0x14d   : > { %2299 = vmatprep.subr.bf16.mxu0 %v10568_v55  ;;  %2445 = vmatprep.subr.bf16.mxu1 %v10571_v57  ;;  %v1428_v27 = vmax.f32 %v1291_v6, %v1396_v22  ;;  %v1366_v46 = vadd.f32 %v1365_v44, %v12198_v2  ;;  %v1426_v12 = vmax.f32 %v1360_v28, %v1394_v41  ;;  %v1398_v48 = vmul.f32 0.01, %v1364_v42  ;;  %v10578_v55 = vld [vmem:[%s15118_s5 + $0x2e0] ss:$16 sps:$4 sm:$0xff]   ;;  %v10581_v57 = vld [vmem:[%s15118_s5 + $0x2e8] ss:$16 sps:$4 sm:$0xff]  }
 0x14e   : > { %v1429_v34 = vmax.f32 %v1293_v18, %v1397_v24  ;;  %v1427_v63 = vmax.f32 %v1362_v35, %v1395_v47  ;;  %v10586_v2 = vld [vmem:[%s15118_s5 + $0x304] ss:$16 sps:$4 sm:$0xff]   ;;  %v10587_v3 = vld [vmem:[%s15118_s5 + $0x308] ss:$16 sps:$4 sm:$0xff]   ;;  %v10595_v8 = vld [vmem:[%s15118_s5 + $0x32c] ss:$16 sps:$4 sm:$0xff]  }
 0x14f   : > { %v1444_v40 = vpack.c.bf16 %v1428_v27, %v1424_v21  ;;  %v1399_v58 = vmul.f32 0.01, %v1366_v46  ;;  %v1430_v60 = vmax.f32 %v1364_v42, %v1398_v48  ;;  %v10598_v10 = vld [vmem:[%s15118_s5 + $0x344] ss:$16 sps:$4 sm:$0xff]   ;;  %v10601_v6 = vld [vmem:[%s15118_s5 + $0x34c] ss:$16 sps:$4 sm:$0xff]  }
 0x150   : > { %2300 = vmatpush1.bf16.msra.mxu0 %v10566_v15  ;;  %2446 = vmatpush1.bf16.msra.mxu1 %v10569_v16  ;;  %v1445_v45 = vpack.c.bf16 %v1429_v34, %v1425_v53  ;;  %v10596_v11 = vld [vmem:[%s15118_s5 + $0x340] ss:$16 sps:$4 sm:$0xff]   ;;  %v10599_v13 = vld [vmem:[%s15118_s5 + $0x348] ss:$16 sps:$4 sm:$0xff]   ;;  %v10604_v14 = vld [vmem:[%s15118_s5 + $0x364] ss:$16 sps:$4 sm:$0xff]  }
 0x151   : > { %2301 = vmatprep.subr.bf16.mxu0 %v10574_v52  ;;  %2447 = vmatprep.subr.bf16.mxu1 %v10577_v7  ;;  %v1431_v61 = vmax.f32 %v1366_v46, %v1399_v58  ;;  %v12336_v62 = vpack.c.bf16 %v1430_v60, %v1426_v12  ;;  %v10607_v15 = vld [vmem:[%s15118_s5 + $0x36c] ss:$16 sps:$4 sm:$0xff]   ;;  %v10602_v16 = vld [vmem:[%s15118_s5 + $0x360] ss:$16 sps:$4 sm:$0xff]   ;;  %v10605_v17 = vld [vmem:[%s15118_s5 + $0x368] ss:$16 sps:$4 sm:$0xff]  }
 0x152   : > { %2278 = vmatprep.mubr.bf16.mxu0 %v1445_v45  ;;  %2424 = vmatprep.mubr.bf16.mxu1 %v1445_v45  ;;  %v10610_v18 = vld [vmem:[%s15118_s5 + $0x384] ss:$16 sps:$4 sm:$0xff]   ;;  %v10613_v19 = vld [vmem:[%s15118_s5 + $0x38c] ss:$16 sps:$4 sm:$0xff]   ;;  %v10608_v20 = vld [vmem:[%s15118_s5 + $0x380] ss:$16 sps:$4 sm:$0xff]  }
 0x153   : > { %2279 = vmatmul.mubr.bf16.gmra.mrb[12].mxu0 %v1444_v40  ;;  %2425 = vmatmul.mubr.bf16.gmra.mrb[12].mxu1 %v1444_v40  ;;  %v12346_v4 = vpack.c.bf16 %v1431_v61, %v1427_v63  ;;  %v10611_v52 = vld [vmem:[%s15118_s5 + $0x388] ss:$16 sps:$4 sm:$0xff]   ;;  %v10616_v7 = vld [vmem:[%s15118_s5 + $0x3a4] ss:$16 sps:$4 sm:$0xff]   ;;  %v10619_v21 = vld [vmem:[%s15118_s5 + $0x3ac] ss:$16 sps:$4 sm:$0xff]  }
 0x154   : > { %2302 = vmatpush1.bf16.msra.mxu0 %v10572_v31  ;;  %2448 = vmatpush1.bf16.msra.mxu1 %v10575_v33  ;;  %v10614_v22 = vld [vmem:[%s15118_s5 + $0x3a0] ss:$16 sps:$4 sm:$0xff]   ;;  %v10617_v23 = vld [vmem:[%s15118_s5 + $0x3a8] ss:$16 sps:$4 sm:$0xff]   ;;  %v10622_v53 = vld [vmem:[%s15118_s5 + $0x3c4] ss:$16 sps:$4 sm:$0xff]  }
 0x155   : > { %2303 = vmatprep.subr.bf16.mxu0 %v10580_v38  ;;  %2449 = vmatprep.subr.bf16.mxu1 %v10583_v39  ;;  %v10625_v24 = vld [vmem:[%s15118_s5 + $0x3cc] ss:$16 sps:$4 sm:$0xff]   ;;  %v10620_v25 = vld [vmem:[%s15118_s5 + $0x3c0] ss:$16 sps:$4 sm:$0xff]   ;;  %v10623_v26 = vld [vmem:[%s15118_s5 + $0x3c8] ss:$16 sps:$4 sm:$0xff]  }
 0x156   : > { %2321 = vmatprep.mubr.bf16.mxu0 %v12241_v1  ;;  %2467 = vmatprep.mubr.bf16.mxu1 %v12241_v1  ;;  %v10593_v1 = vld [vmem:[%s15118_s5 + $0x328] ss:$16 sps:$4 sm:$0xff]   ;;  %v10628_v27 = vld [vmem:[%s15118_s5 + $0x3e4] ss:$16 sps:$4 sm:$0xff]   ;;  %v10631_v28 = vld [vmem:[%s15118_s5 + $0x3ec] ss:$16 sps:$4 sm:$0xff]  }
 0x157   : > { %v10626_v29 = vld [vmem:[%s15118_s5 + $0x3e0] ss:$16 sps:$4 sm:$0xff]   ;;  %v10629_v31 = vld [vmem:[%s15118_s5 + $0x3e8] ss:$16 sps:$4 sm:$0xff]   ;;  %v10634_v33 = vld [vmem:[%s15120_s7 + $0x4] ss:$16 sps:$4 sm:$0xff]  }
 0x158   : > { %2304 = vmatpush1.bf16.msra.mxu0 %v10578_v55  ;;  %2450 = vmatpush1.bf16.msra.mxu1 %v10581_v57  ;;  %v10637_v34 = vld [vmem:[%s15120_s7 + $0xc] ss:$16 sps:$4 sm:$0xff]   ;;  %v10632_v35 = vld [vmem:[%s15120_s7] ss:$16 sps:$4 sm:$0xff]   ;;  %v10635_v36 = vld [vmem:[%s15120_s7 + $0x8] ss:$16 sps:$4 sm:$0xff]  }
 0x159   : > { %2305 = vmatprep.subr.bf16.mxu0 %v10586_v2  ;;  %2451 = vmatprep.subr.bf16.mxu1 %v10589_v59  ;;  %v10640_v38 = vld [vmem:[%s15120_s7 + $0x24] ss:$16 sps:$4 sm:$0xff]   ;;  %v10643_v39 = vld [vmem:[%s15120_s7 + $0x2c] ss:$16 sps:$4 sm:$0xff]   ;;  %v10638_v40 = vld [vmem:[%s15120_s7 + $0x20] ss:$16 sps:$4 sm:$0xff]  }
 0x15a   : > { %v10641_v41 = vld [vmem:[%s15120_s7 + $0x28] ss:$16 sps:$4 sm:$0xff]   ;;  %v10644_v42 = vld [vmem:[%s15120_s7 + $0x40] ss:$16 sps:$4 sm:$0xff]   ;;  %v10652_v45 = vld [vmem:[%s15120_s7 + $0x64] ss:$16 sps:$4 sm:$0xff]  }
 0x15b   : > { %v10647_v44 = vld [vmem:[%s15120_s7 + $0x48] ss:$16 sps:$4 sm:$0xff]   ;;  %v10655_v47 = vld [vmem:[%s15120_s7 + $0x6c] ss:$16 sps:$4 sm:$0xff]   ;;  %v10650_v46 = vld [vmem:[%s15120_s7 + $0x60] ss:$16 sps:$4 sm:$0xff]  }
 0x15c   : > { %2306 = vmatpush1.bf16.msra.mxu0 %v10584_v0  ;;  %2452 = vmatpush1.bf16.msra.mxu1 %v10587_v3  ;;  %v10653_v12 = vld [vmem:[%s15120_s7 + $0x68] ss:$16 sps:$4 sm:$0xff]   ;;  %v10656_v48 = vld [vmem:[%s15120_s7 + $0x80] ss:$16 sps:$4 sm:$0xff]   ;;  %v10664_v57 = vld [vmem:[%s15120_s7 + $0xa4] ss:$16 sps:$4 sm:$0xff]  }
 0x15d   : > { %2307 = vmatprep.subr.bf16.mxu0 %v10592_v5  ;;  %2453 = vmatprep.subr.bf16.mxu1 %v10595_v8  ;;  %v10659_v55 = vld [vmem:[%s15120_s7 + $0x88] ss:$16 sps:$4 sm:$0xff]   ;;  %v10667_v63 = vld [vmem:[%s15120_s7 + $0xac] ss:$16 sps:$4 sm:$0xff]   ;;  %v10662_v58 = vld [vmem:[%s15120_s7 + $0xa0] ss:$16 sps:$4 sm:$0xff]  }
 0x15e   : > { %v10665_v2 = vld [vmem:[%s15120_s7 + $0xa8] ss:$16 sps:$4 sm:$0xff]   ;;  %v10673_v59 = vld [vmem:[%s15120_s7 + $0xcc] ss:$16 sps:$4 sm:$0xff]   ;;  %v10668_v60 = vld [vmem:[%s15120_s7 + $0xc0] ss:$16 sps:$4 sm:$0xff]  }
 0x15f   : > { %v10671_v61 = vld [vmem:[%s15120_s7 + $0xc8] ss:$16 sps:$4 sm:$0xff]   ;;  %v10676_v0 = vld [vmem:[%s15120_s7 + $0xe4] ss:$16 sps:$4 sm:$0xff]   ;;  %v10679_v3 = vld [vmem:[%s15120_s7 + $0xec] ss:$16 sps:$4 sm:$0xff]  }
 0x160   : > { %2308 = vmatpush1.bf16.msra.mxu0 %v10590_v9  ;;  %2454 = vmatpush1.bf16.msra.mxu1 %v10593_v1  ;;  %v10677_v5 = vld [vmem:[%s15120_s7 + $0xe8] ss:$16 sps:$4 sm:$0xff]   ;;  %v10682_v8 = vld [vmem:[%s15120_s7 + $0x104] ss:$16 sps:$4 sm:$0xff]   ;;  %v10680_v9 = vld [vmem:[%s15120_s7 + $0x100] ss:$16 sps:$4 sm:$0xff]  }
 0x161   : > { %2309 = vmatprep.subr.bf16.mxu0 %v10598_v10  ;;  %2455 = vmatprep.subr.bf16.mxu1 %v10601_v6  ;;  %v10683_v1 = vld [vmem:[%s15120_s7 + $0x108] ss:$16 sps:$4 sm:$0xff]   ;;  %v10688_v10 = vld [vmem:[%s15120_s7 + $0x124] ss:$16 sps:$4 sm:$0xff]   ;;  %v10691_v6 = vld [vmem:[%s15120_s7 + $0x12c] ss:$16 sps:$4 sm:$0xff]  }
 0x164   : > { %2310 = vmatpush1.bf16.msra.mxu0 %v10596_v11  ;;  %2456 = vmatpush1.bf16.msra.mxu1 %v10599_v13  ;;  %v10686_v11 = vld [vmem:[%s15120_s7 + $0x120] ss:$16 sps:$4 sm:$0xff]   ;;  %v10689_v13 = vld [vmem:[%s15120_s7 + $0x128] ss:$16 sps:$4 sm:$0xff]  }
 0x165   : > { %2311 = vmatprep.subr.bf16.mxu0 %v10604_v14  ;;  %2457 = vmatprep.subr.bf16.mxu1 %v10607_v15  ;;  %v10694_v14 = vld [vmem:[%s15120_s7 + $0x144] ss:$16 sps:$4 sm:$0xff]   ;;  %v10697_v15 = vld [vmem:[%s15120_s7 + $0x14c] ss:$16 sps:$4 sm:$0xff]  }
 0x168   : > { %2312 = vmatpush1.bf16.msra.mxu0 %v10602_v16  ;;  %2458 = vmatpush1.bf16.msra.mxu1 %v10605_v17  ;;  %v10692_v16 = vld [vmem:[%s15120_s7 + $0x140] ss:$16 sps:$4 sm:$0xff]   ;;  %v10695_v17 = vld [vmem:[%s15120_s7 + $0x148] ss:$16 sps:$4 sm:$0xff]  }
 0x169   : > { %2313 = vmatprep.subr.bf16.mxu0 %v10610_v18  ;;  %2459 = vmatprep.subr.bf16.mxu1 %v10613_v19  ;;  %v10700_v18 = vld [vmem:[%s15120_s7 + $0x164] ss:$16 sps:$4 sm:$0xff]   ;;  %v10703_v19 = vld [vmem:[%s15120_s7 + $0x16c] ss:$16 sps:$4 sm:$0xff]  }
 0x16c   : > { %2314 = vmatpush1.bf16.msra.mxu0 %v10608_v20  ;;  %2460 = vmatpush1.bf16.msra.mxu1 %v10611_v52  ;;  %v10698_v20 = vld [vmem:[%s15120_s7 + $0x160] ss:$16 sps:$4 sm:$0xff]   ;;  %v10701_v52 = vld [vmem:[%s15120_s7 + $0x168] ss:$16 sps:$4 sm:$0xff]  }
 0x16d   : > { %2315 = vmatprep.subr.bf16.mxu0 %v10616_v7  ;;  %2461 = vmatprep.subr.bf16.mxu1 %v10619_v21  ;;  %v10706_v7 = vld [vmem:[%s15120_s7 + $0x184] ss:$16 sps:$4 sm:$0xff]   ;;  %v10709_v21 = vld [vmem:[%s15120_s7 + $0x18c] ss:$16 sps:$4 sm:$0xff]  }
 0x170   : > { %2316 = vmatpush1.bf16.msra.mxu0 %v10614_v22  ;;  %2462 = vmatpush1.bf16.msra.mxu1 %v10617_v23  ;;  %v10704_v22 = vld [vmem:[%s15120_s7 + $0x180] ss:$16 sps:$4 sm:$0xff]   ;;  %v10707_v23 = vld [vmem:[%s15120_s7 + $0x188] ss:$16 sps:$4 sm:$0xff]  }
 0x171   : > { %2317 = vmatprep.subr.bf16.mxu0 %v10622_v53  ;;  %2463 = vmatprep.subr.bf16.mxu1 %v10625_v24  ;;  %v10712_v53 = vld [vmem:[%s15120_s7 + $0x1a4] ss:$16 sps:$4 sm:$0xff]   ;;  %v10715_v24 = vld [vmem:[%s15120_s7 + $0x1ac] ss:$16 sps:$4 sm:$0xff]  }
 0x174   : > { %2318 = vmatpush1.bf16.msra.mxu0 %v10620_v25  ;;  %2464 = vmatpush1.bf16.msra.mxu1 %v10623_v26  ;;  %v10710_v25 = vld [vmem:[%s15120_s7 + $0x1a0] ss:$16 sps:$4 sm:$0xff]   ;;  %v10713_v26 = vld [vmem:[%s15120_s7 + $0x1a8] ss:$16 sps:$4 sm:$0xff]  }
 0x175   : > { %2319 = vmatprep.subr.bf16.mxu0 %v10628_v27  ;;  %2465 = vmatprep.subr.bf16.mxu1 %v10631_v28  ;;  %v10718_v27 = vld [vmem:[%s15120_s7 + $0x1c4] ss:$16 sps:$4 sm:$0xff]   ;;  %v10721_v28 = vld [vmem:[%s15120_s7 + $0x1cc] ss:$16 sps:$4 sm:$0xff]  }
 0x178   : > { %2320 = vmatpush1.bf16.msra.mxu0 %v10626_v29  ;;  %2466 = vmatpush1.bf16.msra.mxu1 %v10629_v31  ;;  %v10716_v29 = vld [vmem:[%s15120_s7 + $0x1c0] ss:$16 sps:$4 sm:$0xff]   ;;  %v10719_v31 = vld [vmem:[%s15120_s7 + $0x1c8] ss:$16 sps:$4 sm:$0xff]  }
 0x179   : > { %3432 = vmatprep.subr.bf16.mxu0 %v10634_v33  ;;  %3578 = vmatprep.subr.bf16.mxu1 %v10637_v34  ;;  %v10724_v33 = vld [vmem:[%s15120_s7 + $0x1e4] ss:$16 sps:$4 sm:$0xff]   ;;  %v10727_v34 = vld [vmem:[%s15120_s7 + $0x1ec] ss:$16 sps:$4 sm:$0xff]  }
 0x17b   : > { %2322 = vmatmul.mubr.bf16.vlgmr.msra.gmra.mrb[0].mxu0 %v12232_v32  ;;  %2468 = vmatmul.mubr.bf16.vlgmr.msra.gmra.mrb[0].mxu1 %v12232_v32  ;;  %v10646_v32 = vld [vmem:[%s15120_s7 + $0x44] ss:$16 sps:$4 sm:$0xff]  }
 0x17c   : > { %2331 = vmatprep.mubr.bf16.mxu0 %v12278_v49  ;;  %2477 = vmatprep.mubr.bf16.mxu1 %v12278_v49  ;;  %v10649_v49 = vld [vmem:[%s15120_s7 + $0x4c] ss:$16 sps:$4 sm:$0xff]  }
 0x17d   : > { %3433 = vmatpush1.bf16.msra.mxu0 %v10632_v35  ;;  %3579 = vmatpush1.bf16.msra.mxu1 %v10635_v36  ;;  %v10722_v35 = vld [vmem:[%s15120_s7 + $0x1e0] ss:$16 sps:$4 sm:$0xff]   ;;  %v10725_v36 = vld [vmem:[%s15120_s7 + $0x1e8] ss:$16 sps:$4 sm:$0xff]  }
 0x17e   : > { %3434 = vmatprep.subr.bf16.mxu0 %v10640_v38  ;;  %3580 = vmatprep.subr.bf16.mxu1 %v10643_v39  ;;  %v10730_v38 = vld [vmem:[%s15120_s7 + $0x204] ss:$16 sps:$4 sm:$0xff]   ;;  %v10733_v39 = vld [vmem:[%s15120_s7 + $0x20c] ss:$16 sps:$4 sm:$0xff]  }
 0x181   : > { %3435 = vmatpush1.bf16.msra.mxu0 %v10638_v40  ;;  %3581 = vmatpush1.bf16.msra.mxu1 %v10641_v41  ;;  %v2508_v40 = vld [vmem:[%s15119_s6] sm:$0xf] }
 0x182   : > { %3436 = vmatprep.subr.bf16.mxu0 %v10646_v32  ;;  %3582 = vmatprep.subr.bf16.mxu1 %v10649_v49  ;;  %v12648_v41 = vrot.slane %v2508_v40, %v12176_v50  ;;  %v12651_v32 = vrot.slane %v2508_v40, %v12186_v54  ;;  %v12654_v49 = vrot.slane %v2508_v40, %v12178_v51 }
 0x183   : > { %2332 = vmatmul.mubr.bf16.gmra.mrb[4].mxu0 %v12269_v43  ;;  %2478 = vmatmul.mubr.bf16.gmra.mrb[4].mxu1 %v12269_v43  ;;  %v10658_v43 = vld [vmem:[%s15120_s7 + $0x84] ss:$16 sps:$4 sm:$0xff]  }
 0x184   : > { %2341 = vmatprep.mubr.bf16.mxu0 %v12314_v37  ;;  %2487 = vmatprep.mubr.bf16.mxu1 %v12314_v37  ;;  %v10661_v37 = vld [vmem:[%s15120_s7 + $0x8c] ss:$16 sps:$4 sm:$0xff]  }
 0x185   : > { %3437 = vmatpush1.bf16.msra.mxu0 %v10644_v42  ;;  %3583 = vmatpush1.bf16.msra.mxu1 %v10647_v44  ;;  %v12657_v42 = vrot.slane %v2508_v40, %v12188_v56 }
 0x186   : > { %3438 = vmatprep.subr.bf16.mxu0 %v10652_v45  ;;  %3584 = vmatprep.subr.bf16.mxu1 %v10655_v47 }
 0x189   : > { %3439 = vmatpush1.bf16.msra.mxu0 %v10650_v46  ;;  %3585 = vmatpush1.bf16.msra.mxu1 %v10653_v12 }
 0x18a   : > { %3440 = vmatprep.subr.bf16.mxu0 %v10658_v43  ;;  %3586 = vmatprep.subr.bf16.mxu1 %v10661_v37 }
 0x18b   : > { %2342 = vmatmul.mubr.bf16.gmra.mrb[8].mxu0 %v12305_v30  ;;  %2488 = vmatmul.mubr.bf16.gmra.mrb[8].mxu1 %v12305_v30  ;;  %v10670_v30 = vld [vmem:[%s15120_s7 + $0xc4] ss:$16 sps:$4 sm:$0xff]  }
 0x18c   : > { %2351 = vmatprep.mubr.bf16.mxu0 %v12346_v4  ;;  %2497 = vmatprep.mubr.bf16.mxu1 %v12346_v4  ;;  %v10674_v4 = vld [vmem:[%s15120_s7 + $0xe0] ss:$16 sps:$4 sm:$0xff]  }
 0x18d   : > { %3441 = vmatpush1.bf16.msra.mxu0 %v10656_v48  ;;  %3587 = vmatpush1.bf16.msra.mxu1 %v10659_v55 }
 0x18e   : > { %3442 = vmatprep.subr.bf16.mxu0 %v10664_v57  ;;  %3588 = vmatprep.subr.bf16.mxu1 %v10667_v63 }
 0x191   : > { %3443 = vmatpush1.bf16.msra.mxu0 %v10662_v58  ;;  %3589 = vmatpush1.bf16.msra.mxu1 %v10665_v2 }
 0x192   : > { %3444 = vmatprep.subr.bf16.mxu0 %v10670_v30  ;;  %3590 = vmatprep.subr.bf16.mxu1 %v10673_v59 }
 0x193   : > { %2352 = vmatmul.mubr.bf16.gmra.mrb[12].mxu0 %v12336_v62  ;;  %2498 = vmatmul.mubr.bf16.gmra.mrb[12].mxu1 %v12336_v62  ;;  %v10685_v62 = vld [vmem:[%s15120_s7 + $0x10c] ss:$16 sps:$4 sm:$0xff]  }
 0x195   : > { %3445 = vmatpush1.bf16.msra.mxu0 %v10668_v60  ;;  %3591 = vmatpush1.bf16.msra.mxu1 %v10671_v61 }
 0x196   : > { %3446 = vmatprep.subr.bf16.mxu0 %v10676_v0  ;;  %3592 = vmatprep.subr.bf16.mxu1 %v10679_v3 }
 0x199   : > { %3447 = vmatpush1.bf16.msra.mxu0 %v10674_v4  ;;  %3593 = vmatpush1.bf16.msra.mxu1 %v10677_v5 }
 0x19a   : > { %3448 = vmatprep.subr.bf16.mxu0 %v10682_v8  ;;  %3594 = vmatprep.subr.bf16.mxu1 %v10685_v62 }
 0x19d   : > { %3449 = vmatpush1.bf16.msra.mxu0 %v10680_v9  ;;  %3595 = vmatpush1.bf16.msra.mxu1 %v10683_v1 }
 0x19e   : > { %3450 = vmatprep.subr.bf16.mxu0 %v10688_v10  ;;  %3596 = vmatprep.subr.bf16.mxu1 %v10691_v6 }
 0x1a1   : > { %3451 = vmatpush1.bf16.msra.mxu0 %v10686_v11  ;;  %3597 = vmatpush1.bf16.msra.mxu1 %v10689_v13 }
 0x1a2   : > { %3452 = vmatprep.subr.bf16.mxu0 %v10694_v14  ;;  %3598 = vmatprep.subr.bf16.mxu1 %v10697_v15 }
 0x1a5   : > { %3453 = vmatpush1.bf16.msra.mxu0 %v10692_v16  ;;  %3599 = vmatpush1.bf16.msra.mxu1 %v10695_v17 }
 0x1a6   : > { %3454 = vmatprep.subr.bf16.mxu0 %v10700_v18  ;;  %3600 = vmatprep.subr.bf16.mxu1 %v10703_v19 }
 0x1a9   : > { %3455 = vmatpush1.bf16.msra.mxu0 %v10698_v20  ;;  %3601 = vmatpush1.bf16.msra.mxu1 %v10701_v52 }
 0x1aa   : > { %3456 = vmatprep.subr.bf16.mxu0 %v10706_v7  ;;  %3602 = vmatprep.subr.bf16.mxu1 %v10709_v21 }
 0x1ad   : > { %3457 = vmatpush1.bf16.msra.mxu0 %v10704_v22  ;;  %3603 = vmatpush1.bf16.msra.mxu1 %v10707_v23  ;;  %v10728_v23 = vld [vmem:[%s15120_s7 + $0x200] ss:$16 sps:$4 sm:$0xff]  }
 0x1ae   : > { %3458 = vmatprep.subr.bf16.mxu0 %v10712_v53  ;;  %3604 = vmatprep.subr.bf16.mxu1 %v10715_v24  ;;  %v10731_v53 = vld [vmem:[%s15120_s7 + $0x208] ss:$16 sps:$4 sm:$0xff]  }
 0x1b1   : > { %3459 = vmatpush1.bf16.msra.mxu0 %v10710_v25  ;;  %3605 = vmatpush1.bf16.msra.mxu1 %v10713_v26 }
 0x1b2   : > { %3460 = vmatprep.subr.bf16.mxu0 %v10718_v27  ;;  %3606 = vmatprep.subr.bf16.mxu1 %v10721_v28  ;;  %v10736_v28 = vld [vmem:[%s15120_s7 + $0x224] ss:$16 sps:$4 sm:$0xff]  }
 0x1b5   : > { %3461 = vmatpush1.bf16.msra.mxu0 %v10716_v29  ;;  %3607 = vmatpush1.bf16.msra.mxu1 %v10719_v31  ;;  %v10739_v29 = vld [vmem:[%s15120_s7 + $0x22c] ss:$16 sps:$4 sm:$0xff]  }
 0x1b6   : > { %3462 = vmatprep.subr.bf16.mxu0 %v10724_v33  ;;  %3608 = vmatprep.subr.bf16.mxu1 %v10727_v34 }
 0x1b9   : > { %3463 = vmatpush1.bf16.msra.mxu0 %v10722_v35  ;;  %3609 = vmatpush1.bf16.msra.mxu1 %v10725_v36 }
 0x1ba   : > { %3505 = vmatprep.subr.bf16.mxu0 %v10730_v38  ;;  %3651 = vmatprep.subr.bf16.mxu1 %v10733_v39 }
 0x24e   : > { %v2323_v44 = vpop.f32.mrb[0].mxu0  ;;  %v2469_v45 = vpop.f32.mrb[0].mxu1 }
 0x24f   : > { %v2530_v47 = vadd.f32 %v12648_v41, %v2323_v44  ;;  %v2532_v46 = vadd.f32 %v12651_v32, %v2469_v45  ;;  %v2325_v12 = vpop.f32.mrb[1].mxu0  ;;  %v2471_v43 = vpop.f32.mrb[1].mxu1 }
 0x250   : > { %v2531_v37 = vadd.f32 %v12654_v49, %v2325_v12  ;;  %v2533_v48 = vadd.f32 %v12657_v42, %v2471_v43  ;;  %v2327_v55 = vpop.f32.mrb[2].mxu0  ;;  %v2473_v57 = vpop.f32.mrb[2].mxu1  ;;  %v10734_v43 = vld [vmem:[%s15120_s7 + $0x220] ss:$16 sps:$4 sm:$0xff]  }
 0x251   : > { %v2562_v63 = vmul.f32 0.01, %v2530_v47  ;;  %v2564_v58 = vmul.f32 0.01, %v2532_v46  ;;  %v2534_v2 = vadd.f32 %v12648_v41, %v2327_v55  ;;  %v2536_v30 = vadd.f32 %v12651_v32, %v2473_v57  ;;  %v2329_v59 = vpop.f32.mrb[3].mxu0  ;;  %v2475_v60 = vpop.f32.mrb[3].mxu1 }
 0x252   : > { %v2563_v61 = vmul.f32 0.01, %v2531_v37  ;;  %v2565_v0 = vmul.f32 0.01, %v2533_v48  ;;  %v2535_v3 = vadd.f32 %v12654_v49, %v2329_v59  ;;  %v2537_v4 = vadd.f32 %v12657_v42, %v2475_v60  ;;  %v10737_v57 = vld [vmem:[%s15120_s7 + $0x228] ss:$16 sps:$4 sm:$0xff]  }
 0x253   : > { %v2566_v5 = vmul.f32 0.01, %v2534_v2  ;;  %v2568_v8 = vmul.f32 0.01, %v2536_v30  ;;  %v2594_v1 = vmax.f32 %v2530_v47, %v2562_v63  ;;  %v2596_v10 = vmax.f32 %v2532_v46, %v2564_v58  ;;  %v10745_v59 = vld [vmem:[%s15120_s7 + $0x24c] ss:$16 sps:$4 sm:$0xff]  }
 0x254   : > { %v2567_v62 = vmul.f32 0.01, %v2535_v3  ;;  %v2569_v9 = vmul.f32 0.01, %v2537_v4  ;;  %v2595_v13 = vmax.f32 %v2531_v37, %v2563_v61  ;;  %v2597_v14 = vmax.f32 %v2533_v48, %v2565_v0 }
 0x255   : > { %v2598_v6 = vmax.f32 %v2534_v2, %v2566_v5  ;;  %v2600_v11 = vmax.f32 %v2536_v30, %v2568_v8  ;;  %v10742_v30 = vld [vmem:[%s15120_s7 + $0x244] ss:$16 sps:$4 sm:$0xff]  }
 0x256   : > { %v2599_v15 = vmax.f32 %v2535_v3, %v2567_v62  ;;  %v2601_v16 = vmax.f32 %v2537_v4, %v2569_v9  ;;  %v2333_v17 = vpop.f32.mrb[4].mxu0  ;;  %v2479_v18 = vpop.f32.mrb[4].mxu1 }
 0x257   : > { %v2626_v19 = vpack.c.bf16 %v2598_v6, %v2594_v1  ;;  %v12667_v20 = vpack.c.bf16 %v2600_v11, %v2596_v10  ;;  %v2538_v52 = vadd.f32 %v12648_v41, %v2333_v17  ;;  %v2540_v7 = vadd.f32 %v12651_v32, %v2479_v18  ;;  %v2335_v21 = vpop.f32.mrb[5].mxu0  ;;  %v2481_v22 = vpop.f32.mrb[5].mxu1  ;;  %v10740_v1 = vld [vmem:[%s15120_s7 + $0x240] ss:$16 sps:$4 sm:$0xff]   ;;  %v10743_v10 = vld [vmem:[%s15120_s7 + $0x248] ss:$16 sps:$4 sm:$0xff]  }
 0x258   : > { %v2539_v24 = vadd.f32 %v12654_v49, %v2335_v21  ;;  %v2337_v25 = vpop.f32.mrb[6].mxu0  ;;  %v2483_v26 = vpop.f32.mrb[6].mxu1  ;;  %v2627_v27 = vpack.c.bf16 %v2599_v15, %v2595_v13  ;;  %v12684_v31 = vpack.c.bf16 %v2601_v16, %v2597_v14  ;;  %v12689_v44 = vadd.f32 %v12657_v42, %v2481_v22  ;;  %v10748_v18 = vld [vmem:[%s15120_s7 + $0x264] ss:$16 sps:$4 sm:$0xff]  }
 0x259   : > { %v2570_v33 = vmul.f32 0.01, %v2538_v52  ;;  %v2572_v34 = vmul.f32 0.01, %v2540_v7  ;;  %v2542_v35 = vadd.f32 %v12648_v41, %v2337_v25  ;;  %v2544_v36 = vadd.f32 %v12651_v32, %v2483_v26  ;;  %v2339_v38 = vpop.f32.mrb[7].mxu0  ;;  %v2485_v39 = vpop.f32.mrb[7].mxu1 }
 0x25a   : > { %v2571_v40 = vmul.f32 0.01, %v2539_v24  ;;  %v2543_v45 = vadd.f32 %v12654_v49, %v2339_v38  ;;  %v12693_v47 = vadd.f32 %v12657_v42, %v2485_v39  ;;  %3464 = vmatprep.mubr.bf16.mxu0 %v2627_v27  ;;  %3610 = vmatprep.mubr.bf16.mxu1 %v2627_v27  ;;  %v2573_v61 = vmul.f32 0.01, %v12689_v44 }
 0x25b   : > { %v2574_v46 = vmul.f32 0.01, %v2542_v35  ;;  %v2576_v12 = vmul.f32 0.01, %v2544_v36  ;;  %3465 = vmatmul.mubr.bf16.vlgmr.msra.gmra.mrb[48].mxu0 %v2626_v19  ;;  %3611 = vmatmul.mubr.bf16.vlgmr.msra.gmra.mrb[48].mxu1 %v2626_v19  ;;  %v2602_v37 = vmax.f32 %v2538_v52, %v2570_v33  ;;  %v2604_v63 = vmax.f32 %v2540_v7, %v2572_v34  ;;  %v10751_v19 = vld [vmem:[%s15120_s7 + $0x26c] ss:$16 sps:$4 sm:$0xff]  }
 0x25c   : > { %v2575_v48 = vmul.f32 0.01, %v2543_v45  ;;  %v12699_v55 = vmul.f32 0.01, %v12693_v47  ;;  %3506 = vmatpush1.bf16.msra.mxu0 %v10728_v23  ;;  %3652 = vmatpush1.bf16.msra.mxu1 %v10731_v53  ;;  %v2603_v60 = vmax.f32 %v2539_v24, %v2571_v40  ;;  %v10746_v34 = vld [vmem:[%s15120_s7 + $0x260] ss:$16 sps:$4 sm:$0xff]  }
 0x25d   : > { %v2606_v58 = vmax.f32 %v2542_v35, %v2574_v46  ;;  %v2608_v2 = vmax.f32 %v2544_v36, %v2576_v12  ;;  %3507 = vmatprep.subr.bf16.mxu0 %v10736_v28  ;;  %3653 = vmatprep.subr.bf16.mxu1 %v10739_v29  ;;  %v2605_v28 = vmax.f32 %v12689_v44, %v2573_v61  ;;  %v10749_v40 = vld [vmem:[%s15120_s7 + $0x268] ss:$16 sps:$4 sm:$0xff]   ;;  %v10757_v46 = vld [vmem:[%s15120_s7 + $0x28c] ss:$16 sps:$4 sm:$0xff]  }
 0x25e   : > { %v2607_v0 = vmax.f32 %v2543_v45, %v2575_v48  ;;  %v2343_v3 = vpop.f32.mrb[8].mxu0  ;;  %v2489_v4 = vpop.f32.mrb[8].mxu1  ;;  %v2609_v13 = vmax.f32 %v12693_v47, %v12699_v55  ;;  %v10754_v47 = vld [vmem:[%s15120_s7 + $0x284] ss:$16 sps:$4 sm:$0xff]   ;;  %v10755_v61 = vld [vmem:[%s15120_s7 + $0x288] ss:$16 sps:$4 sm:$0xff]  }
 0x25f   : > { %v12712_v5 = vadd.f32 %v12648_v41, %v2343_v3  ;;  %v12715_v8 = vadd.f32 %v12651_v32, %v2489_v4  ;;  %v2345_v62 = vpop.f32.mrb[9].mxu0  ;;  %v2491_v9 = vpop.f32.mrb[9].mxu1  ;;  %v2630_v6 = vpack.c.bf16 %v2606_v58, %v2602_v37  ;;  %v12723_v11 = vpack.c.bf16 %v2608_v2, %v2604_v63 }
 0x260   : > { %v12728_v14 = vadd.f32 %v12654_v49, %v2345_v62  ;;  %3508 = vmatpush1.bf16.msra.mxu0 %v10734_v43  ;;  %3654 = vmatpush1.bf16.msra.mxu1 %v10737_v57  ;;  %v2347_v15 = vpop.f32.mrb[10].mxu0  ;;  %v2493_v16 = vpop.f32.mrb[10].mxu1  ;;  %v2631_v17 = vpack.c.bf16 %v2607_v0, %v2603_v60  ;;  %v12742_v25 = vadd.f32 %v12657_v42, %v2491_v9  ;;  %v10752_v60 = vld [vmem:[%s15120_s7 + $0x280] ss:$16 sps:$4 sm:$0xff]  }
 0x261   : > { %v2578_v52 = vmul.f32 0.01, %v12712_v5  ;;  %v2580_v7 = vmul.f32 0.01, %v12715_v8  ;;  %v2550_v21 = vadd.f32 %v12648_v41, %v2347_v15  ;;  %v2552_v22 = vadd.f32 %v12651_v32, %v2493_v16  ;;  %v2349_v23 = vpop.f32.mrb[11].mxu0  ;;  %v2495_v53 = vpop.f32.mrb[11].mxu1  ;;  %3509 = vmatprep.subr.bf16.mxu0 %v10742_v30  ;;  %3655 = vmatprep.subr.bf16.mxu1 %v10745_v59 }
 0x262   : > { %v2579_v24 = vmul.f32 0.01, %v12728_v14  ;;  %v2551_v26 = vadd.f32 %v12654_v49, %v2349_v23  ;;  %v12746_v27 = vadd.f32 %v12657_v42, %v2495_v53  ;;  %3474 = vmatprep.mubr.bf16.mxu0 %v2631_v17  ;;  %3620 = vmatprep.mubr.bf16.mxu1 %v2631_v17  ;;  %v12766_v12 = vpack.c.bf16 %v2609_v13, %v2605_v28  ;;  %v10769_v28 = vld [vmem:[%s15120_s7 + $0x2cc] ss:$16 sps:$4 sm:$0xff]  }
 0x263   : > { %v2582_v29 = vmul.f32 0.01, %v2550_v21  ;;  %v2584_v33 = vmul.f32 0.01, %v2552_v22  ;;  %3475 = vmatmul.mubr.bf16.gmra.mrb[52].mxu0 %v2630_v6  ;;  %3621 = vmatmul.mubr.bf16.gmra.mrb[52].mxu1 %v2630_v6  ;;  %v2610_v35 = vmax.f32 %v12712_v5, %v2578_v52  ;;  %v2612_v36 = vmax.f32 %v12715_v8, %v2580_v7 }
 0x264   : > { %v2583_v38 = vmul.f32 0.01, %v2551_v26  ;;  %v12755_v39 = vmul.f32 0.01, %v12746_v27  ;;  %3510 = vmatpush1.bf16.msra.mxu0 %v10740_v1  ;;  %3656 = vmatpush1.bf16.msra.mxu1 %v10743_v10  ;;  %v2611_v43 = vmax.f32 %v12728_v14, %v2579_v24  ;;  %v2581_v37 = vmul.f32 0.01, %v12742_v25 }
 0x265   : > { %v2614_v44 = vmax.f32 %v2550_v21, %v2582_v29  ;;  %v2616_v45 = vmax.f32 %v2552_v22, %v2584_v33  ;;  %3511 = vmatprep.subr.bf16.mxu0 %v10748_v18  ;;  %3657 = vmatprep.subr.bf16.mxu1 %v10751_v19  ;;  %v10760_v1 = vld [vmem:[%s15120_s7 + $0x2a4] ss:$16 sps:$4 sm:$0xff]   ;;  %v10763_v10 = vld [vmem:[%s15120_s7 + $0x2ac] ss:$16 sps:$4 sm:$0xff]  }
 0x266   : > { %v2615_v48 = vmax.f32 %v2551_v26, %v2583_v38  ;;  %v2617_v55 = vmax.f32 %v12746_v27, %v12755_v39  ;;  %v2353_v57 = vpop.f32.mrb[12].mxu0  ;;  %v2499_v63 = vpop.f32.mrb[12].mxu1  ;;  %v2613_v21 = vmax.f32 %v12742_v25, %v2581_v37  ;;  %v10766_v27 = vld [vmem:[%s15120_s7 + $0x2c4] ss:$16 sps:$4 sm:$0xff]   ;;  %v10770_v37 = vld [vmem:[%s15120_s7 + $0x2e0] ss:$16 sps:$4 sm:$0xff]  }
 0x267   : > { %v2554_v58 = vadd.f32 %v12648_v41, %v2353_v57  ;;  %v2556_v2 = vadd.f32 %v12651_v32, %v2499_v63  ;;  %v2355_v30 = vpop.f32.mrb[13].mxu0  ;;  %v2501_v59 = vpop.f32.mrb[13].mxu1  ;;  %v2634_v0 = vpack.c.bf16 %v2614_v44, %v2610_v35  ;;  %v12780_v3 = vpack.c.bf16 %v2616_v45, %v2612_v36  ;;  %v10764_v44 = vld [vmem:[%s15120_s7 + $0x2c0] ss:$16 sps:$4 sm:$0xff]   ;;  %v10767_v45 = vld [vmem:[%s15120_s7 + $0x2c8] ss:$16 sps:$4 sm:$0xff]  }
 0x268   : > { %v2555_v4 = vadd.f32 %v12654_v49, %v2355_v30  ;;  %v2557_v5 = vadd.f32 %v12657_v42, %v2501_v59  ;;  %3512 = vmatpush1.bf16.msra.mxu0 %v10746_v34  ;;  %3658 = vmatpush1.bf16.msra.mxu1 %v10749_v40  ;;  %v2357_v8 = vpop.f32.mrb[14].mxu0  ;;  %v2503_v62 = vpop.f32.mrb[14].mxu1  ;;  %v2635_v9 = vpack.c.bf16 %v2615_v48, %v2611_v43  ;;  %v10775_v43 = vld [vmem:[%s15120_s7 + $0x2ec] ss:$16 sps:$4 sm:$0xff]   ;;  %v10773_v48 = vld [vmem:[%s15120_s7 + $0x2e8] ss:$16 sps:$4 sm:$0xff]  }
 0x269   : > { %v2586_v6 = vmul.f32 0.01, %v2554_v58  ;;  %v2588_v13 = vmul.f32 0.01, %v2556_v2  ;;  %v2558_v14 = vadd.f32 %v12648_v41, %v2357_v8  ;;  %v2560_v15 = vadd.f32 %v12651_v32, %v2503_v62  ;;  %v2359_v16 = vpop.f32.mrb[15].mxu0  ;;  %v2505_v17 = vpop.f32.mrb[15].mxu1  ;;  %3513 = vmatprep.subr.bf16.mxu0 %v10754_v47  ;;  %3659 = vmatprep.subr.bf16.mxu1 %v10757_v46 }
 0x26a   : > { %v2587_v18 = vmul.f32 0.01, %v2555_v4  ;;  %v2589_v19 = vmul.f32 0.01, %v2557_v5  ;;  %v2559_v52 = vadd.f32 %v12654_v49, %v2359_v16  ;;  %v2561_v7 = vadd.f32 %v12657_v42, %v2505_v17  ;;  %3484 = vmatprep.mubr.bf16.mxu0 %v2635_v9  ;;  %3630 = vmatprep.mubr.bf16.mxu1 %v2635_v9  ;;  %v10758_v41 = vld [vmem:[%s15120_s7 + $0x2a0] ss:$16 sps:$4 sm:$0xff]  }
 0x26b   : > { %v2590_v22 = vmul.f32 0.01, %v2558_v14  ;;  %v2592_v23 = vmul.f32 0.01, %v2560_v15  ;;  %3485 = vmatmul.mubr.bf16.gmra.mrb[56].mxu0 %v2634_v0  ;;  %3631 = vmatmul.mubr.bf16.gmra.mrb[56].mxu1 %v2634_v0  ;;  %v2618_v32 = vmax.f32 %v2554_v58, %v2586_v6  ;;  %v2620_v53 = vmax.f32 %v2556_v2, %v2588_v13  ;;  %v10761_v49 = vld [vmem:[%s15120_s7 + $0x2a8] ss:$16 sps:$4 sm:$0xff]  }
 0x26c   : > { %v2591_v24 = vmul.f32 0.01, %v2559_v52  ;;  %v2593_v26 = vmul.f32 0.01, %v2561_v7  ;;  %3514 = vmatpush1.bf16.msra.mxu0 %v10752_v60  ;;  %3660 = vmatpush1.bf16.msra.mxu1 %v10755_v61  ;;  %v12807_v29 = vpack.c.bf16 %v2617_v55, %v2613_v21  ;;  %v2619_v33 = vmax.f32 %v2555_v4, %v2587_v18  ;;  %v10772_v46 = vld [vmem:[%s15120_s7 + $0x2e4] ss:$16 sps:$4 sm:$0xff]  }
 0x26d   : > { %v2622_v42 = vmax.f32 %v2558_v14, %v2590_v22  ;;  %v2624_v25 = vmax.f32 %v2560_v15, %v2592_v23  ;;  %3515 = vmatprep.subr.bf16.mxu0 %v10760_v1  ;;  %3661 = vmatprep.subr.bf16.mxu1 %v10763_v10  ;;  %v2621_v34 = vmax.f32 %v2557_v5, %v2589_v19  ;;  %v10778_v55 = vld [vmem:[%s15120_s7 + $0x304] ss:$16 sps:$4 sm:$0xff]   ;;  %v10781_v57 = vld [vmem:[%s15120_s7 + $0x30c] ss:$16 sps:$4 sm:$0xff]   ;;  %v10776_v63 = vld [vmem:[%s15120_s7 + $0x300] ss:$16 sps:$4 sm:$0xff]  }
 0x26e   : > { %v2623_v35 = vmax.f32 %v2559_v52, %v2591_v24  ;;  %v2625_v36 = vmax.f32 %v2561_v7, %v2593_v26  ;;  %v10784_v58 = vld [vmem:[%s15120_s7 + $0x324] ss:$16 sps:$4 sm:$0xff]   ;;  %v10787_v2 = vld [vmem:[%s15120_s7 + $0x32c] ss:$16 sps:$4 sm:$0xff]   ;;  %v10782_v30 = vld [vmem:[%s15120_s7 + $0x320] ss:$16 sps:$4 sm:$0xff]  }
 0x26f   : > { %v2638_v38 = vpack.c.bf16 %v2622_v42, %v2618_v32  ;;  %v12809_v39 = vpack.c.bf16 %v2624_v25, %v2620_v53  ;;  %v10785_v59 = vld [vmem:[%s15120_s7 + $0x328] ss:$16 sps:$4 sm:$0xff]   ;;  %v10790_v60 = vld [vmem:[%s15120_s7 + $0x344] ss:$16 sps:$4 sm:$0xff]   ;;  %v10793_v61 = vld [vmem:[%s15120_s7 + $0x34c] ss:$16 sps:$4 sm:$0xff]  }
 0x270   : > { %3516 = vmatpush1.bf16.msra.mxu0 %v10758_v41  ;;  %3662 = vmatpush1.bf16.msra.mxu1 %v10761_v49  ;;  %v2639_v40 = vpack.c.bf16 %v2623_v35, %v2619_v33  ;;  %v12817_v47 = vpack.c.bf16 %v2625_v36, %v2621_v34  ;;  %v10788_v0 = vld [vmem:[%s15120_s7 + $0x340] ss:$16 sps:$4 sm:$0xff]   ;;  %v10791_v4 = vld [vmem:[%s15120_s7 + $0x348] ss:$16 sps:$4 sm:$0xff]   ;;  %v10796_v5 = vld [vmem:[%s15120_s7 + $0x364] ss:$16 sps:$4 sm:$0xff]  }
 0x271   : > { %3517 = vmatprep.subr.bf16.mxu0 %v10766_v27  ;;  %3663 = vmatprep.subr.bf16.mxu1 %v10769_v28  ;;  %v10799_v8 = vld [vmem:[%s15120_s7 + $0x36c] ss:$16 sps:$4 sm:$0xff]   ;;  %v10794_v62 = vld [vmem:[%s15120_s7 + $0x360] ss:$16 sps:$4 sm:$0xff]   ;;  %v10797_v9 = vld [vmem:[%s15120_s7 + $0x368] ss:$16 sps:$4 sm:$0xff]  }
 0x272   : > { %3494 = vmatprep.mubr.bf16.mxu0 %v2639_v40  ;;  %3640 = vmatprep.mubr.bf16.mxu1 %v2639_v40  ;;  %v10802_v1 = vld [vmem:[%s15120_s7 + $0x384] ss:$16 sps:$4 sm:$0xff]   ;;  %v10805_v10 = vld [vmem:[%s15120_s7 + $0x38c] ss:$16 sps:$4 sm:$0xff]   ;;  %v10800_v6 = vld [vmem:[%s15120_s7 + $0x380] ss:$16 sps:$4 sm:$0xff]  }
 0x273   : > { %3495 = vmatmul.mubr.bf16.gmra.mrb[60].mxu0 %v2638_v38  ;;  %3641 = vmatmul.mubr.bf16.gmra.mrb[60].mxu1 %v2638_v38  ;;  %v10803_v13 = vld [vmem:[%s15120_s7 + $0x388] ss:$16 sps:$4 sm:$0xff]   ;;  %v10808_v14 = vld [vmem:[%s15120_s7 + $0x3a4] ss:$16 sps:$4 sm:$0xff]   ;;  %v10811_v15 = vld [vmem:[%s15120_s7 + $0x3ac] ss:$16 sps:$4 sm:$0xff]  }
 0x274   : > { %3518 = vmatpush1.bf16.msra.mxu0 %v10764_v44  ;;  %3664 = vmatpush1.bf16.msra.mxu1 %v10767_v45  ;;  %v10806_v16 = vld [vmem:[%s15120_s7 + $0x3a0] ss:$16 sps:$4 sm:$0xff]   ;;  %v10809_v17 = vld [vmem:[%s15120_s7 + $0x3a8] ss:$16 sps:$4 sm:$0xff]   ;;  %v10814_v18 = vld [vmem:[%s15120_s7 + $0x3c4] ss:$16 sps:$4 sm:$0xff]  }
 0x275   : > { %3537 = vmatprep.mubr.bf16.mxu0 %v12684_v31  ;;  %3683 = vmatprep.mubr.bf16.mxu1 %v12684_v31  ;;  %v10779_v31 = vld [vmem:[%s15120_s7 + $0x308] ss:$16 sps:$4 sm:$0xff]   ;;  %v10817_v19 = vld [vmem:[%s15120_s7 + $0x3cc] ss:$16 sps:$4 sm:$0xff]   ;;  %v10812_v52 = vld [vmem:[%s15120_s7 + $0x3c0] ss:$16 sps:$4 sm:$0xff]  }
 0x276   : > { %3519 = vmatprep.subr.bf16.mxu0 %v10772_v46  ;;  %3665 = vmatprep.subr.bf16.mxu1 %v10775_v43  ;;  %v10815_v7 = vld [vmem:[%s15120_s7 + $0x3c8] ss:$16 sps:$4 sm:$0xff]   ;;  %v10820_v21 = vld [vmem:[%s15120_s7 + $0x3e4] ss:$16 sps:$4 sm:$0xff]   ;;  %v10823_v22 = vld [vmem:[%s15120_s7 + $0x3ec] ss:$16 sps:$4 sm:$0xff]  }
 0x277   : > { %v10818_v23 = vld [vmem:[%s15120_s7 + $0x3e0] ss:$16 sps:$4 sm:$0xff]   ;;  %v10821_v41 = vld [vmem:[%s15120_s7 + $0x3e8] ss:$16 sps:$4 sm:$0xff]   ;;  %v10826_v32 = vld [vmem:[%s15122_s9 + $0x4] ss:$16 sps:$4 sm:$0xff]  }
 0x278   : > { %3520 = vmatpush1.bf16.msra.mxu0 %v10770_v37  ;;  %3666 = vmatpush1.bf16.msra.mxu1 %v10773_v48  ;;  %v10829_v53 = vld [vmem:[%s15122_s9 + $0xc] ss:$16 sps:$4 sm:$0xff]   ;;  %v10824_v24 = vld [vmem:[%s15122_s9] ss:$16 sps:$4 sm:$0xff]   ;;  %v10827_v26 = vld [vmem:[%s15122_s9 + $0x8] ss:$16 sps:$4 sm:$0xff]  }
 0x279   : > { %3521 = vmatprep.subr.bf16.mxu0 %v10778_v55  ;;  %3667 = vmatprep.subr.bf16.mxu1 %v10781_v57  ;;  %v10832_v49 = vld [vmem:[%s15122_s9 + $0x24] ss:$16 sps:$4 sm:$0xff]   ;;  %v10835_v42 = vld [vmem:[%s15122_s9 + $0x2c] ss:$16 sps:$4 sm:$0xff]   ;;  %v10830_v25 = vld [vmem:[%s15122_s9 + $0x20] ss:$16 sps:$4 sm:$0xff]  }
 0x27a   : > { %v10833_v27 = vld [vmem:[%s15122_s9 + $0x28] ss:$16 sps:$4 sm:$0xff]   ;;  %v10836_v28 = vld [vmem:[%s15122_s9 + $0x40] ss:$16 sps:$4 sm:$0xff]   ;;  %v10844_v34 = vld [vmem:[%s15122_s9 + $0x64] ss:$16 sps:$4 sm:$0xff]  }
 0x27b   : > { %v10839_v33 = vld [vmem:[%s15122_s9 + $0x48] ss:$16 sps:$4 sm:$0xff]   ;;  %v10847_v35 = vld [vmem:[%s15122_s9 + $0x6c] ss:$16 sps:$4 sm:$0xff]   ;;  %v10842_v36 = vld [vmem:[%s15122_s9 + $0x60] ss:$16 sps:$4 sm:$0xff]  }
 0x27c   : > { %3522 = vmatpush1.bf16.msra.mxu0 %v10776_v63  ;;  %3668 = vmatpush1.bf16.msra.mxu1 %v10779_v31  ;;  %v10845_v38 = vld [vmem:[%s15122_s9 + $0x68] ss:$16 sps:$4 sm:$0xff]   ;;  %v10848_v40 = vld [vmem:[%s15122_s9 + $0x80] ss:$16 sps:$4 sm:$0xff]   ;;  %v10856_v45 = vld [vmem:[%s15122_s9 + $0xa4] ss:$16 sps:$4 sm:$0xff]  }
 0x27d   : > { %3523 = vmatprep.subr.bf16.mxu0 %v10784_v58  ;;  %3669 = vmatprep.subr.bf16.mxu1 %v10787_v2  ;;  %v10851_v44 = vld [vmem:[%s15122_s9 + $0x88] ss:$16 sps:$4 sm:$0xff]   ;;  %v10859_v46 = vld [vmem:[%s15122_s9 + $0xac] ss:$16 sps:$4 sm:$0xff]   ;;  %v10854_v43 = vld [vmem:[%s15122_s9 + $0xa0] ss:$16 sps:$4 sm:$0xff]  }
 0x27e   : > { %v10857_v37 = vld [vmem:[%s15122_s9 + $0xa8] ss:$16 sps:$4 sm:$0xff]   ;;  %v10860_v48 = vld [vmem:[%s15122_s9 + $0xc0] ss:$16 sps:$4 sm:$0xff]   ;;  %v10868_v57 = vld [vmem:[%s15122_s9 + $0xe4] ss:$16 sps:$4 sm:$0xff]  }
 0x27f   : > { %v10863_v55 = vld [vmem:[%s15122_s9 + $0xc8] ss:$16 sps:$4 sm:$0xff]   ;;  %v10871_v63 = vld [vmem:[%s15122_s9 + $0xec] ss:$16 sps:$4 sm:$0xff]   ;;  %v10866_v31 = vld [vmem:[%s15122_s9 + $0xe0] ss:$16 sps:$4 sm:$0xff]  }
 0x280   : > { %3524 = vmatpush1.bf16.msra.mxu0 %v10782_v30  ;;  %3670 = vmatpush1.bf16.msra.mxu1 %v10785_v59  ;;  %v10869_v58 = vld [vmem:[%s15122_s9 + $0xe8] ss:$16 sps:$4 sm:$0xff]   ;;  %v10874_v2 = vld [vmem:[%s15122_s9 + $0x104] ss:$16 sps:$4 sm:$0xff]   ;;  %v10872_v30 = vld [vmem:[%s15122_s9 + $0x100] ss:$16 sps:$4 sm:$0xff]  }
 0x281   : > { %3525 = vmatprep.subr.bf16.mxu0 %v10790_v60  ;;  %3671 = vmatprep.subr.bf16.mxu1 %v10793_v61  ;;  %v10875_v59 = vld [vmem:[%s15122_s9 + $0x108] ss:$16 sps:$4 sm:$0xff]   ;;  %v10880_v60 = vld [vmem:[%s15122_s9 + $0x124] ss:$16 sps:$4 sm:$0xff]   ;;  %v10883_v61 = vld [vmem:[%s15122_s9 + $0x12c] ss:$16 sps:$4 sm:$0xff]  }
 0x284   : > { %3526 = vmatpush1.bf16.msra.mxu0 %v10788_v0  ;;  %3672 = vmatpush1.bf16.msra.mxu1 %v10791_v4  ;;  %v10878_v0 = vld [vmem:[%s15122_s9 + $0x120] ss:$16 sps:$4 sm:$0xff]   ;;  %v10881_v4 = vld [vmem:[%s15122_s9 + $0x128] ss:$16 sps:$4 sm:$0xff]  }
 0x285   : > { %3527 = vmatprep.subr.bf16.mxu0 %v10796_v5  ;;  %3673 = vmatprep.subr.bf16.mxu1 %v10799_v8  ;;  %v10886_v5 = vld [vmem:[%s15122_s9 + $0x144] ss:$16 sps:$4 sm:$0xff]   ;;  %v10889_v8 = vld [vmem:[%s15122_s9 + $0x14c] ss:$16 sps:$4 sm:$0xff]  }
 0x288   : > { %3528 = vmatpush1.bf16.msra.mxu0 %v10794_v62  ;;  %3674 = vmatpush1.bf16.msra.mxu1 %v10797_v9  ;;  %v10884_v62 = vld [vmem:[%s15122_s9 + $0x140] ss:$16 sps:$4 sm:$0xff]   ;;  %v10887_v9 = vld [vmem:[%s15122_s9 + $0x148] ss:$16 sps:$4 sm:$0xff]  }
 0x289   : > { %3529 = vmatprep.subr.bf16.mxu0 %v10802_v1  ;;  %3675 = vmatprep.subr.bf16.mxu1 %v10805_v10  ;;  %v10892_v1 = vld [vmem:[%s15122_s9 + $0x164] ss:$16 sps:$4 sm:$0xff]   ;;  %v10895_v10 = vld [vmem:[%s15122_s9 + $0x16c] ss:$16 sps:$4 sm:$0xff]  }
 0x28c   : > { %3530 = vmatpush1.bf16.msra.mxu0 %v10800_v6  ;;  %3676 = vmatpush1.bf16.msra.mxu1 %v10803_v13  ;;  %v10890_v6 = vld [vmem:[%s15122_s9 + $0x160] ss:$16 sps:$4 sm:$0xff]   ;;  %v10893_v13 = vld [vmem:[%s15122_s9 + $0x168] ss:$16 sps:$4 sm:$0xff]  }
 0x28d   : > { %3531 = vmatprep.subr.bf16.mxu0 %v10808_v14  ;;  %3677 = vmatprep.subr.bf16.mxu1 %v10811_v15  ;;  %v10898_v14 = vld [vmem:[%s15122_s9 + $0x184] ss:$16 sps:$4 sm:$0xff]   ;;  %v10901_v15 = vld [vmem:[%s15122_s9 + $0x18c] ss:$16 sps:$4 sm:$0xff]  }
 0x290   : > { %3532 = vmatpush1.bf16.msra.mxu0 %v10806_v16  ;;  %3678 = vmatpush1.bf16.msra.mxu1 %v10809_v17  ;;  %v10896_v16 = vld [vmem:[%s15122_s9 + $0x180] ss:$16 sps:$4 sm:$0xff]   ;;  %v10899_v17 = vld [vmem:[%s15122_s9 + $0x188] ss:$16 sps:$4 sm:$0xff]  }
 0x291   : > { %3533 = vmatprep.subr.bf16.mxu0 %v10814_v18  ;;  %3679 = vmatprep.subr.bf16.mxu1 %v10817_v19  ;;  %v10904_v18 = vld [vmem:[%s15122_s9 + $0x1a4] ss:$16 sps:$4 sm:$0xff]   ;;  %v10907_v19 = vld [vmem:[%s15122_s9 + $0x1ac] ss:$16 sps:$4 sm:$0xff]  }
 0x294   : > { %3534 = vmatpush1.bf16.msra.mxu0 %v10812_v52  ;;  %3680 = vmatpush1.bf16.msra.mxu1 %v10815_v7  ;;  %v10902_v52 = vld [vmem:[%s15122_s9 + $0x1a0] ss:$16 sps:$4 sm:$0xff]   ;;  %v10905_v7 = vld [vmem:[%s15122_s9 + $0x1a8] ss:$16 sps:$4 sm:$0xff]  }
 0x295   : > { %3535 = vmatprep.subr.bf16.mxu0 %v10820_v21  ;;  %3681 = vmatprep.subr.bf16.mxu1 %v10823_v22  ;;  %v10910_v21 = vld [vmem:[%s15122_s9 + $0x1c4] ss:$16 sps:$4 sm:$0xff]   ;;  %v10913_v22 = vld [vmem:[%s15122_s9 + $0x1cc] ss:$16 sps:$4 sm:$0xff]  }
 0x298   : > { %3536 = vmatpush1.bf16.msra.mxu0 %v10818_v23  ;;  %3682 = vmatpush1.bf16.msra.mxu1 %v10821_v41  ;;  %v10908_v23 = vld [vmem:[%s15122_s9 + $0x1c0] ss:$16 sps:$4 sm:$0xff]   ;;  %v10911_v41 = vld [vmem:[%s15122_s9 + $0x1c8] ss:$16 sps:$4 sm:$0xff]  }
 0x299   : > { %4594 = vmatprep.subr.bf16.mxu0 %v10826_v32  ;;  %4740 = vmatprep.subr.bf16.mxu1 %v10829_v53  ;;  %v10916_v32 = vld [vmem:[%s15122_s9 + $0x1e4] ss:$16 sps:$4 sm:$0xff]   ;;  %v10919_v53 = vld [vmem:[%s15122_s9 + $0x1ec] ss:$16 sps:$4 sm:$0xff]  }
 0x29b   : > { %3538 = vmatmul.mubr.bf16.vlgmr.msra.gmra.mrb[48].mxu0 %v12667_v20  ;;  %3684 = vmatmul.mubr.bf16.vlgmr.msra.gmra.mrb[48].mxu1 %v12667_v20  ;;  %v10838_v20 = vld [vmem:[%s15122_s9 + $0x44] ss:$16 sps:$4 sm:$0xff]  }
 0x29c   : > { %3547 = vmatprep.mubr.bf16.mxu0 %v12766_v12  ;;  %3693 = vmatprep.mubr.bf16.mxu1 %v12766_v12  ;;  %v10841_v12 = vld [vmem:[%s15122_s9 + $0x4c] ss:$16 sps:$4 sm:$0xff]  }
 0x29d   : > { %4595 = vmatpush1.bf16.msra.mxu0 %v10824_v24  ;;  %4741 = vmatpush1.bf16.msra.mxu1 %v10827_v26  ;;  %v10914_v24 = vld [vmem:[%s15122_s9 + $0x1e0] ss:$16 sps:$4 sm:$0xff]   ;;  %v10917_v26 = vld [vmem:[%s15122_s9 + $0x1e8] ss:$16 sps:$4 sm:$0xff]  }
 0x29e   : > { %4596 = vmatprep.subr.bf16.mxu0 %v10832_v49  ;;  %4742 = vmatprep.subr.bf16.mxu1 %v10835_v42  ;;  %v10922_v49 = vld [vmem:[%s15122_s9 + $0x204] ss:$16 sps:$4 sm:$0xff]   ;;  %v10925_v42 = vld [vmem:[%s15122_s9 + $0x20c] ss:$16 sps:$4 sm:$0xff]  }
 0x2a1   : > { %4597 = vmatpush1.bf16.msra.mxu0 %v10830_v25  ;;  %4743 = vmatpush1.bf16.msra.mxu1 %v10833_v27  ;;  %v2770_v25 = vld [vmem:[%s15121_s8] sm:$0xf] }
 0x2a2   : > { %4598 = vmatprep.subr.bf16.mxu0 %v10838_v20  ;;  %4744 = vmatprep.subr.bf16.mxu1 %v10841_v12  ;;  %v13145_v27 = vrot.slane %v2770_v25, %v12176_v50  ;;  %v13148_v20 = vrot.slane %v2770_v25, %v12186_v54  ;;  %v13151_v12 = vrot.slane %v2770_v25, %v12178_v51 }
 0x2a3   : > { %3548 = vmatmul.mubr.bf16.gmra.mrb[52].mxu0 %v12723_v11  ;;  %3694 = vmatmul.mubr.bf16.gmra.mrb[52].mxu1 %v12723_v11  ;;  %v10850_v11 = vld [vmem:[%s15122_s9 + $0x84] ss:$16 sps:$4 sm:$0xff]  }
 0x2a4   : > { %3557 = vmatprep.mubr.bf16.mxu0 %v12807_v29  ;;  %3703 = vmatprep.mubr.bf16.mxu1 %v12807_v29  ;;  %v10853_v29 = vld [vmem:[%s15122_s9 + $0x8c] ss:$16 sps:$4 sm:$0xff]  }
 0x2a5   : > { %4599 = vmatpush1.bf16.msra.mxu0 %v10836_v28  ;;  %4745 = vmatpush1.bf16.msra.mxu1 %v10839_v33  ;;  %v13154_v28 = vrot.slane %v2770_v25, %v12188_v56 }
 0x2a6   : > { %4600 = vmatprep.subr.bf16.mxu0 %v10844_v34  ;;  %4746 = vmatprep.subr.bf16.mxu1 %v10847_v35 }
 0x2a9   : > { %4601 = vmatpush1.bf16.msra.mxu0 %v10842_v36  ;;  %4747 = vmatpush1.bf16.msra.mxu1 %v10845_v38 }
 0x2aa   : > { %4602 = vmatprep.subr.bf16.mxu0 %v10850_v11  ;;  %4748 = vmatprep.subr.bf16.mxu1 %v10853_v29 }
 0x2ab   : > { %3558 = vmatmul.mubr.bf16.gmra.mrb[56].mxu0 %v12780_v3  ;;  %3704 = vmatmul.mubr.bf16.gmra.mrb[56].mxu1 %v12780_v3  ;;  %v10862_v3 = vld [vmem:[%s15122_s9 + $0xc4] ss:$16 sps:$4 sm:$0xff]  }
 0x2ac   : > { %3567 = vmatprep.mubr.bf16.mxu0 %v12817_v47  ;;  %3713 = vmatprep.mubr.bf16.mxu1 %v12817_v47  ;;  %v10865_v47 = vld [vmem:[%s15122_s9 + $0xcc] ss:$16 sps:$4 sm:$0xff]  }
 0x2ad   : > { %4603 = vmatpush1.bf16.msra.mxu0 %v10848_v40  ;;  %4749 = vmatpush1.bf16.msra.mxu1 %v10851_v44 }
 0x2ae   : > { %4604 = vmatprep.subr.bf16.mxu0 %v10856_v45  ;;  %4750 = vmatprep.subr.bf16.mxu1 %v10859_v46 }
 0x2b1   : > { %4605 = vmatpush1.bf16.msra.mxu0 %v10854_v43  ;;  %4751 = vmatpush1.bf16.msra.mxu1 %v10857_v37 }
 0x2b2   : > { %4606 = vmatprep.subr.bf16.mxu0 %v10862_v3  ;;  %4752 = vmatprep.subr.bf16.mxu1 %v10865_v47 }
 0x2b3   : > { %3568 = vmatmul.mubr.bf16.gmra.mrb[60].mxu0 %v12809_v39  ;;  %3714 = vmatmul.mubr.bf16.gmra.mrb[60].mxu1 %v12809_v39  ;;  %v10877_v39 = vld [vmem:[%s15122_s9 + $0x10c] ss:$16 sps:$4 sm:$0xff]  }
 0x2b5   : > { %4607 = vmatpush1.bf16.msra.mxu0 %v10860_v48  ;;  %4753 = vmatpush1.bf16.msra.mxu1 %v10863_v55 }
 0x2b6   : > { %4608 = vmatprep.subr.bf16.mxu0 %v10868_v57  ;;  %4754 = vmatprep.subr.bf16.mxu1 %v10871_v63 }
 0x2b9   : > { %4609 = vmatpush1.bf16.msra.mxu0 %v10866_v31  ;;  %4755 = vmatpush1.bf16.msra.mxu1 %v10869_v58 }
 0x2ba   : > { %4610 = vmatprep.subr.bf16.mxu0 %v10874_v2  ;;  %4756 = vmatprep.subr.bf16.mxu1 %v10877_v39 }
 0x2bd   : > { %4611 = vmatpush1.bf16.msra.mxu0 %v10872_v30  ;;  %4757 = vmatpush1.bf16.msra.mxu1 %v10875_v59 }
 0x2be   : > { %4612 = vmatprep.subr.bf16.mxu0 %v10880_v60  ;;  %4758 = vmatprep.subr.bf16.mxu1 %v10883_v61 }
 0x2c1   : > { %4613 = vmatpush1.bf16.msra.mxu0 %v10878_v0  ;;  %4759 = vmatpush1.bf16.msra.mxu1 %v10881_v4 }
 0x2c2   : > { %4614 = vmatprep.subr.bf16.mxu0 %v10886_v5  ;;  %4760 = vmatprep.subr.bf16.mxu1 %v10889_v8 }
 0x2c5   : > { %4615 = vmatpush1.bf16.msra.mxu0 %v10884_v62  ;;  %4761 = vmatpush1.bf16.msra.mxu1 %v10887_v9 }
 0x2c6   : > { %4616 = vmatprep.subr.bf16.mxu0 %v10892_v1  ;;  %4762 = vmatprep.subr.bf16.mxu1 %v10895_v10 }
 0x2c9   : > { %4617 = vmatpush1.bf16.msra.mxu0 %v10890_v6  ;;  %4763 = vmatpush1.bf16.msra.mxu1 %v10893_v13 }
 0x2ca   : > { %4618 = vmatprep.subr.bf16.mxu0 %v10898_v14  ;;  %4764 = vmatprep.subr.bf16.mxu1 %v10901_v15 }
 0x2cd   : > { %4619 = vmatpush1.bf16.msra.mxu0 %v10896_v16  ;;  %4765 = vmatpush1.bf16.msra.mxu1 %v10899_v17  ;;  %v10920_v17 = vld [vmem:[%s15122_s9 + $0x200] ss:$16 sps:$4 sm:$0xff]  }
 0x2ce   : > { %4620 = vmatprep.subr.bf16.mxu0 %v10904_v18  ;;  %4766 = vmatprep.subr.bf16.mxu1 %v10907_v19  ;;  %v10923_v18 = vld [vmem:[%s15122_s9 + $0x208] ss:$16 sps:$4 sm:$0xff]  }
 0x2d1   : > { %4621 = vmatpush1.bf16.msra.mxu0 %v10902_v52  ;;  %4767 = vmatpush1.bf16.msra.mxu1 %v10905_v7 }
 0x2d2   : > { %4622 = vmatprep.subr.bf16.mxu0 %v10910_v21  ;;  %4768 = vmatprep.subr.bf16.mxu1 %v10913_v22  ;;  %v10928_v22 = vld [vmem:[%s15122_s9 + $0x224] ss:$16 sps:$4 sm:$0xff]  }
 0x2d5   : > { %4623 = vmatpush1.bf16.msra.mxu0 %v10908_v23  ;;  %4769 = vmatpush1.bf16.msra.mxu1 %v10911_v41  ;;  %v10931_v23 = vld [vmem:[%s15122_s9 + $0x22c] ss:$16 sps:$4 sm:$0xff]  }
 0x2d6   : > { %4624 = vmatprep.subr.bf16.mxu0 %v10916_v32  ;;  %4770 = vmatprep.subr.bf16.mxu1 %v10919_v53 }
 0x2d9   : > { %4625 = vmatpush1.bf16.msra.mxu0 %v10914_v24  ;;  %4771 = vmatpush1.bf16.msra.mxu1 %v10917_v26 }
 0x2da   : > { %4667 = vmatprep.subr.bf16.mxu0 %v10922_v49  ;;  %4813 = vmatprep.subr.bf16.mxu1 %v10925_v42 }
 0x36e   : > { %v3539_v33 = vpop.f32.mrb[48].mxu0  ;;  %v3685_v34 = vpop.f32.mrb[48].mxu1 }
 0x36f   : > { %v10020_v35 = vadd.f32 %v3539_v33, %v13145_v27  ;;  %v10036_v36 = vadd.f32 %v3685_v34, %v13148_v20  ;;  %v3541_v38 = vpop.f32.mrb[49].mxu0  ;;  %v3687_v11 = vpop.f32.mrb[49].mxu1 }
 0x370   : > { %v10021_v29 = vadd.f32 %v3541_v38, %v13151_v12  ;;  %v10037_v40 = vadd.f32 %v3687_v11, %v13154_v28  ;;  %v3543_v44 = vpop.f32.mrb[50].mxu0  ;;  %v3689_v45 = vpop.f32.mrb[50].mxu1  ;;  %v10926_v11 = vld [vmem:[%s15122_s9 + $0x220] ss:$16 sps:$4 sm:$0xff]  }
 0x371   : > { %v3724_v46 = vmul.f32 0.01, %v10020_v35  ;;  %v3726_v43 = vmul.f32 0.01, %v10036_v36  ;;  %v10022_v37 = vadd.f32 %v3543_v44, %v13145_v27  ;;  %v10038_v3 = vadd.f32 %v3689_v45, %v13148_v20  ;;  %v3545_v47 = vpop.f32.mrb[51].mxu0  ;;  %v3691_v48 = vpop.f32.mrb[51].mxu1 }
 0x372   : > { %v3725_v55 = vmul.f32 0.01, %v10021_v29  ;;  %v3727_v57 = vmul.f32 0.01, %v10037_v40  ;;  %v10023_v63 = vadd.f32 %v3545_v47, %v13151_v12  ;;  %v10039_v31 = vadd.f32 %v3691_v48, %v13154_v28  ;;  %v10929_v45 = vld [vmem:[%s15122_s9 + $0x228] ss:$16 sps:$4 sm:$0xff]  }
 0x373   : > { %v3728_v58 = vmul.f32 0.01, %v10022_v37  ;;  %v3730_v2 = vmul.f32 0.01, %v10038_v3  ;;  %v3756_v59 = vmax.f32 %v10020_v35, %v3724_v46  ;;  %v3758_v60 = vmax.f32 %v10036_v36, %v3726_v43  ;;  %v10937_v47 = vld [vmem:[%s15122_s9 + $0x24c] ss:$16 sps:$4 sm:$0xff]  }
 0x374   : > { %v3729_v39 = vmul.f32 0.01, %v10023_v63  ;;  %v3731_v30 = vmul.f32 0.01, %v10039_v31  ;;  %v3757_v4 = vmax.f32 %v10021_v29, %v3725_v55  ;;  %v3759_v5 = vmax.f32 %v10037_v40, %v3727_v57 }
 0x375   : > { %v3760_v61 = vmax.f32 %v10022_v37, %v3728_v58  ;;  %v3762_v0 = vmax.f32 %v10038_v3, %v3730_v2  ;;  %v10934_v3 = vld [vmem:[%s15122_s9 + $0x244] ss:$16 sps:$4 sm:$0xff]  }
 0x376   : > { %v3761_v8 = vmax.f32 %v10023_v63, %v3729_v39  ;;  %v3763_v62 = vmax.f32 %v10039_v31, %v3731_v30  ;;  %v3549_v9 = vpop.f32.mrb[52].mxu0  ;;  %v3695_v1 = vpop.f32.mrb[52].mxu1 }
 0x377   : > { %v3788_v10 = vpack.c.bf16 %v3760_v61, %v3756_v59  ;;  %v13164_v6 = vpack.c.bf16 %v3762_v0, %v3758_v60  ;;  %v10024_v13 = vadd.f32 %v3549_v9, %v13145_v27  ;;  %v10040_v14 = vadd.f32 %v3695_v1, %v13148_v20  ;;  %v3551_v15 = vpop.f32.mrb[53].mxu0  ;;  %v3697_v16 = vpop.f32.mrb[53].mxu1  ;;  %v10932_v59 = vld [vmem:[%s15122_s9 + $0x240] ss:$16 sps:$4 sm:$0xff]   ;;  %v10935_v60 = vld [vmem:[%s15122_s9 + $0x248] ss:$16 sps:$4 sm:$0xff]  }
 0x378   : > { %v10025_v19 = vadd.f32 %v3551_v15, %v13151_v12  ;;  %v3553_v52 = vpop.f32.mrb[54].mxu0  ;;  %v3699_v7 = vpop.f32.mrb[54].mxu1  ;;  %v3789_v21 = vpack.c.bf16 %v3761_v8, %v3757_v4  ;;  %v13181_v41 = vpack.c.bf16 %v3763_v62, %v3759_v5  ;;  %v13186_v33 = vadd.f32 %v3697_v16, %v13154_v28  ;;  %v10940_v1 = vld [vmem:[%s15122_s9 + $0x264] ss:$16 sps:$4 sm:$0xff]  }
 0x379   : > { %v3732_v32 = vmul.f32 0.01, %v10024_v13  ;;  %v3734_v53 = vmul.f32 0.01, %v10040_v14  ;;  %v10026_v24 = vadd.f32 %v3553_v52, %v13145_v27  ;;  %v10042_v26 = vadd.f32 %v3699_v7, %v13148_v20  ;;  %v3555_v49 = vpop.f32.mrb[55].mxu0  ;;  %v3701_v42 = vpop.f32.mrb[55].mxu1 }
 0x37a   : > { %v3733_v25 = vmul.f32 0.01, %v10025_v19  ;;  %v10027_v34 = vadd.f32 %v3555_v49, %v13151_v12  ;;  %v13190_v35 = vadd.f32 %v3701_v42, %v13154_v28  ;;  %4626 = vmatprep.mubr.bf16.mxu0 %v3789_v21  ;;  %4772 = vmatprep.mubr.bf16.mxu1 %v3789_v21  ;;  %v3735_v55 = vmul.f32 0.01, %v13186_v33 }
 0x37b   : > { %v3736_v36 = vmul.f32 0.01, %v10026_v24  ;;  %v3738_v38 = vmul.f32 0.01, %v10042_v26  ;;  %4627 = vmatmul.mubr.bf16.vlgmr.msra.gmra.mrb[64].mxu0 %v3788_v10  ;;  %4773 = vmatmul.mubr.bf16.vlgmr.msra.gmra.mrb[64].mxu1 %v3788_v10  ;;  %v3764_v29 = vmax.f32 %v10024_v13, %v3732_v32  ;;  %v3766_v46 = vmax.f32 %v10040_v14, %v3734_v53  ;;  %v10943_v10 = vld [vmem:[%s15122_s9 + $0x26c] ss:$16 sps:$4 sm:$0xff]  }
 0x37c   : > { %v3737_v40 = vmul.f32 0.01, %v10027_v34  ;;  %v13196_v44 = vmul.f32 0.01, %v13190_v35  ;;  %4668 = vmatpush1.bf16.msra.mxu0 %v10920_v17  ;;  %4814 = vmatpush1.bf16.msra.mxu1 %v10923_v18  ;;  %v3765_v48 = vmax.f32 %v10025_v19, %v3733_v25  ;;  %v10938_v53 = vld [vmem:[%s15122_s9 + $0x260] ss:$16 sps:$4 sm:$0xff]  }
 0x37d   : > { %v3768_v43 = vmax.f32 %v10026_v24, %v3736_v36  ;;  %v3770_v37 = vmax.f32 %v10042_v26, %v3738_v38  ;;  %4669 = vmatprep.subr.bf16.mxu0 %v10928_v22  ;;  %4815 = vmatprep.subr.bf16.mxu1 %v10931_v23  ;;  %v3767_v22 = vmax.f32 %v13186_v33, %v3735_v55  ;;  %v10941_v25 = vld [vmem:[%s15122_s9 + $0x268] ss:$16 sps:$4 sm:$0xff]   ;;  %v10949_v36 = vld [vmem:[%s15122_s9 + $0x28c] ss:$16 sps:$4 sm:$0xff]  }
 0x37e   : > { %v3769_v57 = vmax.f32 %v10027_v34, %v3737_v40  ;;  %v3559_v63 = vpop.f32.mrb[56].mxu0  ;;  %v3705_v31 = vpop.f32.mrb[56].mxu1  ;;  %v3771_v4 = vmax.f32 %v13190_v35, %v13196_v44  ;;  %v10946_v35 = vld [vmem:[%s15122_s9 + $0x284] ss:$16 sps:$4 sm:$0xff]   ;;  %v10947_v55 = vld [vmem:[%s15122_s9 + $0x288] ss:$16 sps:$4 sm:$0xff]  }
 0x37f   : > { %v13209_v58 = vadd.f32 %v3559_v63, %v13145_v27  ;;  %v13212_v2 = vadd.f32 %v3705_v31, %v13148_v20  ;;  %v3561_v39 = vpop.f32.mrb[57].mxu0  ;;  %v3707_v30 = vpop.f32.mrb[57].mxu1  ;;  %v3792_v61 = vpack.c.bf16 %v3768_v43, %v3764_v29  ;;  %v13220_v0 = vpack.c.bf16 %v3770_v37, %v3766_v46 }
 0x380   : > { %v13225_v5 = vadd.f32 %v3561_v39, %v13151_v12  ;;  %4670 = vmatpush1.bf16.msra.mxu0 %v10926_v11  ;;  %4816 = vmatpush1.bf16.msra.mxu1 %v10929_v45  ;;  %v3563_v8 = vpop.f32.mrb[58].mxu0  ;;  %v3709_v62 = vpop.f32.mrb[58].mxu1  ;;  %v3793_v9 = vpack.c.bf16 %v3769_v57, %v3765_v48  ;;  %v13239_v52 = vadd.f32 %v3707_v30, %v13154_v28  ;;  %v10944_v48 = vld [vmem:[%s15122_s9 + $0x280] ss:$16 sps:$4 sm:$0xff]  }
 0x381   : > { %v3740_v13 = vmul.f32 0.01, %v13209_v58  ;;  %v3742_v14 = vmul.f32 0.01, %v13212_v2  ;;  %v10030_v15 = vadd.f32 %v3563_v8, %v13145_v27  ;;  %v10046_v16 = vadd.f32 %v3709_v62, %v13148_v20  ;;  %v3565_v17 = vpop.f32.mrb[59].mxu0  ;;  %v3711_v18 = vpop.f32.mrb[59].mxu1  ;;  %4671 = vmatprep.subr.bf16.mxu0 %v10934_v3  ;;  %4817 = vmatprep.subr.bf16.mxu1 %v10937_v47 }
 0x382   : > { %v3741_v19 = vmul.f32 0.01, %v13225_v5  ;;  %v10031_v7 = vadd.f32 %v3565_v17, %v13151_v12  ;;  %v13243_v21 = vadd.f32 %v3711_v18, %v13154_v28  ;;  %4636 = vmatprep.mubr.bf16.mxu0 %v3793_v9  ;;  %4782 = vmatprep.mubr.bf16.mxu1 %v3793_v9  ;;  %v13263_v38 = vpack.c.bf16 %v3771_v4, %v3767_v22  ;;  %v10961_v22 = vld [vmem:[%s15122_s9 + $0x2cc] ss:$16 sps:$4 sm:$0xff]  }
 0x383   : > { %v3744_v23 = vmul.f32 0.01, %v10030_v15  ;;  %v3746_v32 = vmul.f32 0.01, %v10046_v16  ;;  %4637 = vmatmul.mubr.bf16.gmra.mrb[68].mxu0 %v3792_v61  ;;  %4783 = vmatmul.mubr.bf16.gmra.mrb[68].mxu1 %v3792_v61  ;;  %v3772_v24 = vmax.f32 %v13209_v58, %v3740_v13  ;;  %v3774_v26 = vmax.f32 %v13212_v2, %v3742_v14 }
 0x384   : > { %v3745_v49 = vmul.f32 0.01, %v10031_v7  ;;  %v13252_v42 = vmul.f32 0.01, %v13243_v21  ;;  %4672 = vmatpush1.bf16.msra.mxu0 %v10932_v59  ;;  %4818 = vmatpush1.bf16.msra.mxu1 %v10935_v60  ;;  %v3773_v11 = vmax.f32 %v13225_v5, %v3741_v19  ;;  %v3743_v29 = vmul.f32 0.01, %v13239_v52 }
 0x385   : > { %v3776_v33 = vmax.f32 %v10030_v15, %v3744_v23  ;;  %v3778_v34 = vmax.f32 %v10046_v16, %v3746_v32  ;;  %4673 = vmatprep.subr.bf16.mxu0 %v10940_v1  ;;  %4819 = vmatprep.subr.bf16.mxu1 %v10943_v10  ;;  %v10952_v59 = vld [vmem:[%s15122_s9 + $0x2a4] ss:$16 sps:$4 sm:$0xff]   ;;  %v10955_v60 = vld [vmem:[%s15122_s9 + $0x2ac] ss:$16 sps:$4 sm:$0xff]  }
 0x386   : > { %v3777_v40 = vmax.f32 %v10031_v7, %v3745_v49  ;;  %v3779_v44 = vmax.f32 %v13243_v21, %v13252_v42  ;;  %v3569_v45 = vpop.f32.mrb[60].mxu0  ;;  %v3715_v46 = vpop.f32.mrb[60].mxu1  ;;  %v3775_v15 = vmax.f32 %v13239_v52, %v3743_v29  ;;  %v10958_v21 = vld [vmem:[%s15122_s9 + $0x2c4] ss:$16 sps:$4 sm:$0xff]   ;;  %v10962_v29 = vld [vmem:[%s15122_s9 + $0x2e0] ss:$16 sps:$4 sm:$0xff]  }
 0x387   : > { %v10032_v43 = vadd.f32 %v3569_v45, %v13145_v27  ;;  %v10048_v37 = vadd.f32 %v3715_v46, %v13148_v20  ;;  %v3571_v3 = vpop.f32.mrb[61].mxu0  ;;  %v3717_v47 = vpop.f32.mrb[61].mxu1  ;;  %v3796_v57 = vpack.c.bf16 %v3776_v33, %v3772_v24  ;;  %v13277_v63 = vpack.c.bf16 %v3778_v34, %v3774_v26  ;;  %v10956_v33 = vld [vmem:[%s15122_s9 + $0x2c0] ss:$16 sps:$4 sm:$0xff]   ;;  %v10959_v34 = vld [vmem:[%s15122_s9 + $0x2c8] ss:$16 sps:$4 sm:$0xff]  }
 0x388   : > { %v10033_v31 = vadd.f32 %v3571_v3, %v13151_v12  ;;  %v10049_v58 = vadd.f32 %v3717_v47, %v13154_v28  ;;  %4674 = vmatpush1.bf16.msra.mxu0 %v10938_v53  ;;  %4820 = vmatpush1.bf16.msra.mxu1 %v10941_v25  ;;  %v3573_v2 = vpop.f32.mrb[62].mxu0  ;;  %v3719_v39 = vpop.f32.mrb[62].mxu1  ;;  %v3797_v30 = vpack.c.bf16 %v3777_v40, %v3773_v11  ;;  %v10967_v11 = vld [vmem:[%s15122_s9 + $0x2ec] ss:$16 sps:$4 sm:$0xff]   ;;  %v10965_v40 = vld [vmem:[%s15122_s9 + $0x2e8] ss:$16 sps:$4 sm:$0xff]  }
 0x389   : > { %v3748_v61 = vmul.f32 0.01, %v10032_v43  ;;  %v3750_v4 = vmul.f32 0.01, %v10048_v37  ;;  %v10034_v5 = vadd.f32 %v3573_v2, %v13145_v27  ;;  %v10050_v8 = vadd.f32 %v3719_v39, %v13148_v20  ;;  %v3575_v62 = vpop.f32.mrb[63].mxu0  ;;  %v3721_v9 = vpop.f32.mrb[63].mxu1  ;;  %4675 = vmatprep.subr.bf16.mxu0 %v10946_v35  ;;  %4821 = vmatprep.subr.bf16.mxu1 %v10949_v36 }
 0x38a   : > { %v3749_v1 = vmul.f32 0.01, %v10033_v31  ;;  %v3751_v10 = vmul.f32 0.01, %v10049_v58  ;;  %v10035_v13 = vadd.f32 %v3575_v62, %v13151_v12  ;;  %v10051_v14 = vadd.f32 %v3721_v9, %v13154_v28  ;;  %4646 = vmatprep.mubr.bf16.mxu0 %v3797_v30  ;;  %4792 = vmatprep.mubr.bf16.mxu1 %v3797_v30  ;;  %v10950_v27 = vld [vmem:[%s15122_s9 + $0x2a0] ss:$16 sps:$4 sm:$0xff]  }
 0x38b   : > { %v3752_v16 = vmul.f32 0.01, %v10034_v5  ;;  %v3754_v17 = vmul.f32 0.01, %v10050_v8  ;;  %4647 = vmatmul.mubr.bf16.gmra.mrb[72].mxu0 %v3796_v57  ;;  %4793 = vmatmul.mubr.bf16.gmra.mrb[72].mxu1 %v3796_v57  ;;  %v3780_v20 = vmax.f32 %v10032_v43, %v3748_v61  ;;  %v3782_v18 = vmax.f32 %v10048_v37, %v3750_v4  ;;  %v10953_v12 = vld [vmem:[%s15122_s9 + $0x2a8] ss:$16 sps:$4 sm:$0xff]  }
 0x38c   : > { %v3753_v19 = vmul.f32 0.01, %v10035_v13  ;;  %v3755_v7 = vmul.f32 0.01, %v10051_v14  ;;  %4676 = vmatpush1.bf16.msra.mxu0 %v10944_v48  ;;  %4822 = vmatpush1.bf16.msra.mxu1 %v10947_v55  ;;  %v13304_v23 = vpack.c.bf16 %v3779_v44, %v3775_v15  ;;  %v3781_v32 = vmax.f32 %v10033_v31, %v3749_v1  ;;  %v10964_v36 = vld [vmem:[%s15122_s9 + $0x2e4] ss:$16 sps:$4 sm:$0xff]  }
 0x38d   : > { %v3784_v28 = vmax.f32 %v10034_v5, %v3752_v16  ;;  %v3786_v52 = vmax.f32 %v10050_v8, %v3754_v17  ;;  %4677 = vmatprep.subr.bf16.mxu0 %v10952_v59  ;;  %4823 = vmatprep.subr.bf16.mxu1 %v10955_v60  ;;  %v3783_v53 = vmax.f32 %v10049_v58, %v3751_v10  ;;  %v10970_v44 = vld [vmem:[%s15122_s9 + $0x304] ss:$16 sps:$4 sm:$0xff]   ;;  %v10973_v45 = vld [vmem:[%s15122_s9 + $0x30c] ss:$16 sps:$4 sm:$0xff]   ;;  %v10968_v46 = vld [vmem:[%s15122_s9 + $0x300] ss:$16 sps:$4 sm:$0xff]  }
 0x38e   : > { %v3785_v24 = vmax.f32 %v10035_v13, %v3753_v19  ;;  %v3787_v26 = vmax.f32 %v10051_v14, %v3755_v7  ;;  %v10976_v43 = vld [vmem:[%s15122_s9 + $0x324] ss:$16 sps:$4 sm:$0xff]   ;;  %v10979_v37 = vld [vmem:[%s15122_s9 + $0x32c] ss:$16 sps:$4 sm:$0xff]   ;;  %v10974_v3 = vld [vmem:[%s15122_s9 + $0x320] ss:$16 sps:$4 sm:$0xff]  }
 0x38f   : > { %v3800_v49 = vpack.c.bf16 %v3784_v28, %v3780_v20  ;;  %v13306_v42 = vpack.c.bf16 %v3786_v52, %v3782_v18  ;;  %v10977_v47 = vld [vmem:[%s15122_s9 + $0x328] ss:$16 sps:$4 sm:$0xff]   ;;  %v10982_v48 = vld [vmem:[%s15122_s9 + $0x344] ss:$16 sps:$4 sm:$0xff]   ;;  %v10985_v55 = vld [vmem:[%s15122_s9 + $0x34c] ss:$16 sps:$4 sm:$0xff]  }
 0x390   : > { %4678 = vmatpush1.bf16.msra.mxu0 %v10950_v27  ;;  %4824 = vmatpush1.bf16.msra.mxu1 %v10953_v12  ;;  %v3801_v25 = vpack.c.bf16 %v3785_v24, %v3781_v32  ;;  %v13314_v35 = vpack.c.bf16 %v3787_v26, %v3783_v53  ;;  %v10980_v57 = vld [vmem:[%s15122_s9 + $0x340] ss:$16 sps:$4 sm:$0xff]   ;;  %v10983_v31 = vld [vmem:[%s15122_s9 + $0x348] ss:$16 sps:$4 sm:$0xff]   ;;  %v10988_v58 = vld [vmem:[%s15122_s9 + $0x364] ss:$16 sps:$4 sm:$0xff]  }
 0x391   : > { %4679 = vmatprep.subr.bf16.mxu0 %v10958_v21  ;;  %4825 = vmatprep.subr.bf16.mxu1 %v10961_v22  ;;  %v10991_v2 = vld [vmem:[%s15122_s9 + $0x36c] ss:$16 sps:$4 sm:$0xff]   ;;  %v10986_v39 = vld [vmem:[%s15122_s9 + $0x360] ss:$16 sps:$4 sm:$0xff]   ;;  %v10989_v30 = vld [vmem:[%s15122_s9 + $0x368] ss:$16 sps:$4 sm:$0xff]  }
 0x392   : > { %4656 = vmatprep.mubr.bf16.mxu0 %v3801_v25  ;;  %4802 = vmatprep.mubr.bf16.mxu1 %v3801_v25  ;;  %v10994_v59 = vld [vmem:[%s15122_s9 + $0x384] ss:$16 sps:$4 sm:$0xff]   ;;  %v10997_v60 = vld [vmem:[%s15122_s9 + $0x38c] ss:$16 sps:$4 sm:$0xff]   ;;  %v10992_v61 = vld [vmem:[%s15122_s9 + $0x380] ss:$16 sps:$4 sm:$0xff]  }
 0x393   : > { %4657 = vmatmul.mubr.bf16.gmra.mrb[76].mxu0 %v3800_v49  ;;  %4803 = vmatmul.mubr.bf16.gmra.mrb[76].mxu1 %v3800_v49  ;;  %v10995_v4 = vld [vmem:[%s15122_s9 + $0x388] ss:$16 sps:$4 sm:$0xff]   ;;  %v11000_v5 = vld [vmem:[%s15122_s9 + $0x3a4] ss:$16 sps:$4 sm:$0xff]   ;;  %v11003_v8 = vld [vmem:[%s15122_s9 + $0x3ac] ss:$16 sps:$4 sm:$0xff]  }
 0x394   : > { %4680 = vmatpush1.bf16.msra.mxu0 %v10956_v33  ;;  %4826 = vmatpush1.bf16.msra.mxu1 %v10959_v34  ;;  %v10998_v62 = vld [vmem:[%s15122_s9 + $0x3a0] ss:$16 sps:$4 sm:$0xff]   ;;  %v11001_v9 = vld [vmem:[%s15122_s9 + $0x3a8] ss:$16 sps:$4 sm:$0xff]   ;;  %v11006_v1 = vld [vmem:[%s15122_s9 + $0x3c4] ss:$16 sps:$4 sm:$0xff]  }
 0x395   : > { %4699 = vmatprep.mubr.bf16.mxu0 %v13181_v41  ;;  %4845 = vmatprep.mubr.bf16.mxu1 %v13181_v41  ;;  %v10971_v41 = vld [vmem:[%s15122_s9 + $0x308] ss:$16 sps:$4 sm:$0xff]   ;;  %v11009_v10 = vld [vmem:[%s15122_s9 + $0x3cc] ss:$16 sps:$4 sm:$0xff]   ;;  %v11004_v13 = vld [vmem:[%s15122_s9 + $0x3c0] ss:$16 sps:$4 sm:$0xff]  }
 0x396   : > { %4681 = vmatprep.subr.bf16.mxu0 %v10964_v36  ;;  %4827 = vmatprep.subr.bf16.mxu1 %v10967_v11  ;;  %v11007_v14 = vld [vmem:[%s15122_s9 + $0x3c8] ss:$16 sps:$4 sm:$0xff]   ;;  %v11012_v15 = vld [vmem:[%s15122_s9 + $0x3e4] ss:$16 sps:$4 sm:$0xff]   ;;  %v11015_v16 = vld [vmem:[%s15122_s9 + $0x3ec] ss:$16 sps:$4 sm:$0xff]  }
 0x397   : > { %v11010_v17 = vld [vmem:[%s15122_s9 + $0x3e0] ss:$16 sps:$4 sm:$0xff]   ;;  %v11013_v27 = vld [vmem:[%s15122_s9 + $0x3e8] ss:$16 sps:$4 sm:$0xff]   ;;  %v11018_v20 = vld [vmem:[%s15124_s11 + $0x4] ss:$16 sps:$4 sm:$0xff]  }
 0x398   : > { %4682 = vmatpush1.bf16.msra.mxu0 %v10962_v29  ;;  %4828 = vmatpush1.bf16.msra.mxu1 %v10965_v40  ;;  %v11021_v18 = vld [vmem:[%s15124_s11 + $0xc] ss:$16 sps:$4 sm:$0xff]   ;;  %v11016_v19 = vld [vmem:[%s15124_s11] ss:$16 sps:$4 sm:$0xff]   ;;  %v11019_v7 = vld [vmem:[%s15124_s11 + $0x8] ss:$16 sps:$4 sm:$0xff]  }
 0x399   : > { %4683 = vmatprep.subr.bf16.mxu0 %v10970_v44  ;;  %4829 = vmatprep.subr.bf16.mxu1 %v10973_v45  ;;  %v11024_v12 = vld [vmem:[%s15124_s11 + $0x24] ss:$16 sps:$4 sm:$0xff]   ;;  %v11027_v28 = vld [vmem:[%s15124_s11 + $0x2c] ss:$16 sps:$4 sm:$0xff]   ;;  %v11022_v52 = vld [vmem:[%s15124_s11 + $0x20] ss:$16 sps:$4 sm:$0xff]  }
 0x39a   : > { %v11025_v21 = vld [vmem:[%s15124_s11 + $0x28] ss:$16 sps:$4 sm:$0xff]   ;;  %v11028_v22 = vld [vmem:[%s15124_s11 + $0x40] ss:$16 sps:$4 sm:$0xff]   ;;  %v11036_v53 = vld [vmem:[%s15124_s11 + $0x64] ss:$16 sps:$4 sm:$0xff]  }
 0x39b   : > { %v11031_v32 = vld [vmem:[%s15124_s11 + $0x48] ss:$16 sps:$4 sm:$0xff]   ;;  %v11039_v24 = vld [vmem:[%s15124_s11 + $0x6c] ss:$16 sps:$4 sm:$0xff]   ;;  %v11034_v26 = vld [vmem:[%s15124_s11 + $0x60] ss:$16 sps:$4 sm:$0xff]  }
 0x39c   : > { %4684 = vmatpush1.bf16.msra.mxu0 %v10968_v46  ;;  %4830 = vmatpush1.bf16.msra.mxu1 %v10971_v41  ;;  %v11037_v49 = vld [vmem:[%s15124_s11 + $0x68] ss:$16 sps:$4 sm:$0xff]   ;;  %v11040_v25 = vld [vmem:[%s15124_s11 + $0x80] ss:$16 sps:$4 sm:$0xff]   ;;  %v11048_v34 = vld [vmem:[%s15124_s11 + $0xa4] ss:$16 sps:$4 sm:$0xff]  }
 0x39d   : > { %4685 = vmatprep.subr.bf16.mxu0 %v10976_v43  ;;  %4831 = vmatprep.subr.bf16.mxu1 %v10979_v37  ;;  %v11043_v33 = vld [vmem:[%s15124_s11 + $0x88] ss:$16 sps:$4 sm:$0xff]   ;;  %v11051_v36 = vld [vmem:[%s15124_s11 + $0xac] ss:$16 sps:$4 sm:$0xff]   ;;  %v11046_v11 = vld [vmem:[%s15124_s11 + $0xa0] ss:$16 sps:$4 sm:$0xff]  }
 0x39e   : > { %v11049_v29 = vld [vmem:[%s15124_s11 + $0xa8] ss:$16 sps:$4 sm:$0xff]   ;;  %v11052_v40 = vld [vmem:[%s15124_s11 + $0xc0] ss:$16 sps:$4 sm:$0xff]   ;;  %v11060_v45 = vld [vmem:[%s15124_s11 + $0xe4] ss:$16 sps:$4 sm:$0xff]  }
 0x39f   : > { %v11055_v44 = vld [vmem:[%s15124_s11 + $0xc8] ss:$16 sps:$4 sm:$0xff]   ;;  %v11063_v46 = vld [vmem:[%s15124_s11 + $0xec] ss:$16 sps:$4 sm:$0xff]   ;;  %v11058_v41 = vld [vmem:[%s15124_s11 + $0xe0] ss:$16 sps:$4 sm:$0xff]  }
 0x3a0   : > { %4686 = vmatpush1.bf16.msra.mxu0 %v10974_v3  ;;  %4832 = vmatpush1.bf16.msra.mxu1 %v10977_v47  ;;  %v11061_v43 = vld [vmem:[%s15124_s11 + $0xe8] ss:$16 sps:$4 sm:$0xff]   ;;  %v11066_v37 = vld [vmem:[%s15124_s11 + $0x104] ss:$16 sps:$4 sm:$0xff]   ;;  %v11064_v3 = vld [vmem:[%s15124_s11 + $0x100] ss:$16 sps:$4 sm:$0xff]  }
 0x3a1   : > { %4687 = vmatprep.subr.bf16.mxu0 %v10982_v48  ;;  %4833 = vmatprep.subr.bf16.mxu1 %v10985_v55  ;;  %v11067_v47 = vld [vmem:[%s15124_s11 + $0x108] ss:$16 sps:$4 sm:$0xff]   ;;  %v11072_v48 = vld [vmem:[%s15124_s11 + $0x124] ss:$16 sps:$4 sm:$0xff]   ;;  %v11075_v55 = vld [vmem:[%s15124_s11 + $0x12c] ss:$16 sps:$4 sm:$0xff]  }
 0x3a4   : > { %4688 = vmatpush1.bf16.msra.mxu0 %v10980_v57  ;;  %4834 = vmatpush1.bf16.msra.mxu1 %v10983_v31  ;;  %v11070_v57 = vld [vmem:[%s15124_s11 + $0x120] ss:$16 sps:$4 sm:$0xff]   ;;  %v11073_v31 = vld [vmem:[%s15124_s11 + $0x128] ss:$16 sps:$4 sm:$0xff]  }
 0x3a5   : > { %4689 = vmatprep.subr.bf16.mxu0 %v10988_v58  ;;  %4835 = vmatprep.subr.bf16.mxu1 %v10991_v2  ;;  %v11078_v58 = vld [vmem:[%s15124_s11 + $0x144] ss:$16 sps:$4 sm:$0xff]   ;;  %v11081_v2 = vld [vmem:[%s15124_s11 + $0x14c] ss:$16 sps:$4 sm:$0xff]  }
 0x3a8   : > { %4690 = vmatpush1.bf16.msra.mxu0 %v10986_v39  ;;  %4836 = vmatpush1.bf16.msra.mxu1 %v10989_v30  ;;  %v11076_v39 = vld [vmem:[%s15124_s11 + $0x140] ss:$16 sps:$4 sm:$0xff]   ;;  %v11079_v30 = vld [vmem:[%s15124_s11 + $0x148] ss:$16 sps:$4 sm:$0xff]  }
 0x3a9   : > { %4691 = vmatprep.subr.bf16.mxu0 %v10994_v59  ;;  %4837 = vmatprep.subr.bf16.mxu1 %v10997_v60  ;;  %v11084_v59 = vld [vmem:[%s15124_s11 + $0x164] ss:$16 sps:$4 sm:$0xff]   ;;  %v11087_v60 = vld [vmem:[%s15124_s11 + $0x16c] ss:$16 sps:$4 sm:$0xff]  }
 0x3ac   : > { %4692 = vmatpush1.bf16.msra.mxu0 %v10992_v61  ;;  %4838 = vmatpush1.bf16.msra.mxu1 %v10995_v4  ;;  %v11082_v61 = vld [vmem:[%s15124_s11 + $0x160] ss:$16 sps:$4 sm:$0xff]   ;;  %v11085_v4 = vld [vmem:[%s15124_s11 + $0x168] ss:$16 sps:$4 sm:$0xff]  }
 0x3ad   : > { %4693 = vmatprep.subr.bf16.mxu0 %v11000_v5  ;;  %4839 = vmatprep.subr.bf16.mxu1 %v11003_v8  ;;  %v11090_v5 = vld [vmem:[%s15124_s11 + $0x184] ss:$16 sps:$4 sm:$0xff]   ;;  %v11093_v8 = vld [vmem:[%s15124_s11 + $0x18c] ss:$16 sps:$4 sm:$0xff]  }
 0x3b0   : > { %4694 = vmatpush1.bf16.msra.mxu0 %v10998_v62  ;;  %4840 = vmatpush1.bf16.msra.mxu1 %v11001_v9  ;;  %v11088_v62 = vld [vmem:[%s15124_s11 + $0x180] ss:$16 sps:$4 sm:$0xff]   ;;  %v11091_v9 = vld [vmem:[%s15124_s11 + $0x188] ss:$16 sps:$4 sm:$0xff]  }
 0x3b1   : > { %4695 = vmatprep.subr.bf16.mxu0 %v11006_v1  ;;  %4841 = vmatprep.subr.bf16.mxu1 %v11009_v10  ;;  %v11096_v1 = vld [vmem:[%s15124_s11 + $0x1a4] ss:$16 sps:$4 sm:$0xff]   ;;  %v11099_v10 = vld [vmem:[%s15124_s11 + $0x1ac] ss:$16 sps:$4 sm:$0xff]  }
 0x3b4   : > { %4696 = vmatpush1.bf16.msra.mxu0 %v11004_v13  ;;  %4842 = vmatpush1.bf16.msra.mxu1 %v11007_v14  ;;  %v11094_v13 = vld [vmem:[%s15124_s11 + $0x1a0] ss:$16 sps:$4 sm:$0xff]   ;;  %v11097_v14 = vld [vmem:[%s15124_s11 + $0x1a8] ss:$16 sps:$4 sm:$0xff]  }
 0x3b5   : > { %4697 = vmatprep.subr.bf16.mxu0 %v11012_v15  ;;  %4843 = vmatprep.subr.bf16.mxu1 %v11015_v16  ;;  %v11102_v15 = vld [vmem:[%s15124_s11 + $0x1c4] ss:$16 sps:$4 sm:$0xff]   ;;  %v11105_v16 = vld [vmem:[%s15124_s11 + $0x1cc] ss:$16 sps:$4 sm:$0xff]  }
 0x3b8   : > { %4698 = vmatpush1.bf16.msra.mxu0 %v11010_v17  ;;  %4844 = vmatpush1.bf16.msra.mxu1 %v11013_v27  ;;  %v11100_v17 = vld [vmem:[%s15124_s11 + $0x1c0] ss:$16 sps:$4 sm:$0xff]   ;;  %v11103_v27 = vld [vmem:[%s15124_s11 + $0x1c8] ss:$16 sps:$4 sm:$0xff]  }
 0x3b9   : > { %5734 = vmatprep.subr.bf16.mxu0 %v11018_v20  ;;  %5880 = vmatprep.subr.bf16.mxu1 %v11021_v18  ;;  %v11108_v20 = vld [vmem:[%s15124_s11 + $0x1e4] ss:$16 sps:$4 sm:$0xff]   ;;  %v11111_v18 = vld [vmem:[%s15124_s11 + $0x1ec] ss:$16 sps:$4 sm:$0xff]  }
 0x3bb   : > { %4700 = vmatmul.mubr.bf16.vlgmr.msra.gmra.mrb[64].mxu0 %v13164_v6  ;;  %4846 = vmatmul.mubr.bf16.vlgmr.msra.gmra.mrb[64].mxu1 %v13164_v6  ;;  %v11030_v6 = vld [vmem:[%s15124_s11 + $0x44] ss:$16 sps:$4 sm:$0xff]  }
 0x3bc   : > { %4709 = vmatprep.mubr.bf16.mxu0 %v13263_v38  ;;  %4855 = vmatprep.mubr.bf16.mxu1 %v13263_v38  ;;  %v11033_v38 = vld [vmem:[%s15124_s11 + $0x4c] ss:$16 sps:$4 sm:$0xff]  }
 0x3bd   : > { %5735 = vmatpush1.bf16.msra.mxu0 %v11016_v19  ;;  %5881 = vmatpush1.bf16.msra.mxu1 %v11019_v7  ;;  %v11106_v19 = vld [vmem:[%s15124_s11 + $0x1e0] ss:$16 sps:$4 sm:$0xff]   ;;  %v11109_v7 = vld [vmem:[%s15124_s11 + $0x1e8] ss:$16 sps:$4 sm:$0xff]  }
 0x3be   : > { %5736 = vmatprep.subr.bf16.mxu0 %v11024_v12  ;;  %5882 = vmatprep.subr.bf16.mxu1 %v11027_v28  ;;  %v11114_v12 = vld [vmem:[%s15124_s11 + $0x204] ss:$16 sps:$4 sm:$0xff]   ;;  %v11117_v28 = vld [vmem:[%s15124_s11 + $0x20c] ss:$16 sps:$4 sm:$0xff]  }
 0x3c1   : > { %5737 = vmatpush1.bf16.msra.mxu0 %v11022_v52  ;;  %5883 = vmatpush1.bf16.msra.mxu1 %v11025_v21  ;;  %v3932_v52 = vld [vmem:[%s15123_s10] sm:$0xf] }
 0x3c2   : > { %5738 = vmatprep.subr.bf16.mxu0 %v11030_v6  ;;  %5884 = vmatprep.subr.bf16.mxu1 %v11033_v38  ;;  %v13642_v21 = vrot.slane %v3932_v52, %v12176_v50  ;;  %v13645_v6 = vrot.slane %v3932_v52, %v12186_v54  ;;  %v13648_v38 = vrot.slane %v3932_v52, %v12178_v51 }
 0x3c3   : > { %4710 = vmatmul.mubr.bf16.gmra.mrb[68].mxu0 %v13220_v0  ;;  %4856 = vmatmul.mubr.bf16.gmra.mrb[68].mxu1 %v13220_v0  ;;  %v11042_v0 = vld [vmem:[%s15124_s11 + $0x84] ss:$16 sps:$4 sm:$0xff]  }
 0x3c4   : > { %4719 = vmatprep.mubr.bf16.mxu0 %v13304_v23  ;;  %4865 = vmatprep.mubr.bf16.mxu1 %v13304_v23  ;;  %v11045_v23 = vld [vmem:[%s15124_s11 + $0x8c] ss:$16 sps:$4 sm:$0xff]  }
 0x3c5   : > { %5739 = vmatpush1.bf16.msra.mxu0 %v11028_v22  ;;  %5885 = vmatpush1.bf16.msra.mxu1 %v11031_v32  ;;  %v13651_v22 = vrot.slane %v3932_v52, %v12188_v56 }
 0x3c6   : > { %5740 = vmatprep.subr.bf16.mxu0 %v11036_v53  ;;  %5886 = vmatprep.subr.bf16.mxu1 %v11039_v24 }
 0x3c9   : > { %5741 = vmatpush1.bf16.msra.mxu0 %v11034_v26  ;;  %5887 = vmatpush1.bf16.msra.mxu1 %v11037_v49 }
 0x3ca   : > { %5742 = vmatprep.subr.bf16.mxu0 %v11042_v0  ;;  %5888 = vmatprep.subr.bf16.mxu1 %v11045_v23 }
 0x3cb   : > { %4720 = vmatmul.mubr.bf16.gmra.mrb[72].mxu0 %v13277_v63  ;;  %4866 = vmatmul.mubr.bf16.gmra.mrb[72].mxu1 %v13277_v63  ;;  %v11054_v63 = vld [vmem:[%s15124_s11 + $0xc4] ss:$16 sps:$4 sm:$0xff]  }
 0x3cc   : > { %4729 = vmatprep.mubr.bf16.mxu0 %v13314_v35  ;;  %4875 = vmatprep.mubr.bf16.mxu1 %v13314_v35  ;;  %v11057_v35 = vld [vmem:[%s15124_s11 + $0xcc] ss:$16 sps:$4 sm:$0xff]  }
 0x3cd   : > { %5743 = vmatpush1.bf16.msra.mxu0 %v11040_v25  ;;  %5889 = vmatpush1.bf16.msra.mxu1 %v11043_v33 }
 0x3ce   : > { %5744 = vmatprep.subr.bf16.mxu0 %v11048_v34  ;;  %5890 = vmatprep.subr.bf16.mxu1 %v11051_v36 }
 0x3d1   : > { %5745 = vmatpush1.bf16.msra.mxu0 %v11046_v11  ;;  %5891 = vmatpush1.bf16.msra.mxu1 %v11049_v29 }
 0x3d2   : > { %5746 = vmatprep.subr.bf16.mxu0 %v11054_v63  ;;  %5892 = vmatprep.subr.bf16.mxu1 %v11057_v35 }
 0x3d3   : > { %4730 = vmatmul.mubr.bf16.gmra.mrb[76].mxu0 %v13306_v42  ;;  %4876 = vmatmul.mubr.bf16.gmra.mrb[76].mxu1 %v13306_v42  ;;  %v11069_v42 = vld [vmem:[%s15124_s11 + $0x10c] ss:$16 sps:$4 sm:$0xff]  }
 0x3d5   : > { %5747 = vmatpush1.bf16.msra.mxu0 %v11052_v40  ;;  %5893 = vmatpush1.bf16.msra.mxu1 %v11055_v44 }
 0x3d6   : > { %5748 = vmatprep.subr.bf16.mxu0 %v11060_v45  ;;  %5894 = vmatprep.subr.bf16.mxu1 %v11063_v46 }
 0x3d9   : > { %5749 = vmatpush1.bf16.msra.mxu0 %v11058_v41  ;;  %5895 = vmatpush1.bf16.msra.mxu1 %v11061_v43 }
 0x3da   : > { %5750 = vmatprep.subr.bf16.mxu0 %v11066_v37  ;;  %5896 = vmatprep.subr.bf16.mxu1 %v11069_v42 }
 0x3dd   : > { %5751 = vmatpush1.bf16.msra.mxu0 %v11064_v3  ;;  %5897 = vmatpush1.bf16.msra.mxu1 %v11067_v47 }
 0x3de   : > { %5752 = vmatprep.subr.bf16.mxu0 %v11072_v48  ;;  %5898 = vmatprep.subr.bf16.mxu1 %v11075_v55 }
 0x3e1   : > { %5753 = vmatpush1.bf16.msra.mxu0 %v11070_v57  ;;  %5899 = vmatpush1.bf16.msra.mxu1 %v11073_v31 }
 0x3e2   : > { %5754 = vmatprep.subr.bf16.mxu0 %v11078_v58  ;;  %5900 = vmatprep.subr.bf16.mxu1 %v11081_v2 }
 0x3e5   : > { %5755 = vmatpush1.bf16.msra.mxu0 %v11076_v39  ;;  %5901 = vmatpush1.bf16.msra.mxu1 %v11079_v30 }
 0x3e6   : > { %5756 = vmatprep.subr.bf16.mxu0 %v11084_v59  ;;  %5902 = vmatprep.subr.bf16.mxu1 %v11087_v60 }
 0x3e9   : > { %5757 = vmatpush1.bf16.msra.mxu0 %v11082_v61  ;;  %5903 = vmatpush1.bf16.msra.mxu1 %v11085_v4 }
 0x3ea   : > { %5758 = vmatprep.subr.bf16.mxu0 %v11090_v5  ;;  %5904 = vmatprep.subr.bf16.mxu1 %v11093_v8 }
 0x3ed   : > { %5759 = vmatpush1.bf16.msra.mxu0 %v11088_v62  ;;  %5905 = vmatpush1.bf16.msra.mxu1 %v11091_v9  ;;  %v11112_v9 = vld [vmem:[%s15124_s11 + $0x200] ss:$16 sps:$4 sm:$0xff]  }
 0x3ee   : > { %5760 = vmatprep.subr.bf16.mxu0 %v11096_v1  ;;  %5906 = vmatprep.subr.bf16.mxu1 %v11099_v10  ;;  %v11115_v1 = vld [vmem:[%s15124_s11 + $0x208] ss:$16 sps:$4 sm:$0xff]  }
 0x3f1   : > { %5761 = vmatpush1.bf16.msra.mxu0 %v11094_v13  ;;  %5907 = vmatpush1.bf16.msra.mxu1 %v11097_v14 }
 0x3f2   : > { %5762 = vmatprep.subr.bf16.mxu0 %v11102_v15  ;;  %5908 = vmatprep.subr.bf16.mxu1 %v11105_v16  ;;  %v11120_v16 = vld [vmem:[%s15124_s11 + $0x224] ss:$16 sps:$4 sm:$0xff]  }
 0x3f5   : > { %5763 = vmatpush1.bf16.msra.mxu0 %v11100_v17  ;;  %5909 = vmatpush1.bf16.msra.mxu1 %v11103_v27  ;;  %v11123_v17 = vld [vmem:[%s15124_s11 + $0x22c] ss:$16 sps:$4 sm:$0xff]  }
 0x3f6   : > { %5764 = vmatprep.subr.bf16.mxu0 %v11108_v20  ;;  %5910 = vmatprep.subr.bf16.mxu1 %v11111_v18 }
 0x3f9   : > { %5765 = vmatpush1.bf16.msra.mxu0 %v11106_v19  ;;  %5911 = vmatpush1.bf16.msra.mxu1 %v11109_v7 }
 0x3fa   : > { %5807 = vmatprep.subr.bf16.mxu0 %v11114_v12  ;;  %5953 = vmatprep.subr.bf16.mxu1 %v11117_v28 }
 0x48e   : > { %v4701_v32 = vpop.f32.mrb[64].mxu0  ;;  %v4847_v53 = vpop.f32.mrb[64].mxu1 }
 0x48f   : > { %v10052_v24 = vadd.f32 %v4701_v32, %v13642_v21  ;;  %v10068_v26 = vadd.f32 %v4847_v53, %v13645_v6  ;;  %v4703_v49 = vpop.f32.mrb[65].mxu0  ;;  %v4849_v0 = vpop.f32.mrb[65].mxu1 }
 0x490   : > { %v10053_v23 = vadd.f32 %v4703_v49, %v13648_v38  ;;  %v10069_v25 = vadd.f32 %v4849_v0, %v13651_v22  ;;  %v4705_v33 = vpop.f32.mrb[66].mxu0  ;;  %v4851_v34 = vpop.f32.mrb[66].mxu1  ;;  %v11118_v0 = vld [vmem:[%s15124_s11 + $0x220] ss:$16 sps:$4 sm:$0xff]  }
 0x491   : > { %v4886_v36 = vmul.f32 0.01, %v10052_v24  ;;  %v4888_v11 = vmul.f32 0.01, %v10068_v26  ;;  %v10054_v29 = vadd.f32 %v4705_v33, %v13642_v21  ;;  %v10070_v63 = vadd.f32 %v4851_v34, %v13645_v6  ;;  %v4707_v35 = vpop.f32.mrb[67].mxu0  ;;  %v4853_v40 = vpop.f32.mrb[67].mxu1 }
 0x492   : > { %v4887_v44 = vmul.f32 0.01, %v10053_v23  ;;  %v4889_v45 = vmul.f32 0.01, %v10069_v25  ;;  %v10055_v46 = vadd.f32 %v4707_v35, %v13648_v38  ;;  %v10071_v41 = vadd.f32 %v4853_v40, %v13651_v22  ;;  %v11121_v34 = vld [vmem:[%s15124_s11 + $0x228] ss:$16 sps:$4 sm:$0xff]  }
 0x493   : > { %v4890_v43 = vmul.f32 0.01, %v10054_v29  ;;  %v4892_v37 = vmul.f32 0.01, %v10070_v63  ;;  %v4918_v47 = vmax.f32 %v10052_v24, %v4886_v36  ;;  %v4920_v48 = vmax.f32 %v10068_v26, %v4888_v11  ;;  %v11129_v35 = vld [vmem:[%s15124_s11 + $0x24c] ss:$16 sps:$4 sm:$0xff]  }
 0x494   : > { %v4891_v42 = vmul.f32 0.01, %v10055_v46  ;;  %v4893_v3 = vmul.f32 0.01, %v10071_v41  ;;  %v4919_v31 = vmax.f32 %v10053_v23, %v4887_v44  ;;  %v4921_v58 = vmax.f32 %v10069_v25, %v4889_v45 }
 0x495   : > { %v4922_v55 = vmax.f32 %v10054_v29, %v4890_v43  ;;  %v4924_v57 = vmax.f32 %v10070_v63, %v4892_v37  ;;  %v11126_v63 = vld [vmem:[%s15124_s11 + $0x244] ss:$16 sps:$4 sm:$0xff]  }
 0x496   : > { %v4923_v2 = vmax.f32 %v10055_v46, %v4891_v42  ;;  %v4925_v39 = vmax.f32 %v10071_v41, %v4893_v3  ;;  %v4711_v30 = vpop.f32.mrb[68].mxu0  ;;  %v4857_v59 = vpop.f32.mrb[68].mxu1 }
 0x497   : > { %v4950_v60 = vpack.c.bf16 %v4922_v55, %v4918_v47  ;;  %v13661_v61 = vpack.c.bf16 %v4924_v57, %v4920_v48  ;;  %v10056_v4 = vadd.f32 %v4711_v30, %v13642_v21  ;;  %v10072_v5 = vadd.f32 %v4857_v59, %v13645_v6  ;;  %v4713_v8 = vpop.f32.mrb[69].mxu0  ;;  %v4859_v62 = vpop.f32.mrb[69].mxu1  ;;  %v11124_v47 = vld [vmem:[%s15124_s11 + $0x240] ss:$16 sps:$4 sm:$0xff]   ;;  %v11127_v48 = vld [vmem:[%s15124_s11 + $0x248] ss:$16 sps:$4 sm:$0xff]  }
 0x498   : > { %v10057_v10 = vadd.f32 %v4713_v8, %v13648_v38  ;;  %v4715_v13 = vpop.f32.mrb[70].mxu0  ;;  %v4861_v14 = vpop.f32.mrb[70].mxu1  ;;  %v4951_v15 = vpack.c.bf16 %v4923_v2, %v4919_v31  ;;  %v13678_v27 = vpack.c.bf16 %v4925_v39, %v4921_v58  ;;  %v13683_v32 = vadd.f32 %v4859_v62, %v13651_v22  ;;  %v11132_v59 = vld [vmem:[%s15124_s11 + $0x264] ss:$16 sps:$4 sm:$0xff]  }
 0x499   : > { %v4894_v20 = vmul.f32 0.01, %v10056_v4  ;;  %v4896_v18 = vmul.f32 0.01, %v10072_v5  ;;  %v10058_v19 = vadd.f32 %v4715_v13, %v13642_v21  ;;  %v10074_v7 = vadd.f32 %v4861_v14, %v13645_v6  ;;  %v4717_v12 = vpop.f32.mrb[71].mxu0  ;;  %v4863_v28 = vpop.f32.mrb[71].mxu1 }
 0x49a   : > { %v4895_v52 = vmul.f32 0.01, %v10057_v10  ;;  %v10059_v53 = vadd.f32 %v4717_v12, %v13648_v38  ;;  %v13687_v24 = vadd.f32 %v4863_v28, %v13651_v22  ;;  %5766 = vmatprep.mubr.bf16.mxu0 %v4951_v15  ;;  %5912 = vmatprep.mubr.bf16.mxu1 %v4951_v15  ;;  %v4897_v44 = vmul.f32 0.01, %v13683_v32 }
 0x49b   : > { %v4898_v26 = vmul.f32 0.01, %v10058_v19  ;;  %v4900_v49 = vmul.f32 0.01, %v10074_v7  ;;  %5767 = vmatmul.mubr.bf16.vlgmr.msra.gmra.mrb[16].mxu0 %v4950_v60  ;;  %5913 = vmatmul.mubr.bf16.vlgmr.msra.gmra.mrb[16].mxu1 %v4950_v60  ;;  %v4926_v23 = vmax.f32 %v10056_v4, %v4894_v20  ;;  %v4928_v36 = vmax.f32 %v10072_v5, %v4896_v18  ;;  %v11135_v60 = vld [vmem:[%s15124_s11 + $0x26c] ss:$16 sps:$4 sm:$0xff]  }
 0x49c   : > { %v4899_v25 = vmul.f32 0.01, %v10059_v53  ;;  %v13693_v33 = vmul.f32 0.01, %v13687_v24  ;;  %5808 = vmatpush1.bf16.msra.mxu0 %v11112_v9  ;;  %5954 = vmatpush1.bf16.msra.mxu1 %v11115_v1  ;;  %v4927_v40 = vmax.f32 %v10057_v10, %v4895_v52  ;;  %v11130_v18 = vld [vmem:[%s15124_s11 + $0x260] ss:$16 sps:$4 sm:$0xff]  }
 0x49d   : > { %v4930_v11 = vmax.f32 %v10058_v19, %v4898_v26  ;;  %v4932_v29 = vmax.f32 %v10074_v7, %v4900_v49  ;;  %5809 = vmatprep.subr.bf16.mxu0 %v11120_v16  ;;  %5955 = vmatprep.subr.bf16.mxu1 %v11123_v17  ;;  %v4929_v16 = vmax.f32 %v13683_v32, %v4897_v44  ;;  %v11133_v52 = vld [vmem:[%s15124_s11 + $0x268] ss:$16 sps:$4 sm:$0xff]   ;;  %v11141_v26 = vld [vmem:[%s15124_s11 + $0x28c] ss:$16 sps:$4 sm:$0xff]  }
 0x49e   : > { %v4931_v45 = vmax.f32 %v10059_v53, %v4899_v25  ;;  %v4721_v46 = vpop.f32.mrb[72].mxu0  ;;  %v4867_v41 = vpop.f32.mrb[72].mxu1  ;;  %v4933_v31 = vmax.f32 %v13687_v24, %v13693_v33  ;;  %v11138_v24 = vld [vmem:[%s15124_s11 + $0x284] ss:$16 sps:$4 sm:$0xff]   ;;  %v11139_v44 = vld [vmem:[%s15124_s11 + $0x288] ss:$16 sps:$4 sm:$0xff]  }
 0x49f   : > { %v13706_v43 = vadd.f32 %v4721_v46, %v13642_v21  ;;  %v13709_v37 = vadd.f32 %v4867_v41, %v13645_v6  ;;  %v4723_v42 = vpop.f32.mrb[73].mxu0  ;;  %v4869_v3 = vpop.f32.mrb[73].mxu1  ;;  %v4954_v55 = vpack.c.bf16 %v4930_v11, %v4926_v23  ;;  %v13717_v57 = vpack.c.bf16 %v4932_v29, %v4928_v36 }
 0x4a0   : > { %v13722_v58 = vadd.f32 %v4723_v42, %v13648_v38  ;;  %5810 = vmatpush1.bf16.msra.mxu0 %v11118_v0  ;;  %5956 = vmatpush1.bf16.msra.mxu1 %v11121_v34  ;;  %v4725_v2 = vpop.f32.mrb[74].mxu0  ;;  %v4871_v39 = vpop.f32.mrb[74].mxu1  ;;  %v4955_v30 = vpack.c.bf16 %v4931_v45, %v4927_v40  ;;  %v13736_v13 = vadd.f32 %v4869_v3, %v13651_v22  ;;  %v11136_v40 = vld [vmem:[%s15124_s11 + $0x280] ss:$16 sps:$4 sm:$0xff]  }
 0x4a1   : > { %v4902_v4 = vmul.f32 0.01, %v13706_v43  ;;  %v4904_v5 = vmul.f32 0.01, %v13709_v37  ;;  %v10062_v8 = vadd.f32 %v4725_v2, %v13642_v21  ;;  %v10078_v62 = vadd.f32 %v4871_v39, %v13645_v6  ;;  %v4727_v9 = vpop.f32.mrb[75].mxu0  ;;  %v4873_v1 = vpop.f32.mrb[75].mxu1  ;;  %5811 = vmatprep.subr.bf16.mxu0 %v11126_v63  ;;  %5957 = vmatprep.subr.bf16.mxu1 %v11129_v35 }
 0x4a2   : > { %v4903_v10 = vmul.f32 0.01, %v13722_v58  ;;  %v10063_v14 = vadd.f32 %v4727_v9, %v13648_v38  ;;  %v13740_v15 = vadd.f32 %v4873_v1, %v13651_v22  ;;  %5776 = vmatprep.mubr.bf16.mxu0 %v4955_v30  ;;  %5922 = vmatprep.mubr.bf16.mxu1 %v4955_v30  ;;  %v13760_v49 = vpack.c.bf16 %v4933_v31, %v4929_v16  ;;  %v11153_v16 = vld [vmem:[%s15124_s11 + $0x2cc] ss:$16 sps:$4 sm:$0xff]  }
 0x4a3   : > { %v4906_v17 = vmul.f32 0.01, %v10062_v8  ;;  %v4908_v20 = vmul.f32 0.01, %v10078_v62  ;;  %5777 = vmatmul.mubr.bf16.gmra.mrb[20].mxu0 %v4954_v55  ;;  %5923 = vmatmul.mubr.bf16.gmra.mrb[20].mxu1 %v4954_v55  ;;  %v4934_v19 = vmax.f32 %v13706_v43, %v4902_v4  ;;  %v4936_v7 = vmax.f32 %v13709_v37, %v4904_v5 }
 0x4a4   : > { %v4907_v12 = vmul.f32 0.01, %v10063_v14  ;;  %v13749_v28 = vmul.f32 0.01, %v13740_v15  ;;  %5812 = vmatpush1.bf16.msra.mxu0 %v11124_v47  ;;  %5958 = vmatpush1.bf16.msra.mxu1 %v11127_v48  ;;  %v4935_v0 = vmax.f32 %v13722_v58, %v4903_v10  ;;  %v4905_v23 = vmul.f32 0.01, %v13736_v13 }
 0x4a5   : > { %v4938_v32 = vmax.f32 %v10062_v8, %v4906_v17  ;;  %v4940_v53 = vmax.f32 %v10078_v62, %v4908_v20  ;;  %5813 = vmatprep.subr.bf16.mxu0 %v11132_v59  ;;  %5959 = vmatprep.subr.bf16.mxu1 %v11135_v60  ;;  %v11144_v47 = vld [vmem:[%s15124_s11 + $0x2a4] ss:$16 sps:$4 sm:$0xff]   ;;  %v11147_v48 = vld [vmem:[%s15124_s11 + $0x2ac] ss:$16 sps:$4 sm:$0xff]  }
 0x4a6   : > { %v4939_v25 = vmax.f32 %v10063_v14, %v4907_v12  ;;  %v4941_v33 = vmax.f32 %v13740_v15, %v13749_v28  ;;  %v4731_v34 = vpop.f32.mrb[76].mxu0  ;;  %v4877_v36 = vpop.f32.mrb[76].mxu1  ;;  %v4937_v8 = vmax.f32 %v13736_v13, %v4905_v23  ;;  %v11150_v15 = vld [vmem:[%s15124_s11 + $0x2c4] ss:$16 sps:$4 sm:$0xff]   ;;  %v11154_v23 = vld [vmem:[%s15124_s11 + $0x2e0] ss:$16 sps:$4 sm:$0xff]  }
 0x4a7   : > { %v10064_v11 = vadd.f32 %v4731_v34, %v13642_v21  ;;  %v10080_v29 = vadd.f32 %v4877_v36, %v13645_v6  ;;  %v4733_v63 = vpop.f32.mrb[77].mxu0  ;;  %v4879_v35 = vpop.f32.mrb[77].mxu1  ;;  %v4958_v45 = vpack.c.bf16 %v4938_v32, %v4934_v19  ;;  %v13774_v46 = vpack.c.bf16 %v4940_v53, %v4936_v7  ;;  %v11148_v32 = vld [vmem:[%s15124_s11 + $0x2c0] ss:$16 sps:$4 sm:$0xff]   ;;  %v11151_v53 = vld [vmem:[%s15124_s11 + $0x2c8] ss:$16 sps:$4 sm:$0xff]  }
 0x4a8   : > { %v10065_v41 = vadd.f32 %v4733_v63, %v13648_v38  ;;  %v10081_v43 = vadd.f32 %v4879_v35, %v13651_v22  ;;  %5814 = vmatpush1.bf16.msra.mxu0 %v11130_v18  ;;  %5960 = vmatpush1.bf16.msra.mxu1 %v11133_v52  ;;  %v4735_v37 = vpop.f32.mrb[78].mxu0  ;;  %v4881_v42 = vpop.f32.mrb[78].mxu1  ;;  %v4959_v3 = vpack.c.bf16 %v4939_v25, %v4935_v0  ;;  %v11159_v0 = vld [vmem:[%s15124_s11 + $0x2ec] ss:$16 sps:$4 sm:$0xff]   ;;  %v11157_v25 = vld [vmem:[%s15124_s11 + $0x2e8] ss:$16 sps:$4 sm:$0xff]  }
 0x4a9   : > { %v4910_v55 = vmul.f32 0.01, %v10064_v11  ;;  %v4912_v31 = vmul.f32 0.01, %v10080_v29  ;;  %v10066_v58 = vadd.f32 %v4735_v37, %v13642_v21  ;;  %v10082_v2 = vadd.f32 %v4881_v42, %v13645_v6  ;;  %v4737_v39 = vpop.f32.mrb[79].mxu0  ;;  %v4883_v30 = vpop.f32.mrb[79].mxu1  ;;  %5815 = vmatprep.subr.bf16.mxu0 %v11138_v24  ;;  %5961 = vmatprep.subr.bf16.mxu1 %v11141_v26 }
 0x4aa   : > { %v4911_v59 = vmul.f32 0.01, %v10065_v41  ;;  %v4913_v60 = vmul.f32 0.01, %v10081_v43  ;;  %v10067_v4 = vadd.f32 %v4737_v39, %v13648_v38  ;;  %v10083_v5 = vadd.f32 %v4883_v30, %v13651_v22  ;;  %5786 = vmatprep.mubr.bf16.mxu0 %v4959_v3  ;;  %5932 = vmatprep.mubr.bf16.mxu1 %v4959_v3  ;;  %v11142_v21 = vld [vmem:[%s15124_s11 + $0x2a0] ss:$16 sps:$4 sm:$0xff]  }
 0x4ab   : > { %v4914_v62 = vmul.f32 0.01, %v10066_v58  ;;  %v4916_v9 = vmul.f32 0.01, %v10082_v2  ;;  %5787 = vmatmul.mubr.bf16.gmra.mrb[24].mxu0 %v4958_v45  ;;  %5933 = vmatmul.mubr.bf16.gmra.mrb[24].mxu1 %v4958_v45  ;;  %v4942_v6 = vmax.f32 %v10064_v11, %v4910_v55  ;;  %v4944_v1 = vmax.f32 %v10080_v29, %v4912_v31  ;;  %v11145_v38 = vld [vmem:[%s15124_s11 + $0x2a8] ss:$16 sps:$4 sm:$0xff]  }
 0x4ac   : > { %v4915_v10 = vmul.f32 0.01, %v10067_v4  ;;  %v4917_v14 = vmul.f32 0.01, %v10083_v5  ;;  %5816 = vmatpush1.bf16.msra.mxu0 %v11136_v40  ;;  %5962 = vmatpush1.bf16.msra.mxu1 %v11139_v44  ;;  %v13801_v17 = vpack.c.bf16 %v4941_v33, %v4937_v8  ;;  %v4943_v20 = vmax.f32 %v10065_v41, %v4911_v59  ;;  %v11156_v26 = vld [vmem:[%s15124_s11 + $0x2e4] ss:$16 sps:$4 sm:$0xff]  }
 0x4ad   : > { %v4946_v22 = vmax.f32 %v10066_v58, %v4914_v62  ;;  %v4948_v13 = vmax.f32 %v10082_v2, %v4916_v9  ;;  %5817 = vmatprep.subr.bf16.mxu0 %v11144_v47  ;;  %5963 = vmatprep.subr.bf16.mxu1 %v11147_v48  ;;  %v4945_v18 = vmax.f32 %v10081_v43, %v4913_v60  ;;  %v11162_v33 = vld [vmem:[%s15124_s11 + $0x304] ss:$16 sps:$4 sm:$0xff]   ;;  %v11165_v34 = vld [vmem:[%s15124_s11 + $0x30c] ss:$16 sps:$4 sm:$0xff]   ;;  %v11160_v36 = vld [vmem:[%s15124_s11 + $0x300] ss:$16 sps:$4 sm:$0xff]  }
 0x4ae   : > { %v4947_v19 = vmax.f32 %v10067_v4, %v4915_v10  ;;  %v4949_v7 = vmax.f32 %v10083_v5, %v4917_v14  ;;  %v11168_v11 = vld [vmem:[%s15124_s11 + $0x324] ss:$16 sps:$4 sm:$0xff]   ;;  %v11171_v29 = vld [vmem:[%s15124_s11 + $0x32c] ss:$16 sps:$4 sm:$0xff]   ;;  %v11166_v63 = vld [vmem:[%s15124_s11 + $0x320] ss:$16 sps:$4 sm:$0xff]  }
 0x4af   : > { %v4962_v12 = vpack.c.bf16 %v4946_v22, %v4942_v6  ;;  %v13803_v28 = vpack.c.bf16 %v4948_v13, %v4944_v1  ;;  %v11169_v35 = vld [vmem:[%s15124_s11 + $0x328] ss:$16 sps:$4 sm:$0xff]   ;;  %v11174_v40 = vld [vmem:[%s15124_s11 + $0x344] ss:$16 sps:$4 sm:$0xff]   ;;  %v11177_v44 = vld [vmem:[%s15124_s11 + $0x34c] ss:$16 sps:$4 sm:$0xff]  }
 0x4b0   : > { %5818 = vmatpush1.bf16.msra.mxu0 %v11142_v21  ;;  %5964 = vmatpush1.bf16.msra.mxu1 %v11145_v38  ;;  %v4963_v52 = vpack.c.bf16 %v4947_v19, %v4943_v20  ;;  %v13811_v24 = vpack.c.bf16 %v4949_v7, %v4945_v18  ;;  %v11172_v45 = vld [vmem:[%s15124_s11 + $0x340] ss:$16 sps:$4 sm:$0xff]   ;;  %v11175_v41 = vld [vmem:[%s15124_s11 + $0x348] ss:$16 sps:$4 sm:$0xff]   ;;  %v11180_v43 = vld [vmem:[%s15124_s11 + $0x364] ss:$16 sps:$4 sm:$0xff]  }
 0x4b1   : > { %5819 = vmatprep.subr.bf16.mxu0 %v11150_v15  ;;  %5965 = vmatprep.subr.bf16.mxu1 %v11153_v16  ;;  %v11183_v37 = vld [vmem:[%s15124_s11 + $0x36c] ss:$16 sps:$4 sm:$0xff]   ;;  %v11178_v42 = vld [vmem:[%s15124_s11 + $0x360] ss:$16 sps:$4 sm:$0xff]   ;;  %v11181_v3 = vld [vmem:[%s15124_s11 + $0x368] ss:$16 sps:$4 sm:$0xff]  }
 0x4b2   : > { %5796 = vmatprep.mubr.bf16.mxu0 %v4963_v52  ;;  %5942 = vmatprep.mubr.bf16.mxu1 %v4963_v52  ;;  %v11186_v47 = vld [vmem:[%s15124_s11 + $0x384] ss:$16 sps:$4 sm:$0xff]   ;;  %v11189_v48 = vld [vmem:[%s15124_s11 + $0x38c] ss:$16 sps:$4 sm:$0xff]   ;;  %v11184_v55 = vld [vmem:[%s15124_s11 + $0x380] ss:$16 sps:$4 sm:$0xff]  }
 0x4b3   : > { %5797 = vmatmul.mubr.bf16.gmra.mrb[28].mxu0 %v4962_v12  ;;  %5943 = vmatmul.mubr.bf16.gmra.mrb[28].mxu1 %v4962_v12  ;;  %v11187_v31 = vld [vmem:[%s15124_s11 + $0x388] ss:$16 sps:$4 sm:$0xff]   ;;  %v11192_v58 = vld [vmem:[%s15124_s11 + $0x3a4] ss:$16 sps:$4 sm:$0xff]   ;;  %v11195_v2 = vld [vmem:[%s15124_s11 + $0x3ac] ss:$16 sps:$4 sm:$0xff]  }
 0x4b4   : > { %5820 = vmatpush1.bf16.msra.mxu0 %v11148_v32  ;;  %5966 = vmatpush1.bf16.msra.mxu1 %v11151_v53  ;;  %v11190_v39 = vld [vmem:[%s15124_s11 + $0x3a0] ss:$16 sps:$4 sm:$0xff]   ;;  %v11193_v30 = vld [vmem:[%s15124_s11 + $0x3a8] ss:$16 sps:$4 sm:$0xff]   ;;  %v11198_v59 = vld [vmem:[%s15124_s11 + $0x3c4] ss:$16 sps:$4 sm:$0xff]  }
 0x4b5   : > { %5839 = vmatprep.mubr.bf16.mxu0 %v13678_v27  ;;  %5985 = vmatprep.mubr.bf16.mxu1 %v13678_v27  ;;  %v11163_v27 = vld [vmem:[%s15124_s11 + $0x308] ss:$16 sps:$4 sm:$0xff]   ;;  %v11201_v60 = vld [vmem:[%s15124_s11 + $0x3cc] ss:$16 sps:$4 sm:$0xff]   ;;  %v11196_v4 = vld [vmem:[%s15124_s11 + $0x3c0] ss:$16 sps:$4 sm:$0xff]  }
 0x4b6   : > { %5821 = vmatprep.subr.bf16.mxu0 %v11156_v26  ;;  %5967 = vmatprep.subr.bf16.mxu1 %v11159_v0  ;;  %v11199_v5 = vld [vmem:[%s15124_s11 + $0x3c8] ss:$16 sps:$4 sm:$0xff]   ;;  %v11204_v8 = vld [vmem:[%s15124_s11 + $0x3e4] ss:$16 sps:$4 sm:$0xff]   ;;  %v11207_v62 = vld [vmem:[%s15124_s11 + $0x3ec] ss:$16 sps:$4 sm:$0xff]  }
 0x4b7   : > { %v11202_v9 = vld [vmem:[%s15124_s11 + $0x3e0] ss:$16 sps:$4 sm:$0xff]   ;;  %v11205_v21 = vld [vmem:[%s15124_s11 + $0x3e8] ss:$16 sps:$4 sm:$0xff]   ;;  %v11210_v6 = vld [vmem:[%s15126_s13 + $0x4] ss:$16 sps:$4 sm:$0xff]  }
 0x4b8   : > { %5822 = vmatpush1.bf16.msra.mxu0 %v11154_v23  ;;  %5968 = vmatpush1.bf16.msra.mxu1 %v11157_v25  ;;  %v11213_v1 = vld [vmem:[%s15126_s13 + $0xc] ss:$16 sps:$4 sm:$0xff]   ;;  %v11208_v10 = vld [vmem:[%s15126_s13] ss:$16 sps:$4 sm:$0xff]   ;;  %v11211_v14 = vld [vmem:[%s15126_s13 + $0x8] ss:$16 sps:$4 sm:$0xff]  }
 0x4b9   : > { %5823 = vmatprep.subr.bf16.mxu0 %v11162_v33  ;;  %5969 = vmatprep.subr.bf16.mxu1 %v11165_v34  ;;  %v11216_v38 = vld [vmem:[%s15126_s13 + $0x24] ss:$16 sps:$4 sm:$0xff]   ;;  %v11219_v22 = vld [vmem:[%s15126_s13 + $0x2c] ss:$16 sps:$4 sm:$0xff]   ;;  %v11214_v13 = vld [vmem:[%s15126_s13 + $0x20] ss:$16 sps:$4 sm:$0xff]  }
 0x4ba   : > { %v11217_v15 = vld [vmem:[%s15126_s13 + $0x28] ss:$16 sps:$4 sm:$0xff]   ;;  %v11220_v16 = vld [vmem:[%s15126_s13 + $0x40] ss:$16 sps:$4 sm:$0xff]   ;;  %v11228_v18 = vld [vmem:[%s15126_s13 + $0x64] ss:$16 sps:$4 sm:$0xff]  }
 0x4bb   : > { %v11223_v20 = vld [vmem:[%s15126_s13 + $0x48] ss:$16 sps:$4 sm:$0xff]   ;;  %v11231_v19 = vld [vmem:[%s15126_s13 + $0x6c] ss:$16 sps:$4 sm:$0xff]   ;;  %v11226_v7 = vld [vmem:[%s15126_s13 + $0x60] ss:$16 sps:$4 sm:$0xff]  }
 0x4bc   : > { %5824 = vmatpush1.bf16.msra.mxu0 %v11160_v36  ;;  %5970 = vmatpush1.bf16.msra.mxu1 %v11163_v27  ;;  %v11229_v12 = vld [vmem:[%s15126_s13 + $0x68] ss:$16 sps:$4 sm:$0xff]   ;;  %v11232_v52 = vld [vmem:[%s15126_s13 + $0x80] ss:$16 sps:$4 sm:$0xff]   ;;  %v11240_v53 = vld [vmem:[%s15126_s13 + $0xa4] ss:$16 sps:$4 sm:$0xff]  }
 0x4bd   : > { %5825 = vmatprep.subr.bf16.mxu0 %v11168_v11  ;;  %5971 = vmatprep.subr.bf16.mxu1 %v11171_v29  ;;  %v11235_v32 = vld [vmem:[%s15126_s13 + $0x88] ss:$16 sps:$4 sm:$0xff]   ;;  %v11243_v26 = vld [vmem:[%s15126_s13 + $0xac] ss:$16 sps:$4 sm:$0xff]   ;;  %v11238_v0 = vld [vmem:[%s15126_s13 + $0xa0] ss:$16 sps:$4 sm:$0xff]  }
 0x4be   : > { %v11241_v23 = vld [vmem:[%s15126_s13 + $0xa8] ss:$16 sps:$4 sm:$0xff]   ;;  %v11244_v25 = vld [vmem:[%s15126_s13 + $0xc0] ss:$16 sps:$4 sm:$0xff]   ;;  %v11252_v34 = vld [vmem:[%s15126_s13 + $0xe4] ss:$16 sps:$4 sm:$0xff]  }
 0x4bf   : > { %v11247_v33 = vld [vmem:[%s15126_s13 + $0xc8] ss:$16 sps:$4 sm:$0xff]   ;;  %v11255_v36 = vld [vmem:[%s15126_s13 + $0xec] ss:$16 sps:$4 sm:$0xff]   ;;  %v11250_v27 = vld [vmem:[%s15126_s13 + $0xe0] ss:$16 sps:$4 sm:$0xff]  }
 0x4c0   : > { %5826 = vmatpush1.bf16.msra.mxu0 %v11166_v63  ;;  %5972 = vmatpush1.bf16.msra.mxu1 %v11169_v35  ;;  %v11253_v11 = vld [vmem:[%s15126_s13 + $0xe8] ss:$16 sps:$4 sm:$0xff]   ;;  %v11258_v29 = vld [vmem:[%s15126_s13 + $0x104] ss:$16 sps:$4 sm:$0xff]   ;;  %v11256_v63 = vld [vmem:[%s15126_s13 + $0x100] ss:$16 sps:$4 sm:$0xff]  }
 0x4c1   : > { %5827 = vmatprep.subr.bf16.mxu0 %v11174_v40  ;;  %5973 = vmatprep.subr.bf16.mxu1 %v11177_v44  ;;  %v11259_v35 = vld [vmem:[%s15126_s13 + $0x108] ss:$16 sps:$4 sm:$0xff]   ;;  %v11264_v40 = vld [vmem:[%s15126_s13 + $0x124] ss:$16 sps:$4 sm:$0xff]   ;;  %v11267_v44 = vld [vmem:[%s15126_s13 + $0x12c] ss:$16 sps:$4 sm:$0xff]  }
 0x4c4   : > { %5828 = vmatpush1.bf16.msra.mxu0 %v11172_v45  ;;  %5974 = vmatpush1.bf16.msra.mxu1 %v11175_v41  ;;  %v11262_v45 = vld [vmem:[%s15126_s13 + $0x120] ss:$16 sps:$4 sm:$0xff]   ;;  %v11265_v41 = vld [vmem:[%s15126_s13 + $0x128] ss:$16 sps:$4 sm:$0xff]  }
 0x4c5   : > { %5829 = vmatprep.subr.bf16.mxu0 %v11180_v43  ;;  %5975 = vmatprep.subr.bf16.mxu1 %v11183_v37  ;;  %v11270_v43 = vld [vmem:[%s15126_s13 + $0x144] ss:$16 sps:$4 sm:$0xff]   ;;  %v11273_v37 = vld [vmem:[%s15126_s13 + $0x14c] ss:$16 sps:$4 sm:$0xff]  }
 0x4c8   : > { %5830 = vmatpush1.bf16.msra.mxu0 %v11178_v42  ;;  %5976 = vmatpush1.bf16.msra.mxu1 %v11181_v3  ;;  %v11268_v42 = vld [vmem:[%s15126_s13 + $0x140] ss:$16 sps:$4 sm:$0xff]   ;;  %v11271_v3 = vld [vmem:[%s15126_s13 + $0x148] ss:$16 sps:$4 sm:$0xff]  }
 0x4c9   : > { %5831 = vmatprep.subr.bf16.mxu0 %v11186_v47  ;;  %5977 = vmatprep.subr.bf16.mxu1 %v11189_v48  ;;  %v11276_v47 = vld [vmem:[%s15126_s13 + $0x164] ss:$16 sps:$4 sm:$0xff]   ;;  %v11279_v48 = vld [vmem:[%s15126_s13 + $0x16c] ss:$16 sps:$4 sm:$0xff]  }
 0x4cc   : > { %5832 = vmatpush1.bf16.msra.mxu0 %v11184_v55  ;;  %5978 = vmatpush1.bf16.msra.mxu1 %v11187_v31  ;;  %v11274_v55 = vld [vmem:[%s15126_s13 + $0x160] ss:$16 sps:$4 sm:$0xff]   ;;  %v11277_v31 = vld [vmem:[%s15126_s13 + $0x168] ss:$16 sps:$4 sm:$0xff]  }
 0x4cd   : > { %5833 = vmatprep.subr.bf16.mxu0 %v11192_v58  ;;  %5979 = vmatprep.subr.bf16.mxu1 %v11195_v2  ;;  %v11282_v58 = vld [vmem:[%s15126_s13 + $0x184] ss:$16 sps:$4 sm:$0xff]   ;;  %v11285_v2 = vld [vmem:[%s15126_s13 + $0x18c] ss:$16 sps:$4 sm:$0xff]  }
 0x4d0   : > { %5834 = vmatpush1.bf16.msra.mxu0 %v11190_v39  ;;  %5980 = vmatpush1.bf16.msra.mxu1 %v11193_v30  ;;  %v11280_v39 = vld [vmem:[%s15126_s13 + $0x180] ss:$16 sps:$4 sm:$0xff]   ;;  %v11283_v30 = vld [vmem:[%s15126_s13 + $0x188] ss:$16 sps:$4 sm:$0xff]  }
 0x4d1   : > { %5835 = vmatprep.subr.bf16.mxu0 %v11198_v59  ;;  %5981 = vmatprep.subr.bf16.mxu1 %v11201_v60  ;;  %v11288_v59 = vld [vmem:[%s15126_s13 + $0x1a4] ss:$16 sps:$4 sm:$0xff]   ;;  %v11291_v60 = vld [vmem:[%s15126_s13 + $0x1ac] ss:$16 sps:$4 sm:$0xff]  }
 0x4d4   : > { %5836 = vmatpush1.bf16.msra.mxu0 %v11196_v4  ;;  %5982 = vmatpush1.bf16.msra.mxu1 %v11199_v5  ;;  %v11286_v4 = vld [vmem:[%s15126_s13 + $0x1a0] ss:$16 sps:$4 sm:$0xff]   ;;  %v11289_v5 = vld [vmem:[%s15126_s13 + $0x1a8] ss:$16 sps:$4 sm:$0xff]  }
 0x4d5   : > { %5837 = vmatprep.subr.bf16.mxu0 %v11204_v8  ;;  %5983 = vmatprep.subr.bf16.mxu1 %v11207_v62  ;;  %v11294_v8 = vld [vmem:[%s15126_s13 + $0x1c4] ss:$16 sps:$4 sm:$0xff]   ;;  %v11297_v62 = vld [vmem:[%s15126_s13 + $0x1cc] ss:$16 sps:$4 sm:$0xff]  }
 0x4d8   : > { %5838 = vmatpush1.bf16.msra.mxu0 %v11202_v9  ;;  %5984 = vmatpush1.bf16.msra.mxu1 %v11205_v21  ;;  %v11292_v9 = vld [vmem:[%s15126_s13 + $0x1c0] ss:$16 sps:$4 sm:$0xff]   ;;  %v11295_v21 = vld [vmem:[%s15126_s13 + $0x1c8] ss:$16 sps:$4 sm:$0xff]  }
 0x4d9   : > { %6950 = vmatprep.subr.bf16.mxu0 %v11210_v6  ;;  %7096 = vmatprep.subr.bf16.mxu1 %v11213_v1  ;;  %v11300_v6 = vld [vmem:[%s15126_s13 + $0x1e4] ss:$16 sps:$4 sm:$0xff]   ;;  %v11303_v1 = vld [vmem:[%s15126_s13 + $0x1ec] ss:$16 sps:$4 sm:$0xff]  }
 0x4db   : > { %5840 = vmatmul.mubr.bf16.vlgmr.msra.gmra.mrb[16].mxu0 %v13661_v61  ;;  %5986 = vmatmul.mubr.bf16.vlgmr.msra.gmra.mrb[16].mxu1 %v13661_v61  ;;  %v11222_v61 = vld [vmem:[%s15126_s13 + $0x44] ss:$16 sps:$4 sm:$0xff]  }
 0x4dc   : > { %5849 = vmatprep.mubr.bf16.mxu0 %v13760_v49  ;;  %5995 = vmatprep.mubr.bf16.mxu1 %v13760_v49  ;;  %v11225_v49 = vld [vmem:[%s15126_s13 + $0x4c] ss:$16 sps:$4 sm:$0xff]  }
 0x4dd   : > { %6951 = vmatpush1.bf16.msra.mxu0 %v11208_v10  ;;  %7097 = vmatpush1.bf16.msra.mxu1 %v11211_v14  ;;  %v11298_v10 = vld [vmem:[%s15126_s13 + $0x1e0] ss:$16 sps:$4 sm:$0xff]   ;;  %v11301_v14 = vld [vmem:[%s15126_s13 + $0x1e8] ss:$16 sps:$4 sm:$0xff]  }
 0x4de   : > { %6952 = vmatprep.subr.bf16.mxu0 %v11216_v38  ;;  %7098 = vmatprep.subr.bf16.mxu1 %v11219_v22  ;;  %v11306_v38 = vld [vmem:[%s15126_s13 + $0x204] ss:$16 sps:$4 sm:$0xff]   ;;  %v11309_v22 = vld [vmem:[%s15126_s13 + $0x20c] ss:$16 sps:$4 sm:$0xff]  }
 0x4e1   : > { %6953 = vmatpush1.bf16.msra.mxu0 %v11214_v13  ;;  %7099 = vmatpush1.bf16.msra.mxu1 %v11217_v15  ;;  %v6026_v13 = vld [vmem:[%s15125_s12] sm:$0xf] }
 0x4e2   : > { %6954 = vmatprep.subr.bf16.mxu0 %v11222_v61  ;;  %7100 = vmatprep.subr.bf16.mxu1 %v11225_v49  ;;  %v14139_v15 = vrot.slane %v6026_v13, %v12176_v50  ;;  %v14142_v61 = vrot.slane %v6026_v13, %v12186_v54  ;;  %v14145_v49 = vrot.slane %v6026_v13, %v12178_v51 }
 0x4e3   : > { %5850 = vmatmul.mubr.bf16.gmra.mrb[20].mxu0 %v13717_v57  ;;  %5996 = vmatmul.mubr.bf16.gmra.mrb[20].mxu1 %v13717_v57  ;;  %v11234_v57 = vld [vmem:[%s15126_s13 + $0x84] ss:$16 sps:$4 sm:$0xff]  }
 0x4e4   : > { %5859 = vmatprep.mubr.bf16.mxu0 %v13801_v17  ;;  %6005 = vmatprep.mubr.bf16.mxu1 %v13801_v17  ;;  %v11237_v17 = vld [vmem:[%s15126_s13 + $0x8c] ss:$16 sps:$4 sm:$0xff]  }
 0x4e5   : > { %6955 = vmatpush1.bf16.msra.mxu0 %v11220_v16  ;;  %7101 = vmatpush1.bf16.msra.mxu1 %v11223_v20  ;;  %v14148_v16 = vrot.slane %v6026_v13, %v12188_v56 }
 0x4e6   : > { %6956 = vmatprep.subr.bf16.mxu0 %v11228_v18  ;;  %7102 = vmatprep.subr.bf16.mxu1 %v11231_v19 }
 0x4e9   : > { %6957 = vmatpush1.bf16.msra.mxu0 %v11226_v7  ;;  %7103 = vmatpush1.bf16.msra.mxu1 %v11229_v12 }
 0x4ea   : > { %6958 = vmatprep.subr.bf16.mxu0 %v11234_v57  ;;  %7104 = vmatprep.subr.bf16.mxu1 %v11237_v17 }
 0x4eb   : > { %5860 = vmatmul.mubr.bf16.gmra.mrb[24].mxu0 %v13774_v46  ;;  %6006 = vmatmul.mubr.bf16.gmra.mrb[24].mxu1 %v13774_v46  ;;  %v11246_v46 = vld [vmem:[%s15126_s13 + $0xc4] ss:$16 sps:$4 sm:$0xff]  }
 0x4ec   : > { %5869 = vmatprep.mubr.bf16.mxu0 %v13811_v24  ;;  %6015 = vmatprep.mubr.bf16.mxu1 %v13811_v24  ;;  %v11249_v24 = vld [vmem:[%s15126_s13 + $0xcc] ss:$16 sps:$4 sm:$0xff]  }
 0x4ed   : > { %6959 = vmatpush1.bf16.msra.mxu0 %v11232_v52  ;;  %7105 = vmatpush1.bf16.msra.mxu1 %v11235_v32 }
 0x4ee   : > { %6960 = vmatprep.subr.bf16.mxu0 %v11240_v53  ;;  %7106 = vmatprep.subr.bf16.mxu1 %v11243_v26 }
 0x4f1   : > { %6961 = vmatpush1.bf16.msra.mxu0 %v11238_v0  ;;  %7107 = vmatpush1.bf16.msra.mxu1 %v11241_v23 }
 0x4f2   : > { %6962 = vmatprep.subr.bf16.mxu0 %v11246_v46  ;;  %7108 = vmatprep.subr.bf16.mxu1 %v11249_v24 }
 0x4f3   : > { %5870 = vmatmul.mubr.bf16.gmra.mrb[28].mxu0 %v13803_v28  ;;  %6016 = vmatmul.mubr.bf16.gmra.mrb[28].mxu1 %v13803_v28  ;;  %v11261_v28 = vld [vmem:[%s15126_s13 + $0x10c] ss:$16 sps:$4 sm:$0xff]  }
 0x4f5   : > { %6963 = vmatpush1.bf16.msra.mxu0 %v11244_v25  ;;  %7109 = vmatpush1.bf16.msra.mxu1 %v11247_v33 }
 0x4f6   : > { %6964 = vmatprep.subr.bf16.mxu0 %v11252_v34  ;;  %7110 = vmatprep.subr.bf16.mxu1 %v11255_v36 }
 0x4f9   : > { %6965 = vmatpush1.bf16.msra.mxu0 %v11250_v27  ;;  %7111 = vmatpush1.bf16.msra.mxu1 %v11253_v11 }
 0x4fa   : > { %6966 = vmatprep.subr.bf16.mxu0 %v11258_v29  ;;  %7112 = vmatprep.subr.bf16.mxu1 %v11261_v28 }
 0x4fd   : > { %6967 = vmatpush1.bf16.msra.mxu0 %v11256_v63  ;;  %7113 = vmatpush1.bf16.msra.mxu1 %v11259_v35 }
 0x4fe   : > { %6968 = vmatprep.subr.bf16.mxu0 %v11264_v40  ;;  %7114 = vmatprep.subr.bf16.mxu1 %v11267_v44 }
 0x501   : > { %6969 = vmatpush1.bf16.msra.mxu0 %v11262_v45  ;;  %7115 = vmatpush1.bf16.msra.mxu1 %v11265_v41 }
 0x502   : > { %6970 = vmatprep.subr.bf16.mxu0 %v11270_v43  ;;  %7116 = vmatprep.subr.bf16.mxu1 %v11273_v37 }
 0x505   : > { %6971 = vmatpush1.bf16.msra.mxu0 %v11268_v42  ;;  %7117 = vmatpush1.bf16.msra.mxu1 %v11271_v3 }
 0x506   : > { %6972 = vmatprep.subr.bf16.mxu0 %v11276_v47  ;;  %7118 = vmatprep.subr.bf16.mxu1 %v11279_v48 }
 0x509   : > { %6973 = vmatpush1.bf16.msra.mxu0 %v11274_v55  ;;  %7119 = vmatpush1.bf16.msra.mxu1 %v11277_v31 }
 0x50a   : > { %6974 = vmatprep.subr.bf16.mxu0 %v11282_v58  ;;  %7120 = vmatprep.subr.bf16.mxu1 %v11285_v2 }
 0x50d   : > { %6975 = vmatpush1.bf16.msra.mxu0 %v11280_v39  ;;  %7121 = vmatpush1.bf16.msra.mxu1 %v11283_v30  ;;  %v11304_v30 = vld [vmem:[%s15126_s13 + $0x200] ss:$16 sps:$4 sm:$0xff]  }
 0x50e   : > { %6976 = vmatprep.subr.bf16.mxu0 %v11288_v59  ;;  %7122 = vmatprep.subr.bf16.mxu1 %v11291_v60  ;;  %v11307_v59 = vld [vmem:[%s15126_s13 + $0x208] ss:$16 sps:$4 sm:$0xff]  }
 0x511   : > { %6977 = vmatpush1.bf16.msra.mxu0 %v11286_v4  ;;  %7123 = vmatpush1.bf16.msra.mxu1 %v11289_v5 }
 0x512   : > { %6978 = vmatprep.subr.bf16.mxu0 %v11294_v8  ;;  %7124 = vmatprep.subr.bf16.mxu1 %v11297_v62  ;;  %v11312_v62 = vld [vmem:[%s15126_s13 + $0x224] ss:$16 sps:$4 sm:$0xff]  }
 0x515   : > { %6979 = vmatpush1.bf16.msra.mxu0 %v11292_v9  ;;  %7125 = vmatpush1.bf16.msra.mxu1 %v11295_v21  ;;  %v11315_v9 = vld [vmem:[%s15126_s13 + $0x22c] ss:$16 sps:$4 sm:$0xff]  }
 0x516   : > { %6980 = vmatprep.subr.bf16.mxu0 %v11300_v6  ;;  %7126 = vmatprep.subr.bf16.mxu1 %v11303_v1 }
 0x519   : > { %6981 = vmatpush1.bf16.msra.mxu0 %v11298_v10  ;;  %7127 = vmatpush1.bf16.msra.mxu1 %v11301_v14 }
 0x51a   : > { %7023 = vmatprep.subr.bf16.mxu0 %v11306_v38  ;;  %7169 = vmatprep.subr.bf16.mxu1 %v11309_v22 }
 0x5ae   : > { %v5841_v20 = vpop.f32.mrb[16].mxu0  ;;  %v5987_v18 = vpop.f32.mrb[16].mxu1 }
 0x5af   : > { %v6048_v19 = vadd.f32 %v14139_v15, %v5841_v20  ;;  %v6050_v7 = vadd.f32 %v14142_v61, %v5987_v18  ;;  %v5843_v12 = vpop.f32.mrb[17].mxu0  ;;  %v5989_v57 = vpop.f32.mrb[17].mxu1 }
 0x5b0   : > { %v6049_v17 = vadd.f32 %v14145_v49, %v5843_v12  ;;  %v6051_v52 = vadd.f32 %v14148_v16, %v5989_v57  ;;  %v5845_v32 = vpop.f32.mrb[18].mxu0  ;;  %v5991_v53 = vpop.f32.mrb[18].mxu1  ;;  %v11310_v57 = vld [vmem:[%s15126_s13 + $0x220] ss:$16 sps:$4 sm:$0xff]  }
 0x5b1   : > { %v6080_v26 = vmul.f32 0.01, %v6048_v19  ;;  %v6082_v0 = vmul.f32 0.01, %v6050_v7  ;;  %v6052_v23 = vadd.f32 %v14139_v15, %v5845_v32  ;;  %v6054_v46 = vadd.f32 %v14142_v61, %v5991_v53  ;;  %v5847_v24 = vpop.f32.mrb[19].mxu0  ;;  %v5993_v25 = vpop.f32.mrb[19].mxu1 }
 0x5b2   : > { %v6081_v33 = vmul.f32 0.01, %v6049_v17  ;;  %v6083_v34 = vmul.f32 0.01, %v6051_v52  ;;  %v6053_v36 = vadd.f32 %v14145_v49, %v5847_v24  ;;  %v6055_v27 = vadd.f32 %v14148_v16, %v5993_v25  ;;  %v11313_v53 = vld [vmem:[%s15126_s13 + $0x228] ss:$16 sps:$4 sm:$0xff]  }
 0x5b3   : > { %v6084_v11 = vmul.f32 0.01, %v6052_v23  ;;  %v6086_v29 = vmul.f32 0.01, %v6054_v46  ;;  %v6112_v35 = vmax.f32 %v6048_v19, %v6080_v26  ;;  %v6114_v40 = vmax.f32 %v6050_v7, %v6082_v0  ;;  %v11321_v24 = vld [vmem:[%s15126_s13 + $0x24c] ss:$16 sps:$4 sm:$0xff]  }
 0x5b4   : > { %v6085_v28 = vmul.f32 0.01, %v6053_v36  ;;  %v6087_v63 = vmul.f32 0.01, %v6055_v27  ;;  %v6113_v41 = vmax.f32 %v6049_v17, %v6081_v33  ;;  %v6115_v43 = vmax.f32 %v6051_v52, %v6083_v34 }
 0x5b5   : > { %v6116_v44 = vmax.f32 %v6052_v23, %v6084_v11  ;;  %v6118_v45 = vmax.f32 %v6054_v46, %v6086_v29  ;;  %v11318_v46 = vld [vmem:[%s15126_s13 + $0x244] ss:$16 sps:$4 sm:$0xff]  }
 0x5b6   : > { %v6117_v37 = vmax.f32 %v6053_v36, %v6085_v28  ;;  %v6119_v42 = vmax.f32 %v6055_v27, %v6087_v63  ;;  %v5851_v3 = vpop.f32.mrb[20].mxu0  ;;  %v5997_v47 = vpop.f32.mrb[20].mxu1 }
 0x5b7   : > { %v6144_v48 = vpack.c.bf16 %v6116_v44, %v6112_v35  ;;  %v14158_v55 = vpack.c.bf16 %v6118_v45, %v6114_v40  ;;  %v6056_v31 = vadd.f32 %v14139_v15, %v5851_v3  ;;  %v6058_v58 = vadd.f32 %v14142_v61, %v5997_v47  ;;  %v5853_v2 = vpop.f32.mrb[21].mxu0  ;;  %v5999_v39 = vpop.f32.mrb[21].mxu1  ;;  %v11316_v35 = vld [vmem:[%s15126_s13 + $0x240] ss:$16 sps:$4 sm:$0xff]   ;;  %v11319_v40 = vld [vmem:[%s15126_s13 + $0x248] ss:$16 sps:$4 sm:$0xff]  }
 0x5b8   : > { %v6057_v60 = vadd.f32 %v14145_v49, %v5853_v2  ;;  %v5855_v4 = vpop.f32.mrb[22].mxu0  ;;  %v6001_v5 = vpop.f32.mrb[22].mxu1  ;;  %v6145_v8 = vpack.c.bf16 %v6117_v37, %v6113_v41  ;;  %v14175_v21 = vpack.c.bf16 %v6119_v42, %v6115_v43  ;;  %v14180_v20 = vadd.f32 %v14148_v16, %v5999_v39  ;;  %v11324_v47 = vld [vmem:[%s15126_s13 + $0x264] ss:$16 sps:$4 sm:$0xff]  }
 0x5b9   : > { %v6088_v6 = vmul.f32 0.01, %v6056_v31  ;;  %v6090_v1 = vmul.f32 0.01, %v6058_v58  ;;  %v6060_v10 = vadd.f32 %v14139_v15, %v5855_v4  ;;  %v6062_v14 = vadd.f32 %v14142_v61, %v6001_v5  ;;  %v5857_v38 = vpop.f32.mrb[23].mxu0  ;;  %v6003_v22 = vpop.f32.mrb[23].mxu1 }
 0x5ba   : > { %v6089_v13 = vmul.f32 0.01, %v6057_v60  ;;  %v6061_v18 = vadd.f32 %v14145_v49, %v5857_v38  ;;  %v14184_v19 = vadd.f32 %v14148_v16, %v6003_v22  ;;  %6982 = vmatprep.mubr.bf16.mxu0 %v6145_v8  ;;  %7128 = vmatprep.mubr.bf16.mxu1 %v6145_v8  ;;  %v6091_v33 = vmul.f32 0.01, %v14180_v20 }
 0x5bb   : > { %v6092_v7 = vmul.f32 0.01, %v6060_v10  ;;  %v6094_v12 = vmul.f32 0.01, %v6062_v14  ;;  %6983 = vmatmul.mubr.bf16.vlgmr.msra.gmra.mrb[80].mxu0 %v6144_v48  ;;  %7129 = vmatmul.mubr.bf16.vlgmr.msra.gmra.mrb[80].mxu1 %v6144_v48  ;;  %v6120_v17 = vmax.f32 %v6056_v31, %v6088_v6  ;;  %v6122_v26 = vmax.f32 %v6058_v58, %v6090_v1  ;;  %v11327_v48 = vld [vmem:[%s15126_s13 + $0x26c] ss:$16 sps:$4 sm:$0xff]  }
 0x5bc   : > { %v6093_v52 = vmul.f32 0.01, %v6061_v18  ;;  %v14190_v32 = vmul.f32 0.01, %v14184_v19  ;;  %7024 = vmatpush1.bf16.msra.mxu0 %v11304_v30  ;;  %7170 = vmatpush1.bf16.msra.mxu1 %v11307_v59  ;;  %v6121_v25 = vmax.f32 %v6057_v60, %v6089_v13  ;;  %v11322_v1 = vld [vmem:[%s15126_s13 + $0x260] ss:$16 sps:$4 sm:$0xff]  }
 0x5bd   : > { %v6124_v0 = vmax.f32 %v6060_v10, %v6092_v7  ;;  %v6126_v23 = vmax.f32 %v6062_v14, %v6094_v12  ;;  %7025 = vmatprep.subr.bf16.mxu0 %v11312_v62  ;;  %7171 = vmatprep.subr.bf16.mxu1 %v11315_v9  ;;  %v6123_v62 = vmax.f32 %v14180_v20, %v6091_v33  ;;  %v11325_v13 = vld [vmem:[%s15126_s13 + $0x268] ss:$16 sps:$4 sm:$0xff]   ;;  %v11333_v7 = vld [vmem:[%s15126_s13 + $0x28c] ss:$16 sps:$4 sm:$0xff]  }
 0x5be   : > { %v6125_v34 = vmax.f32 %v6061_v18, %v6093_v52  ;;  %v5861_v36 = vpop.f32.mrb[24].mxu0  ;;  %v6007_v27 = vpop.f32.mrb[24].mxu1  ;;  %v6127_v41 = vmax.f32 %v14184_v19, %v14190_v32  ;;  %v11330_v19 = vld [vmem:[%s15126_s13 + $0x284] ss:$16 sps:$4 sm:$0xff]   ;;  %v11331_v33 = vld [vmem:[%s15126_s13 + $0x288] ss:$16 sps:$4 sm:$0xff]  }
 0x5bf   : > { %v14203_v11 = vadd.f32 %v14139_v15, %v5861_v36  ;;  %v14206_v29 = vadd.f32 %v14142_v61, %v6007_v27  ;;  %v5863_v28 = vpop.f32.mrb[25].mxu0  ;;  %v6009_v63 = vpop.f32.mrb[25].mxu1  ;;  %v6148_v44 = vpack.c.bf16 %v6124_v0, %v6120_v17  ;;  %v14214_v45 = vpack.c.bf16 %v6126_v23, %v6122_v26 }
 0x5c0   : > { %v14219_v43 = vadd.f32 %v14145_v49, %v5863_v28  ;;  %7026 = vmatpush1.bf16.msra.mxu0 %v11310_v57  ;;  %7172 = vmatpush1.bf16.msra.mxu1 %v11313_v53  ;;  %v5865_v37 = vpop.f32.mrb[26].mxu0  ;;  %v6011_v42 = vpop.f32.mrb[26].mxu1  ;;  %v6149_v3 = vpack.c.bf16 %v6125_v34, %v6121_v25  ;;  %v14233_v4 = vadd.f32 %v14148_v16, %v6009_v63  ;;  %v11328_v25 = vld [vmem:[%s15126_s13 + $0x280] ss:$16 sps:$4 sm:$0xff]  }
 0x5c1   : > { %v6096_v31 = vmul.f32 0.01, %v14203_v11  ;;  %v6098_v58 = vmul.f32 0.01, %v14206_v29  ;;  %v6068_v2 = vadd.f32 %v14139_v15, %v5865_v37  ;;  %v6070_v39 = vadd.f32 %v14142_v61, %v6011_v42  ;;  %v5867_v30 = vpop.f32.mrb[27].mxu0  ;;  %v6013_v59 = vpop.f32.mrb[27].mxu1  ;;  %7027 = vmatprep.subr.bf16.mxu0 %v11318_v46  ;;  %7173 = vmatprep.subr.bf16.mxu1 %v11321_v24 }
 0x5c2   : > { %v6097_v60 = vmul.f32 0.01, %v14219_v43  ;;  %v6069_v5 = vadd.f32 %v14145_v49, %v5867_v30  ;;  %v14237_v8 = vadd.f32 %v14148_v16, %v6013_v59  ;;  %6992 = vmatprep.mubr.bf16.mxu0 %v6149_v3  ;;  %7138 = vmatprep.mubr.bf16.mxu1 %v6149_v3  ;;  %v14257_v12 = vpack.c.bf16 %v6127_v41, %v6123_v62  ;;  %v11345_v62 = vld [vmem:[%s15126_s13 + $0x2cc] ss:$16 sps:$4 sm:$0xff]  }
 0x5c3   : > { %v6100_v9 = vmul.f32 0.01, %v6068_v2  ;;  %v6102_v6 = vmul.f32 0.01, %v6070_v39  ;;  %6993 = vmatmul.mubr.bf16.gmra.mrb[84].mxu0 %v6148_v44  ;;  %7139 = vmatmul.mubr.bf16.gmra.mrb[84].mxu1 %v6148_v44  ;;  %v6128_v10 = vmax.f32 %v14203_v11, %v6096_v31  ;;  %v6130_v14 = vmax.f32 %v14206_v29, %v6098_v58 }
 0x5c4   : > { %v6101_v38 = vmul.f32 0.01, %v6069_v5  ;;  %v14246_v22 = vmul.f32 0.01, %v14237_v8  ;;  %7028 = vmatpush1.bf16.msra.mxu0 %v11316_v35  ;;  %7174 = vmatpush1.bf16.msra.mxu1 %v11319_v40  ;;  %v6129_v57 = vmax.f32 %v14219_v43, %v6097_v60  ;;  %v6099_v17 = vmul.f32 0.01, %v14233_v4 }
 0x5c5   : > { %v6132_v20 = vmax.f32 %v6068_v2, %v6100_v9  ;;  %v6134_v18 = vmax.f32 %v6070_v39, %v6102_v6  ;;  %7029 = vmatprep.subr.bf16.mxu0 %v11324_v47  ;;  %7175 = vmatprep.subr.bf16.mxu1 %v11327_v48  ;;  %v11336_v35 = vld [vmem:[%s15126_s13 + $0x2a4] ss:$16 sps:$4 sm:$0xff]   ;;  %v11339_v40 = vld [vmem:[%s15126_s13 + $0x2ac] ss:$16 sps:$4 sm:$0xff]  }
 0x5c6   : > { %v6133_v52 = vmax.f32 %v6069_v5, %v6101_v38  ;;  %v6135_v32 = vmax.f32 %v14237_v8, %v14246_v22  ;;  %v5871_v53 = vpop.f32.mrb[28].mxu0  ;;  %v6017_v26 = vpop.f32.mrb[28].mxu1  ;;  %v6131_v2 = vmax.f32 %v14233_v4, %v6099_v17  ;;  %v11342_v8 = vld [vmem:[%s15126_s13 + $0x2c4] ss:$16 sps:$4 sm:$0xff]   ;;  %v11346_v17 = vld [vmem:[%s15126_s13 + $0x2e0] ss:$16 sps:$4 sm:$0xff]  }
 0x5c7   : > { %v6072_v0 = vadd.f32 %v14139_v15, %v5871_v53  ;;  %v6074_v23 = vadd.f32 %v14142_v61, %v6017_v26  ;;  %v5873_v46 = vpop.f32.mrb[29].mxu0  ;;  %v6019_v24 = vpop.f32.mrb[29].mxu1  ;;  %v6152_v34 = vpack.c.bf16 %v6132_v20, %v6128_v10  ;;  %v14271_v36 = vpack.c.bf16 %v6134_v18, %v6130_v14  ;;  %v11340_v20 = vld [vmem:[%s15126_s13 + $0x2c0] ss:$16 sps:$4 sm:$0xff]   ;;  %v11343_v18 = vld [vmem:[%s15126_s13 + $0x2c8] ss:$16 sps:$4 sm:$0xff]  }
 0x5c8   : > { %v6073_v27 = vadd.f32 %v14145_v49, %v5873_v46  ;;  %v6075_v11 = vadd.f32 %v14148_v16, %v6019_v24  ;;  %7030 = vmatpush1.bf16.msra.mxu0 %v11322_v1  ;;  %7176 = vmatpush1.bf16.msra.mxu1 %v11325_v13  ;;  %v5875_v29 = vpop.f32.mrb[30].mxu0  ;;  %v6021_v28 = vpop.f32.mrb[30].mxu1  ;;  %v6153_v63 = vpack.c.bf16 %v6133_v52, %v6129_v57  ;;  %v11351_v57 = vld [vmem:[%s15126_s13 + $0x2ec] ss:$16 sps:$4 sm:$0xff]   ;;  %v11349_v52 = vld [vmem:[%s15126_s13 + $0x2e8] ss:$16 sps:$4 sm:$0xff]  }
 0x5c9   : > { %v6104_v44 = vmul.f32 0.01, %v6072_v0  ;;  %v6106_v41 = vmul.f32 0.01, %v6074_v23  ;;  %v6076_v43 = vadd.f32 %v14139_v15, %v5875_v29  ;;  %v6078_v37 = vadd.f32 %v14142_v61, %v6021_v28  ;;  %v5877_v42 = vpop.f32.mrb[31].mxu0  ;;  %v6023_v3 = vpop.f32.mrb[31].mxu1  ;;  %7031 = vmatprep.subr.bf16.mxu0 %v11330_v19  ;;  %7177 = vmatprep.subr.bf16.mxu1 %v11333_v7 }
 0x5ca   : > { %v6105_v47 = vmul.f32 0.01, %v6073_v27  ;;  %v6107_v48 = vmul.f32 0.01, %v6075_v11  ;;  %v6077_v31 = vadd.f32 %v14145_v49, %v5877_v42  ;;  %v6079_v58 = vadd.f32 %v14148_v16, %v6023_v3  ;;  %7002 = vmatprep.mubr.bf16.mxu0 %v6153_v63  ;;  %7148 = vmatprep.mubr.bf16.mxu1 %v6153_v63  ;;  %v11334_v15 = vld [vmem:[%s15126_s13 + $0x2a0] ss:$16 sps:$4 sm:$0xff]  }
 0x5cb   : > { %v6108_v39 = vmul.f32 0.01, %v6076_v43  ;;  %v6110_v30 = vmul.f32 0.01, %v6078_v37  ;;  %7003 = vmatmul.mubr.bf16.gmra.mrb[88].mxu0 %v6152_v34  ;;  %7149 = vmatmul.mubr.bf16.gmra.mrb[88].mxu1 %v6152_v34  ;;  %v6136_v61 = vmax.f32 %v6072_v0, %v6104_v44  ;;  %v6138_v59 = vmax.f32 %v6074_v23, %v6106_v41  ;;  %v11337_v49 = vld [vmem:[%s15126_s13 + $0x2a8] ss:$16 sps:$4 sm:$0xff]  }
 0x5cc   : > { %v6109_v60 = vmul.f32 0.01, %v6077_v31  ;;  %v6111_v5 = vmul.f32 0.01, %v6079_v58  ;;  %7032 = vmatpush1.bf16.msra.mxu0 %v11328_v25  ;;  %7178 = vmatpush1.bf16.msra.mxu1 %v11331_v33  ;;  %v14298_v9 = vpack.c.bf16 %v6135_v32, %v6131_v2  ;;  %v6137_v6 = vmax.f32 %v6073_v27, %v6105_v47  ;;  %v11348_v7 = vld [vmem:[%s15126_s13 + $0x2e4] ss:$16 sps:$4 sm:$0xff]  }
 0x5cd   : > { %v6140_v16 = vmax.f32 %v6076_v43, %v6108_v39  ;;  %v6142_v4 = vmax.f32 %v6078_v37, %v6110_v30  ;;  %7033 = vmatprep.subr.bf16.mxu0 %v11336_v35  ;;  %7179 = vmatprep.subr.bf16.mxu1 %v11339_v40  ;;  %v6139_v1 = vmax.f32 %v6075_v11, %v6107_v48  ;;  %v11354_v32 = vld [vmem:[%s15126_s13 + $0x304] ss:$16 sps:$4 sm:$0xff]   ;;  %v11357_v53 = vld [vmem:[%s15126_s13 + $0x30c] ss:$16 sps:$4 sm:$0xff]   ;;  %v11352_v26 = vld [vmem:[%s15126_s13 + $0x300] ss:$16 sps:$4 sm:$0xff]  }
 0x5ce   : > { %v6141_v10 = vmax.f32 %v6077_v31, %v6109_v60  ;;  %v6143_v14 = vmax.f32 %v6079_v58, %v6111_v5  ;;  %v11360_v0 = vld [vmem:[%s15126_s13 + $0x324] ss:$16 sps:$4 sm:$0xff]   ;;  %v11363_v23 = vld [vmem:[%s15126_s13 + $0x32c] ss:$16 sps:$4 sm:$0xff]   ;;  %v11358_v46 = vld [vmem:[%s15126_s13 + $0x320] ss:$16 sps:$4 sm:$0xff]  }
 0x5cf   : > { %v6156_v38 = vpack.c.bf16 %v6140_v16, %v6136_v61  ;;  %v14300_v22 = vpack.c.bf16 %v6142_v4, %v6138_v59  ;;  %v11361_v24 = vld [vmem:[%s15126_s13 + $0x328] ss:$16 sps:$4 sm:$0xff]   ;;  %v11366_v25 = vld [vmem:[%s15126_s13 + $0x344] ss:$16 sps:$4 sm:$0xff]   ;;  %v11369_v33 = vld [vmem:[%s15126_s13 + $0x34c] ss:$16 sps:$4 sm:$0xff]  }
 0x5d0   : > { %7034 = vmatpush1.bf16.msra.mxu0 %v11334_v15  ;;  %7180 = vmatpush1.bf16.msra.mxu1 %v11337_v49  ;;  %v6157_v13 = vpack.c.bf16 %v6141_v10, %v6137_v6  ;;  %v14308_v19 = vpack.c.bf16 %v6143_v14, %v6139_v1  ;;  %v11364_v34 = vld [vmem:[%s15126_s13 + $0x340] ss:$16 sps:$4 sm:$0xff]   ;;  %v11367_v27 = vld [vmem:[%s15126_s13 + $0x348] ss:$16 sps:$4 sm:$0xff]   ;;  %v11372_v11 = vld [vmem:[%s15126_s13 + $0x364] ss:$16 sps:$4 sm:$0xff]  }
 0x5d1   : > { %7035 = vmatprep.subr.bf16.mxu0 %v11342_v8  ;;  %7181 = vmatprep.subr.bf16.mxu1 %v11345_v62  ;;  %v11375_v29 = vld [vmem:[%s15126_s13 + $0x36c] ss:$16 sps:$4 sm:$0xff]   ;;  %v11370_v28 = vld [vmem:[%s15126_s13 + $0x360] ss:$16 sps:$4 sm:$0xff]   ;;  %v11373_v63 = vld [vmem:[%s15126_s13 + $0x368] ss:$16 sps:$4 sm:$0xff]  }
 0x5d2   : > { %7012 = vmatprep.mubr.bf16.mxu0 %v6157_v13  ;;  %7158 = vmatprep.mubr.bf16.mxu1 %v6157_v13  ;;  %v11378_v35 = vld [vmem:[%s15126_s13 + $0x384] ss:$16 sps:$4 sm:$0xff]   ;;  %v11381_v40 = vld [vmem:[%s15126_s13 + $0x38c] ss:$16 sps:$4 sm:$0xff]   ;;  %v11376_v44 = vld [vmem:[%s15126_s13 + $0x380] ss:$16 sps:$4 sm:$0xff]  }
 0x5d3   : > { %7013 = vmatmul.mubr.bf16.gmra.mrb[92].mxu0 %v6156_v38  ;;  %7159 = vmatmul.mubr.bf16.gmra.mrb[92].mxu1 %v6156_v38  ;;  %v11379_v41 = vld [vmem:[%s15126_s13 + $0x388] ss:$16 sps:$4 sm:$0xff]   ;;  %v11384_v43 = vld [vmem:[%s15126_s13 + $0x3a4] ss:$16 sps:$4 sm:$0xff]   ;;  %v11387_v37 = vld [vmem:[%s15126_s13 + $0x3ac] ss:$16 sps:$4 sm:$0xff]  }
 0x5d4   : > { %7036 = vmatpush1.bf16.msra.mxu0 %v11340_v20  ;;  %7182 = vmatpush1.bf16.msra.mxu1 %v11343_v18  ;;  %v11382_v42 = vld [vmem:[%s15126_s13 + $0x3a0] ss:$16 sps:$4 sm:$0xff]   ;;  %v11385_v3 = vld [vmem:[%s15126_s13 + $0x3a8] ss:$16 sps:$4 sm:$0xff]   ;;  %v11390_v47 = vld [vmem:[%s15126_s13 + $0x3c4] ss:$16 sps:$4 sm:$0xff]  }
 0x5d5   : > { %7055 = vmatprep.mubr.bf16.mxu0 %v14175_v21  ;;  %7201 = vmatprep.mubr.bf16.mxu1 %v14175_v21  ;;  %v11355_v21 = vld [vmem:[%s15126_s13 + $0x308] ss:$16 sps:$4 sm:$0xff]   ;;  %v11393_v48 = vld [vmem:[%s15126_s13 + $0x3cc] ss:$16 sps:$4 sm:$0xff]   ;;  %v11388_v31 = vld [vmem:[%s15126_s13 + $0x3c0] ss:$16 sps:$4 sm:$0xff]  }
 0x5d6   : > { %7037 = vmatprep.subr.bf16.mxu0 %v11348_v7  ;;  %7183 = vmatprep.subr.bf16.mxu1 %v11351_v57  ;;  %v11391_v58 = vld [vmem:[%s15126_s13 + $0x3c8] ss:$16 sps:$4 sm:$0xff]   ;;  %v11396_v2 = vld [vmem:[%s15126_s13 + $0x3e4] ss:$16 sps:$4 sm:$0xff]   ;;  %v11399_v39 = vld [vmem:[%s15126_s13 + $0x3ec] ss:$16 sps:$4 sm:$0xff]  }
 0x5d7   : > { %v11394_v30 = vld [vmem:[%s15126_s13 + $0x3e0] ss:$16 sps:$4 sm:$0xff]   ;;  %v11397_v15 = vld [vmem:[%s15126_s13 + $0x3e8] ss:$16 sps:$4 sm:$0xff]   ;;  %v11402_v61 = vld [vmem:[%s15128_s15 + $0x4] ss:$16 sps:$4 sm:$0xff]  }
 0x5d8   : > { %7038 = vmatpush1.bf16.msra.mxu0 %v11346_v17  ;;  %7184 = vmatpush1.bf16.msra.mxu1 %v11349_v52  ;;  %v11405_v59 = vld [vmem:[%s15128_s15 + $0xc] ss:$16 sps:$4 sm:$0xff]   ;;  %v11400_v60 = vld [vmem:[%s15128_s15] ss:$16 sps:$4 sm:$0xff]   ;;  %v11403_v5 = vld [vmem:[%s15128_s15 + $0x8] ss:$16 sps:$4 sm:$0xff]  }
 0x5d9   : > { %7039 = vmatprep.subr.bf16.mxu0 %v11354_v32  ;;  %7185 = vmatprep.subr.bf16.mxu1 %v11357_v53  ;;  %v11408_v49 = vld [vmem:[%s15128_s15 + $0x24] ss:$16 sps:$4 sm:$0xff]   ;;  %v11411_v16 = vld [vmem:[%s15128_s15 + $0x2c] ss:$16 sps:$4 sm:$0xff]   ;;  %v11406_v4 = vld [vmem:[%s15128_s15 + $0x20] ss:$16 sps:$4 sm:$0xff]  }
 0x5da   : > { %v11409_v8 = vld [vmem:[%s15128_s15 + $0x28] ss:$16 sps:$4 sm:$0xff]   ;;  %v11412_v62 = vld [vmem:[%s15128_s15 + $0x40] ss:$16 sps:$4 sm:$0xff]   ;;  %v11420_v1 = vld [vmem:[%s15128_s15 + $0x64] ss:$16 sps:$4 sm:$0xff]  }
 0x5db   : > { %v11415_v6 = vld [vmem:[%s15128_s15 + $0x48] ss:$16 sps:$4 sm:$0xff]   ;;  %v11423_v10 = vld [vmem:[%s15128_s15 + $0x6c] ss:$16 sps:$4 sm:$0xff]   ;;  %v11418_v14 = vld [vmem:[%s15128_s15 + $0x60] ss:$16 sps:$4 sm:$0xff]  }
 0x5dc   : > { %7040 = vmatpush1.bf16.msra.mxu0 %v11352_v26  ;;  %7186 = vmatpush1.bf16.msra.mxu1 %v11355_v21  ;;  %v11421_v38 = vld [vmem:[%s15128_s15 + $0x68] ss:$16 sps:$4 sm:$0xff]   ;;  %v11424_v13 = vld [vmem:[%s15128_s15 + $0x80] ss:$16 sps:$4 sm:$0xff]   ;;  %v11432_v18 = vld [vmem:[%s15128_s15 + $0xa4] ss:$16 sps:$4 sm:$0xff]  }
 0x5dd   : > { %7041 = vmatprep.subr.bf16.mxu0 %v11360_v0  ;;  %7187 = vmatprep.subr.bf16.mxu1 %v11363_v23  ;;  %v11427_v20 = vld [vmem:[%s15128_s15 + $0x88] ss:$16 sps:$4 sm:$0xff]   ;;  %v11435_v7 = vld [vmem:[%s15128_s15 + $0xac] ss:$16 sps:$4 sm:$0xff]   ;;  %v11430_v57 = vld [vmem:[%s15128_s15 + $0xa0] ss:$16 sps:$4 sm:$0xff]  }
 0x5de   : > { %v11433_v17 = vld [vmem:[%s15128_s15 + $0xa8] ss:$16 sps:$4 sm:$0xff]   ;;  %v11436_v52 = vld [vmem:[%s15128_s15 + $0xc0] ss:$16 sps:$4 sm:$0xff]   ;;  %v11444_v53 = vld [vmem:[%s15128_s15 + $0xe4] ss:$16 sps:$4 sm:$0xff]  }
 0x5df   : > { %v11439_v32 = vld [vmem:[%s15128_s15 + $0xc8] ss:$16 sps:$4 sm:$0xff]   ;;  %v11447_v26 = vld [vmem:[%s15128_s15 + $0xec] ss:$16 sps:$4 sm:$0xff]   ;;  %v11442_v21 = vld [vmem:[%s15128_s15 + $0xe0] ss:$16 sps:$4 sm:$0xff]  }
 0x5e0   : > { %7042 = vmatpush1.bf16.msra.mxu0 %v11358_v46  ;;  %7188 = vmatpush1.bf16.msra.mxu1 %v11361_v24  ;;  %v11445_v0 = vld [vmem:[%s15128_s15 + $0xe8] ss:$16 sps:$4 sm:$0xff]   ;;  %v11450_v23 = vld [vmem:[%s15128_s15 + $0x104] ss:$16 sps:$4 sm:$0xff]   ;;  %v11448_v46 = vld [vmem:[%s15128_s15 + $0x100] ss:$16 sps:$4 sm:$0xff]  }
 0x5e1   : > { %7043 = vmatprep.subr.bf16.mxu0 %v11366_v25  ;;  %7189 = vmatprep.subr.bf16.mxu1 %v11369_v33  ;;  %v11451_v24 = vld [vmem:[%s15128_s15 + $0x108] ss:$16 sps:$4 sm:$0xff]   ;;  %v11456_v25 = vld [vmem:[%s15128_s15 + $0x124] ss:$16 sps:$4 sm:$0xff]   ;;  %v11459_v33 = vld [vmem:[%s15128_s15 + $0x12c] ss:$16 sps:$4 sm:$0xff]  }
 0x5e4   : > { %7044 = vmatpush1.bf16.msra.mxu0 %v11364_v34  ;;  %7190 = vmatpush1.bf16.msra.mxu1 %v11367_v27  ;;  %v11454_v34 = vld [vmem:[%s15128_s15 + $0x120] ss:$16 sps:$4 sm:$0xff]   ;;  %v11457_v27 = vld [vmem:[%s15128_s15 + $0x128] ss:$16 sps:$4 sm:$0xff]  }
 0x5e5   : > { %7045 = vmatprep.subr.bf16.mxu0 %v11372_v11  ;;  %7191 = vmatprep.subr.bf16.mxu1 %v11375_v29  ;;  %v11462_v11 = vld [vmem:[%s15128_s15 + $0x144] ss:$16 sps:$4 sm:$0xff]   ;;  %v11465_v29 = vld [vmem:[%s15128_s15 + $0x14c] ss:$16 sps:$4 sm:$0xff]  }
 0x5e8   : > { %7046 = vmatpush1.bf16.msra.mxu0 %v11370_v28  ;;  %7192 = vmatpush1.bf16.msra.mxu1 %v11373_v63  ;;  %v11460_v28 = vld [vmem:[%s15128_s15 + $0x140] ss:$16 sps:$4 sm:$0xff]   ;;  %v11463_v63 = vld [vmem:[%s15128_s15 + $0x148] ss:$16 sps:$4 sm:$0xff]  }
 0x5e9   : > { %7047 = vmatprep.subr.bf16.mxu0 %v11378_v35  ;;  %7193 = vmatprep.subr.bf16.mxu1 %v11381_v40  ;;  %v11468_v35 = vld [vmem:[%s15128_s15 + $0x164] ss:$16 sps:$4 sm:$0xff]   ;;  %v11471_v40 = vld [vmem:[%s15128_s15 + $0x16c] ss:$16 sps:$4 sm:$0xff]  }
 0x5ec   : > { %7048 = vmatpush1.bf16.msra.mxu0 %v11376_v44  ;;  %7194 = vmatpush1.bf16.msra.mxu1 %v11379_v41  ;;  %v11466_v44 = vld [vmem:[%s15128_s15 + $0x160] ss:$16 sps:$4 sm:$0xff]   ;;  %v11469_v41 = vld [vmem:[%s15128_s15 + $0x168] ss:$16 sps:$4 sm:$0xff]  }
 0x5ed   : > { %7049 = vmatprep.subr.bf16.mxu0 %v11384_v43  ;;  %7195 = vmatprep.subr.bf16.mxu1 %v11387_v37  ;;  %v11474_v43 = vld [vmem:[%s15128_s15 + $0x184] ss:$16 sps:$4 sm:$0xff]   ;;  %v11477_v37 = vld [vmem:[%s15128_s15 + $0x18c] ss:$16 sps:$4 sm:$0xff]  }
 0x5f0   : > { %7050 = vmatpush1.bf16.msra.mxu0 %v11382_v42  ;;  %7196 = vmatpush1.bf16.msra.mxu1 %v11385_v3  ;;  %v11472_v42 = vld [vmem:[%s15128_s15 + $0x180] ss:$16 sps:$4 sm:$0xff]   ;;  %v11475_v3 = vld [vmem:[%s15128_s15 + $0x188] ss:$16 sps:$4 sm:$0xff]  }
 0x5f1   : > { %7051 = vmatprep.subr.bf16.mxu0 %v11390_v47  ;;  %7197 = vmatprep.subr.bf16.mxu1 %v11393_v48  ;;  %v11480_v47 = vld [vmem:[%s15128_s15 + $0x1a4] ss:$16 sps:$4 sm:$0xff]   ;;  %v11483_v48 = vld [vmem:[%s15128_s15 + $0x1ac] ss:$16 sps:$4 sm:$0xff]  }
 0x5f4   : > { %7052 = vmatpush1.bf16.msra.mxu0 %v11388_v31  ;;  %7198 = vmatpush1.bf16.msra.mxu1 %v11391_v58  ;;  %v11478_v31 = vld [vmem:[%s15128_s15 + $0x1a0] ss:$16 sps:$4 sm:$0xff]   ;;  %v11481_v58 = vld [vmem:[%s15128_s15 + $0x1a8] ss:$16 sps:$4 sm:$0xff]  }
 0x5f5   : > { %7053 = vmatprep.subr.bf16.mxu0 %v11396_v2  ;;  %7199 = vmatprep.subr.bf16.mxu1 %v11399_v39  ;;  %v11486_v2 = vld [vmem:[%s15128_s15 + $0x1c4] ss:$16 sps:$4 sm:$0xff]   ;;  %v11489_v39 = vld [vmem:[%s15128_s15 + $0x1cc] ss:$16 sps:$4 sm:$0xff]  }
 0x5f8   : > { %7054 = vmatpush1.bf16.msra.mxu0 %v11394_v30  ;;  %7200 = vmatpush1.bf16.msra.mxu1 %v11397_v15  ;;  %v11484_v30 = vld [vmem:[%s15128_s15 + $0x1c0] ss:$16 sps:$4 sm:$0xff]   ;;  %v11487_v15 = vld [vmem:[%s15128_s15 + $0x1c8] ss:$16 sps:$4 sm:$0xff]  }
 0x5f9   : > { %8112 = vmatprep.subr.bf16.mxu0 %v11402_v61  ;;  %8258 = vmatprep.subr.bf16.mxu1 %v11405_v59  ;;  %v11492_v61 = vld [vmem:[%s15128_s15 + $0x1e4] ss:$16 sps:$4 sm:$0xff]   ;;  %v11495_v59 = vld [vmem:[%s15128_s15 + $0x1ec] ss:$16 sps:$4 sm:$0xff]  }
 0x5fb   : > { %7056 = vmatmul.mubr.bf16.vlgmr.msra.gmra.mrb[80].mxu0 %v14158_v55  ;;  %7202 = vmatmul.mubr.bf16.vlgmr.msra.gmra.mrb[80].mxu1 %v14158_v55  ;;  %v11414_v55 = vld [vmem:[%s15128_s15 + $0x44] ss:$16 sps:$4 sm:$0xff]  }
 0x5fc   : > { %7065 = vmatprep.mubr.bf16.mxu0 %v14257_v12  ;;  %7211 = vmatprep.mubr.bf16.mxu1 %v14257_v12  ;;  %v11417_v12 = vld [vmem:[%s15128_s15 + $0x4c] ss:$16 sps:$4 sm:$0xff]  }
 0x5fd   : > { %8113 = vmatpush1.bf16.msra.mxu0 %v11400_v60  ;;  %8259 = vmatpush1.bf16.msra.mxu1 %v11403_v5  ;;  %v11490_v60 = vld [vmem:[%s15128_s15 + $0x1e0] ss:$16 sps:$4 sm:$0xff]   ;;  %v11493_v5 = vld [vmem:[%s15128_s15 + $0x1e8] ss:$16 sps:$4 sm:$0xff]  }
 0x5fe   : > { %8114 = vmatprep.subr.bf16.mxu0 %v11408_v49  ;;  %8260 = vmatprep.subr.bf16.mxu1 %v11411_v16  ;;  %v11498_v49 = vld [vmem:[%s15128_s15 + $0x204] ss:$16 sps:$4 sm:$0xff]   ;;  %v11501_v16 = vld [vmem:[%s15128_s15 + $0x20c] ss:$16 sps:$4 sm:$0xff]  }
 0x601   : > { %8115 = vmatpush1.bf16.msra.mxu0 %v11406_v4  ;;  %8261 = vmatpush1.bf16.msra.mxu1 %v11409_v8  ;;  %v6288_v4 = vld [vmem:[%s15127_s14] sm:$0xf] }
 0x602   : > { %8116 = vmatprep.subr.bf16.mxu0 %v11414_v55  ;;  %8262 = vmatprep.subr.bf16.mxu1 %v11417_v12  ;;  %v14636_v8 = vrot.slane %v6288_v4, %v12176_v50  ;;  %v14639_v55 = vrot.slane %v6288_v4, %v12186_v54  ;;  %v14642_v12 = vrot.slane %v6288_v4, %v12178_v51 }
 0x603   : > { %7066 = vmatmul.mubr.bf16.gmra.mrb[84].mxu0 %v14214_v45  ;;  %7212 = vmatmul.mubr.bf16.gmra.mrb[84].mxu1 %v14214_v45  ;;  %v11426_v45 = vld [vmem:[%s15128_s15 + $0x84] ss:$16 sps:$4 sm:$0xff]  }
 0x604   : > { %7075 = vmatprep.mubr.bf16.mxu0 %v14298_v9  ;;  %7221 = vmatprep.mubr.bf16.mxu1 %v14298_v9  ;;  %v11429_v9 = vld [vmem:[%s15128_s15 + $0x8c] ss:$16 sps:$4 sm:$0xff]  }
 0x605   : > { %8117 = vmatpush1.bf16.msra.mxu0 %v11412_v62  ;;  %8263 = vmatpush1.bf16.msra.mxu1 %v11415_v6  ;;  %v14645_v62 = vrot.slane %v6288_v4, %v12188_v56 }
 0x606   : > { %8118 = vmatprep.subr.bf16.mxu0 %v11420_v1  ;;  %8264 = vmatprep.subr.bf16.mxu1 %v11423_v10 }
 0x609   : > { %8119 = vmatpush1.bf16.msra.mxu0 %v11418_v14  ;;  %8265 = vmatpush1.bf16.msra.mxu1 %v11421_v38 }
 0x60a   : > { %8120 = vmatprep.subr.bf16.mxu0 %v11426_v45  ;;  %8266 = vmatprep.subr.bf16.mxu1 %v11429_v9 }
 0x60b   : > { %7076 = vmatmul.mubr.bf16.gmra.mrb[88].mxu0 %v14271_v36  ;;  %7222 = vmatmul.mubr.bf16.gmra.mrb[88].mxu1 %v14271_v36  ;;  %v11438_v36 = vld [vmem:[%s15128_s15 + $0xc4] ss:$16 sps:$4 sm:$0xff]  }
 0x60c   : > { %7085 = vmatprep.mubr.bf16.mxu0 %v14308_v19  ;;  %7231 = vmatprep.mubr.bf16.mxu1 %v14308_v19  ;;  %v11441_v19 = vld [vmem:[%s15128_s15 + $0xcc] ss:$16 sps:$4 sm:$0xff]  }
 0x60d   : > { %8121 = vmatpush1.bf16.msra.mxu0 %v11424_v13  ;;  %8267 = vmatpush1.bf16.msra.mxu1 %v11427_v20 }
 0x60e   : > { %8122 = vmatprep.subr.bf16.mxu0 %v11432_v18  ;;  %8268 = vmatprep.subr.bf16.mxu1 %v11435_v7 }
 0x611   : > { %8123 = vmatpush1.bf16.msra.mxu0 %v11430_v57  ;;  %8269 = vmatpush1.bf16.msra.mxu1 %v11433_v17 }
 0x612   : > { %8124 = vmatprep.subr.bf16.mxu0 %v11438_v36  ;;  %8270 = vmatprep.subr.bf16.mxu1 %v11441_v19 }
 0x613   : > { %7086 = vmatmul.mubr.bf16.gmra.mrb[92].mxu0 %v14300_v22  ;;  %7232 = vmatmul.mubr.bf16.gmra.mrb[92].mxu1 %v14300_v22  ;;  %v11453_v22 = vld [vmem:[%s15128_s15 + $0x10c] ss:$16 sps:$4 sm:$0xff]  }
 0x615   : > { %8125 = vmatpush1.bf16.msra.mxu0 %v11436_v52  ;;  %8271 = vmatpush1.bf16.msra.mxu1 %v11439_v32 }
 0x616   : > { %8126 = vmatprep.subr.bf16.mxu0 %v11444_v53  ;;  %8272 = vmatprep.subr.bf16.mxu1 %v11447_v26 }
 0x619   : > { %8127 = vmatpush1.bf16.msra.mxu0 %v11442_v21  ;;  %8273 = vmatpush1.bf16.msra.mxu1 %v11445_v0 }
 0x61a   : > { %8128 = vmatprep.subr.bf16.mxu0 %v11450_v23  ;;  %8274 = vmatprep.subr.bf16.mxu1 %v11453_v22 }
 0x61d   : > { %8129 = vmatpush1.bf16.msra.mxu0 %v11448_v46  ;;  %8275 = vmatpush1.bf16.msra.mxu1 %v11451_v24 }
 0x61e   : > { %8130 = vmatprep.subr.bf16.mxu0 %v11456_v25  ;;  %8276 = vmatprep.subr.bf16.mxu1 %v11459_v33 }
 0x621   : > { %8131 = vmatpush1.bf16.msra.mxu0 %v11454_v34  ;;  %8277 = vmatpush1.bf16.msra.mxu1 %v11457_v27 }
 0x622   : > { %8132 = vmatprep.subr.bf16.mxu0 %v11462_v11  ;;  %8278 = vmatprep.subr.bf16.mxu1 %v11465_v29 }
 0x625   : > { %8133 = vmatpush1.bf16.msra.mxu0 %v11460_v28  ;;  %8279 = vmatpush1.bf16.msra.mxu1 %v11463_v63 }
 0x626   : > { %8134 = vmatprep.subr.bf16.mxu0 %v11468_v35  ;;  %8280 = vmatprep.subr.bf16.mxu1 %v11471_v40 }
 0x629   : > { %8135 = vmatpush1.bf16.msra.mxu0 %v11466_v44  ;;  %8281 = vmatpush1.bf16.msra.mxu1 %v11469_v41 }
 0x62a   : > { %8136 = vmatprep.subr.bf16.mxu0 %v11474_v43  ;;  %8282 = vmatprep.subr.bf16.mxu1 %v11477_v37 }
 0x62d   : > { %8137 = vmatpush1.bf16.msra.mxu0 %v11472_v42  ;;  %8283 = vmatpush1.bf16.msra.mxu1 %v11475_v3  ;;  %v11496_v3 = vld [vmem:[%s15128_s15 + $0x200] ss:$16 sps:$4 sm:$0xff]  }
 0x62e   : > { %8138 = vmatprep.subr.bf16.mxu0 %v11480_v47  ;;  %8284 = vmatprep.subr.bf16.mxu1 %v11483_v48  ;;  %v11499_v47 = vld [vmem:[%s15128_s15 + $0x208] ss:$16 sps:$4 sm:$0xff]  }
 0x631   : > { %8139 = vmatpush1.bf16.msra.mxu0 %v11478_v31  ;;  %8285 = vmatpush1.bf16.msra.mxu1 %v11481_v58 }
 0x632   : > { %8140 = vmatprep.subr.bf16.mxu0 %v11486_v2  ;;  %8286 = vmatprep.subr.bf16.mxu1 %v11489_v39  ;;  %v11504_v39 = vld [vmem:[%s15128_s15 + $0x224] ss:$16 sps:$4 sm:$0xff]  }
 0x635   : > { %8141 = vmatpush1.bf16.msra.mxu0 %v11484_v30  ;;  %8287 = vmatpush1.bf16.msra.mxu1 %v11487_v15  ;;  %v11507_v30 = vld [vmem:[%s15128_s15 + $0x22c] ss:$16 sps:$4 sm:$0xff]  }
 0x636   : > { %8142 = vmatprep.subr.bf16.mxu0 %v11492_v61  ;;  %8288 = vmatprep.subr.bf16.mxu1 %v11495_v59 }
 0x639   : > { %8143 = vmatpush1.bf16.msra.mxu0 %v11490_v60  ;;  %8289 = vmatpush1.bf16.msra.mxu1 %v11493_v5 }
 0x63a   : > { %8185 = vmatprep.subr.bf16.mxu0 %v11498_v49  ;;  %8331 = vmatprep.subr.bf16.mxu1 %v11501_v16 }
 0x6ce   : > { %v7057_v6 = vpop.f32.mrb[80].mxu0  ;;  %v7203_v1 = vpop.f32.mrb[80].mxu1 }
 0x6cf   : > { %v10084_v10 = vadd.f32 %v7057_v6, %v14636_v8  ;;  %v10100_v14 = vadd.f32 %v7203_v1, %v14639_v55  ;;  %v7059_v38 = vpop.f32.mrb[81].mxu0  ;;  %v7205_v45 = vpop.f32.mrb[81].mxu1 }
 0x6d0   : > { %v10085_v9 = vadd.f32 %v7059_v38, %v14642_v12  ;;  %v10101_v13 = vadd.f32 %v7205_v45, %v14645_v62  ;;  %v7061_v20 = vpop.f32.mrb[82].mxu0  ;;  %v7207_v18 = vpop.f32.mrb[82].mxu1  ;;  %v11502_v45 = vld [vmem:[%s15128_s15 + $0x220] ss:$16 sps:$4 sm:$0xff]  }
 0x6d1   : > { %v7242_v7 = vmul.f32 0.01, %v10084_v10  ;;  %v7244_v57 = vmul.f32 0.01, %v10100_v14  ;;  %v10086_v17 = vadd.f32 %v7061_v20, %v14636_v8  ;;  %v10102_v36 = vadd.f32 %v7207_v18, %v14639_v55  ;;  %v7063_v19 = vpop.f32.mrb[83].mxu0  ;;  %v7209_v52 = vpop.f32.mrb[83].mxu1 }
 0x6d2   : > { %v7243_v32 = vmul.f32 0.01, %v10085_v9  ;;  %v7245_v53 = vmul.f32 0.01, %v10101_v13  ;;  %v10087_v26 = vadd.f32 %v7063_v19, %v14642_v12  ;;  %v10103_v21 = vadd.f32 %v7209_v52, %v14645_v62  ;;  %v11505_v18 = vld [vmem:[%s15128_s15 + $0x228] ss:$16 sps:$4 sm:$0xff]  }
 0x6d3   : > { %v7246_v0 = vmul.f32 0.01, %v10086_v17  ;;  %v7248_v23 = vmul.f32 0.01, %v10102_v36  ;;  %v7274_v24 = vmax.f32 %v10084_v10, %v7242_v7  ;;  %v7276_v25 = vmax.f32 %v10100_v14, %v7244_v57  ;;  %v11513_v19 = vld [vmem:[%s15128_s15 + $0x24c] ss:$16 sps:$4 sm:$0xff]  }
 0x6d4   : > { %v7247_v22 = vmul.f32 0.01, %v10087_v26  ;;  %v7249_v46 = vmul.f32 0.01, %v10103_v21  ;;  %v7275_v27 = vmax.f32 %v10085_v9, %v7243_v32  ;;  %v7277_v11 = vmax.f32 %v10101_v13, %v7245_v53 }
 0x6d5   : > { %v7278_v33 = vmax.f32 %v10086_v17, %v7246_v0  ;;  %v7280_v34 = vmax.f32 %v10102_v36, %v7248_v23  ;;  %v11510_v36 = vld [vmem:[%s15128_s15 + $0x244] ss:$16 sps:$4 sm:$0xff]  }
 0x6d6   : > { %v7279_v29 = vmax.f32 %v10087_v26, %v7247_v22  ;;  %v7281_v28 = vmax.f32 %v10103_v21, %v7249_v46  ;;  %v7067_v63 = vpop.f32.mrb[84].mxu0  ;;  %v7213_v35 = vpop.f32.mrb[84].mxu1 }
 0x6d7   : > { %v7306_v40 = vpack.c.bf16 %v7278_v33, %v7274_v24  ;;  %v14655_v44 = vpack.c.bf16 %v7280_v34, %v7276_v25  ;;  %v10088_v41 = vadd.f32 %v7067_v63, %v14636_v8  ;;  %v10104_v43 = vadd.f32 %v7213_v35, %v14639_v55  ;;  %v7069_v37 = vpop.f32.mrb[85].mxu0  ;;  %v7215_v42 = vpop.f32.mrb[85].mxu1  ;;  %v11508_v24 = vld [vmem:[%s15128_s15 + $0x240] ss:$16 sps:$4 sm:$0xff]   ;;  %v11511_v25 = vld [vmem:[%s15128_s15 + $0x248] ss:$16 sps:$4 sm:$0xff]  }
 0x6d8   : > { %v10089_v48 = vadd.f32 %v7069_v37, %v14642_v12  ;;  %v7071_v31 = vpop.f32.mrb[86].mxu0  ;;  %v7217_v58 = vpop.f32.mrb[86].mxu1  ;;  %v7307_v2 = vpack.c.bf16 %v7279_v29, %v7275_v27  ;;  %v14672_v15 = vpack.c.bf16 %v7281_v28, %v7277_v11  ;;  %v14677_v6 = vadd.f32 %v7215_v42, %v14645_v62  ;;  %v11516_v35 = vld [vmem:[%s15128_s15 + $0x264] ss:$16 sps:$4 sm:$0xff]  }
 0x6d9   : > { %v7250_v61 = vmul.f32 0.01, %v10088_v41  ;;  %v7252_v59 = vmul.f32 0.01, %v10104_v43  ;;  %v10090_v60 = vadd.f32 %v7071_v31, %v14636_v8  ;;  %v10106_v5 = vadd.f32 %v7217_v58, %v14639_v55  ;;  %v7073_v49 = vpop.f32.mrb[87].mxu0  ;;  %v7219_v16 = vpop.f32.mrb[87].mxu1 }
 0x6da   : > { %v7251_v4 = vmul.f32 0.01, %v10089_v48  ;;  %v10091_v1 = vadd.f32 %v7073_v49, %v14642_v12  ;;  %v14681_v10 = vadd.f32 %v7219_v16, %v14645_v62  ;;  %8144 = vmatprep.mubr.bf16.mxu0 %v7307_v2  ;;  %8290 = vmatprep.mubr.bf16.mxu1 %v7307_v2  ;;  %v7253_v32 = vmul.f32 0.01, %v14677_v6 }
 0x6db   : > { %v7254_v14 = vmul.f32 0.01, %v10090_v60  ;;  %v7256_v38 = vmul.f32 0.01, %v10106_v5  ;;  %8145 = vmatmul.mubr.bf16.vlgmr.msra.gmra.mrb[96].mxu0 %v7306_v40  ;;  %8291 = vmatmul.mubr.bf16.vlgmr.msra.gmra.mrb[96].mxu1 %v7306_v40  ;;  %v7282_v9 = vmax.f32 %v10088_v41, %v7250_v61  ;;  %v7284_v7 = vmax.f32 %v10104_v43, %v7252_v59  ;;  %v11519_v40 = vld [vmem:[%s15128_s15 + $0x26c] ss:$16 sps:$4 sm:$0xff]  }
 0x6dc   : > { %v7255_v13 = vmul.f32 0.01, %v10091_v1  ;;  %v14687_v20 = vmul.f32 0.01, %v14681_v10  ;;  %8186 = vmatpush1.bf16.msra.mxu0 %v11496_v3  ;;  %8332 = vmatpush1.bf16.msra.mxu1 %v11499_v47  ;;  %v7283_v52 = vmax.f32 %v10089_v48, %v7251_v4  ;;  %v11514_v59 = vld [vmem:[%s15128_s15 + $0x260] ss:$16 sps:$4 sm:$0xff]  }
 0x6dd   : > { %v7286_v57 = vmax.f32 %v10090_v60, %v7254_v14  ;;  %v7288_v17 = vmax.f32 %v10106_v5, %v7256_v38  ;;  %8187 = vmatprep.subr.bf16.mxu0 %v11504_v39  ;;  %8333 = vmatprep.subr.bf16.mxu1 %v11507_v30  ;;  %v7285_v39 = vmax.f32 %v14677_v6, %v7253_v32  ;;  %v11517_v4 = vld [vmem:[%s15128_s15 + $0x268] ss:$16 sps:$4 sm:$0xff]   ;;  %v11525_v14 = vld [vmem:[%s15128_s15 + $0x28c] ss:$16 sps:$4 sm:$0xff]  }
 0x6de   : > { %v7287_v53 = vmax.f32 %v10091_v1, %v7255_v13  ;;  %v7077_v26 = vpop.f32.mrb[88].mxu0  ;;  %v7223_v21 = vpop.f32.mrb[88].mxu1  ;;  %v7289_v27 = vmax.f32 %v14681_v10, %v14687_v20  ;;  %v11522_v10 = vld [vmem:[%s15128_s15 + $0x284] ss:$16 sps:$4 sm:$0xff]   ;;  %v11523_v32 = vld [vmem:[%s15128_s15 + $0x288] ss:$16 sps:$4 sm:$0xff]  }
 0x6df   : > { %v14700_v0 = vadd.f32 %v7077_v26, %v14636_v8  ;;  %v14703_v23 = vadd.f32 %v7223_v21, %v14639_v55  ;;  %v7079_v22 = vpop.f32.mrb[89].mxu0  ;;  %v7225_v46 = vpop.f32.mrb[89].mxu1  ;;  %v7310_v33 = vpack.c.bf16 %v7286_v57, %v7282_v9  ;;  %v14711_v34 = vpack.c.bf16 %v7288_v17, %v7284_v7 }
 0x6e0   : > { %v14716_v11 = vadd.f32 %v7079_v22, %v14642_v12  ;;  %8188 = vmatpush1.bf16.msra.mxu0 %v11502_v45  ;;  %8334 = vmatpush1.bf16.msra.mxu1 %v11505_v18  ;;  %v7081_v29 = vpop.f32.mrb[90].mxu0  ;;  %v7227_v28 = vpop.f32.mrb[90].mxu1  ;;  %v7311_v63 = vpack.c.bf16 %v7287_v53, %v7283_v52  ;;  %v14730_v31 = vadd.f32 %v7225_v46, %v14645_v62  ;;  %v11520_v52 = vld [vmem:[%s15128_s15 + $0x280] ss:$16 sps:$4 sm:$0xff]  }
 0x6e1   : > { %v7258_v41 = vmul.f32 0.01, %v14700_v0  ;;  %v7260_v43 = vmul.f32 0.01, %v14703_v23  ;;  %v10094_v37 = vadd.f32 %v7081_v29, %v14636_v8  ;;  %v10110_v42 = vadd.f32 %v7227_v28, %v14639_v55  ;;  %v7083_v3 = vpop.f32.mrb[91].mxu0  ;;  %v7229_v47 = vpop.f32.mrb[91].mxu1  ;;  %8189 = vmatprep.subr.bf16.mxu0 %v11510_v36  ;;  %8335 = vmatprep.subr.bf16.mxu1 %v11513_v19 }
 0x6e2   : > { %v7259_v48 = vmul.f32 0.01, %v14716_v11  ;;  %v10095_v58 = vadd.f32 %v7083_v3, %v14642_v12  ;;  %v14734_v2 = vadd.f32 %v7229_v47, %v14645_v62  ;;  %8154 = vmatprep.mubr.bf16.mxu0 %v7311_v63  ;;  %8300 = vmatprep.mubr.bf16.mxu1 %v7311_v63  ;;  %v14754_v38 = vpack.c.bf16 %v7289_v27, %v7285_v39  ;;  %v11537_v39 = vld [vmem:[%s15128_s15 + $0x2cc] ss:$16 sps:$4 sm:$0xff]  }
 0x6e3   : > { %v7262_v30 = vmul.f32 0.01, %v10094_v37  ;;  %v7264_v61 = vmul.f32 0.01, %v10110_v42  ;;  %8155 = vmatmul.mubr.bf16.gmra.mrb[100].mxu0 %v7310_v33  ;;  %8301 = vmatmul.mubr.bf16.gmra.mrb[100].mxu1 %v7310_v33  ;;  %v7290_v60 = vmax.f32 %v14700_v0, %v7258_v41  ;;  %v7292_v5 = vmax.f32 %v14703_v23, %v7260_v43 }
 0x6e4   : > { %v7263_v49 = vmul.f32 0.01, %v10095_v58  ;;  %v14743_v16 = vmul.f32 0.01, %v14734_v2  ;;  %8190 = vmatpush1.bf16.msra.mxu0 %v11508_v24  ;;  %8336 = vmatpush1.bf16.msra.mxu1 %v11511_v25  ;;  %v7291_v45 = vmax.f32 %v14716_v11, %v7259_v48  ;;  %v7261_v9 = vmul.f32 0.01, %v14730_v31 }
 0x6e5   : > { %v7294_v6 = vmax.f32 %v10094_v37, %v7262_v30  ;;  %v7296_v1 = vmax.f32 %v10110_v42, %v7264_v61  ;;  %8191 = vmatprep.subr.bf16.mxu0 %v11516_v35  ;;  %8337 = vmatprep.subr.bf16.mxu1 %v11519_v40  ;;  %v11528_v24 = vld [vmem:[%s15128_s15 + $0x2a4] ss:$16 sps:$4 sm:$0xff]   ;;  %v11531_v25 = vld [vmem:[%s15128_s15 + $0x2ac] ss:$16 sps:$4 sm:$0xff]  }
 0x6e6   : > { %v7295_v13 = vmax.f32 %v10095_v58, %v7263_v49  ;;  %v7297_v20 = vmax.f32 %v14734_v2, %v14743_v16  ;;  %v7087_v18 = vpop.f32.mrb[92].mxu0  ;;  %v7233_v7 = vpop.f32.mrb[92].mxu1  ;;  %v7293_v37 = vmax.f32 %v14730_v31, %v7261_v9  ;;  %v11534_v2 = vld [vmem:[%s15128_s15 + $0x2c4] ss:$16 sps:$4 sm:$0xff]   ;;  %v11538_v9 = vld [vmem:[%s15128_s15 + $0x2e0] ss:$16 sps:$4 sm:$0xff]  }
 0x6e7   : > { %v10096_v57 = vadd.f32 %v7087_v18, %v14636_v8  ;;  %v10112_v17 = vadd.f32 %v7233_v7, %v14639_v55  ;;  %v7089_v36 = vpop.f32.mrb[93].mxu0  ;;  %v7235_v19 = vpop.f32.mrb[93].mxu1  ;;  %v7314_v53 = vpack.c.bf16 %v7294_v6, %v7290_v60  ;;  %v14768_v26 = vpack.c.bf16 %v7296_v1, %v7292_v5  ;;  %v11532_v6 = vld [vmem:[%s15128_s15 + $0x2c0] ss:$16 sps:$4 sm:$0xff]   ;;  %v11535_v1 = vld [vmem:[%s15128_s15 + $0x2c8] ss:$16 sps:$4 sm:$0xff]  }
 0x6e8   : > { %v10097_v21 = vadd.f32 %v7089_v36, %v14642_v12  ;;  %v10113_v0 = vadd.f32 %v7235_v19, %v14645_v62  ;;  %8192 = vmatpush1.bf16.msra.mxu0 %v11514_v59  ;;  %8338 = vmatpush1.bf16.msra.mxu1 %v11517_v4  ;;  %v7091_v23 = vpop.f32.mrb[94].mxu0  ;;  %v7237_v22 = vpop.f32.mrb[94].mxu1  ;;  %v7315_v46 = vpack.c.bf16 %v7295_v13, %v7291_v45  ;;  %v11543_v45 = vld [vmem:[%s15128_s15 + $0x2ec] ss:$16 sps:$4 sm:$0xff]   ;;  %v11541_v13 = vld [vmem:[%s15128_s15 + $0x2e8] ss:$16 sps:$4 sm:$0xff]  }
 0x6e9   : > { %v7266_v33 = vmul.f32 0.01, %v10096_v57  ;;  %v7268_v27 = vmul.f32 0.01, %v10112_v17  ;;  %v10098_v11 = vadd.f32 %v7091_v23, %v14636_v8  ;;  %v10114_v29 = vadd.f32 %v7237_v22, %v14639_v55  ;;  %v7093_v28 = vpop.f32.mrb[95].mxu0  ;;  %v7239_v63 = vpop.f32.mrb[95].mxu1  ;;  %8193 = vmatprep.subr.bf16.mxu0 %v11522_v10  ;;  %8339 = vmatprep.subr.bf16.mxu1 %v11525_v14 }
 0x6ea   : > { %v7267_v35 = vmul.f32 0.01, %v10097_v21  ;;  %v7269_v40 = vmul.f32 0.01, %v10113_v0  ;;  %v10099_v41 = vadd.f32 %v7093_v28, %v14642_v12  ;;  %v10115_v43 = vadd.f32 %v7239_v63, %v14645_v62  ;;  %8164 = vmatprep.mubr.bf16.mxu0 %v7315_v46  ;;  %8310 = vmatprep.mubr.bf16.mxu1 %v7315_v46  ;;  %v11526_v8 = vld [vmem:[%s15128_s15 + $0x2a0] ss:$16 sps:$4 sm:$0xff]  }
 0x6eb   : > { %v7270_v42 = vmul.f32 0.01, %v10098_v11  ;;  %v7272_v3 = vmul.f32 0.01, %v10114_v29  ;;  %8165 = vmatmul.mubr.bf16.gmra.mrb[104].mxu0 %v7314_v53  ;;  %8311 = vmatmul.mubr.bf16.gmra.mrb[104].mxu1 %v7314_v53  ;;  %v7298_v55 = vmax.f32 %v10096_v57, %v7266_v33  ;;  %v7300_v47 = vmax.f32 %v10112_v17, %v7268_v27  ;;  %v11529_v12 = vld [vmem:[%s15128_s15 + $0x2a8] ss:$16 sps:$4 sm:$0xff]  }
 0x6ec   : > { %v7271_v48 = vmul.f32 0.01, %v10099_v41  ;;  %v7273_v58 = vmul.f32 0.01, %v10115_v43  ;;  %8194 = vmatpush1.bf16.msra.mxu0 %v11520_v52  ;;  %8340 = vmatpush1.bf16.msra.mxu1 %v11523_v32  ;;  %v14795_v30 = vpack.c.bf16 %v7297_v20, %v7293_v37  ;;  %v7299_v61 = vmax.f32 %v10097_v21, %v7267_v35  ;;  %v11540_v14 = vld [vmem:[%s15128_s15 + $0x2e4] ss:$16 sps:$4 sm:$0xff]  }
 0x6ed   : > { %v7302_v62 = vmax.f32 %v10098_v11, %v7270_v42  ;;  %v7304_v31 = vmax.f32 %v10114_v29, %v7272_v3  ;;  %8195 = vmatprep.subr.bf16.mxu0 %v11528_v24  ;;  %8341 = vmatprep.subr.bf16.mxu1 %v11531_v25  ;;  %v7301_v59 = vmax.f32 %v10113_v0, %v7269_v40  ;;  %v11546_v20 = vld [vmem:[%s15128_s15 + $0x304] ss:$16 sps:$4 sm:$0xff]   ;;  %v11549_v18 = vld [vmem:[%s15128_s15 + $0x30c] ss:$16 sps:$4 sm:$0xff]   ;;  %v11544_v7 = vld [vmem:[%s15128_s15 + $0x300] ss:$16 sps:$4 sm:$0xff]  }
 0x6ee   : > { %v7303_v60 = vmax.f32 %v10099_v41, %v7271_v48  ;;  %v7305_v5 = vmax.f32 %v10115_v43, %v7273_v58  ;;  %v11552_v57 = vld [vmem:[%s15128_s15 + $0x324] ss:$16 sps:$4 sm:$0xff]   ;;  %v11555_v17 = vld [vmem:[%s15128_s15 + $0x32c] ss:$16 sps:$4 sm:$0xff]   ;;  %v11550_v36 = vld [vmem:[%s15128_s15 + $0x320] ss:$16 sps:$4 sm:$0xff]  }
 0x6ef   : > { %v7318_v49 = vpack.c.bf16 %v7302_v62, %v7298_v55  ;;  %v14797_v16 = vpack.c.bf16 %v7304_v31, %v7300_v47  ;;  %v11553_v19 = vld [vmem:[%s15128_s15 + $0x328] ss:$16 sps:$4 sm:$0xff]   ;;  %v11558_v52 = vld [vmem:[%s15128_s15 + $0x344] ss:$16 sps:$4 sm:$0xff]   ;;  %v11561_v32 = vld [vmem:[%s15128_s15 + $0x34c] ss:$16 sps:$4 sm:$0xff]  }
 0x6f0   : > { %8196 = vmatpush1.bf16.msra.mxu0 %v11526_v8  ;;  %8342 = vmatpush1.bf16.msra.mxu1 %v11529_v12  ;;  %v7319_v4 = vpack.c.bf16 %v7303_v60, %v7299_v61  ;;  %v14805_v10 = vpack.c.bf16 %v7305_v5, %v7301_v59  ;;  %v11556_v53 = vld [vmem:[%s15128_s15 + $0x340] ss:$16 sps:$4 sm:$0xff]   ;;  %v11559_v21 = vld [vmem:[%s15128_s15 + $0x348] ss:$16 sps:$4 sm:$0xff]   ;;  %v11564_v0 = vld [vmem:[%s15128_s15 + $0x364] ss:$16 sps:$4 sm:$0xff]  }
 0x6f1   : > { %8197 = vmatprep.subr.bf16.mxu0 %v11534_v2  ;;  %8343 = vmatprep.subr.bf16.mxu1 %v11537_v39  ;;  %v11567_v23 = vld [vmem:[%s15128_s15 + $0x36c] ss:$16 sps:$4 sm:$0xff]   ;;  %v11562_v22 = vld [vmem:[%s15128_s15 + $0x360] ss:$16 sps:$4 sm:$0xff]   ;;  %v11565_v46 = vld [vmem:[%s15128_s15 + $0x368] ss:$16 sps:$4 sm:$0xff]  }
 0x6f2   : > { %8174 = vmatprep.mubr.bf16.mxu0 %v7319_v4  ;;  %8320 = vmatprep.mubr.bf16.mxu1 %v7319_v4  ;;  %v11570_v24 = vld [vmem:[%s15128_s15 + $0x384] ss:$16 sps:$4 sm:$0xff]   ;;  %v11573_v25 = vld [vmem:[%s15128_s15 + $0x38c] ss:$16 sps:$4 sm:$0xff]   ;;  %v11568_v33 = vld [vmem:[%s15128_s15 + $0x380] ss:$16 sps:$4 sm:$0xff]  }
 0x6f3   : > { %8175 = vmatmul.mubr.bf16.gmra.mrb[108].mxu0 %v7318_v49  ;;  %8321 = vmatmul.mubr.bf16.gmra.mrb[108].mxu1 %v7318_v49  ;;  %v11571_v27 = vld [vmem:[%s15128_s15 + $0x388] ss:$16 sps:$4 sm:$0xff]   ;;  %v11576_v11 = vld [vmem:[%s15128_s15 + $0x3a4] ss:$16 sps:$4 sm:$0xff]   ;;  %v11579_v29 = vld [vmem:[%s15128_s15 + $0x3ac] ss:$16 sps:$4 sm:$0xff]  }
 0x6f4   : > { %8198 = vmatpush1.bf16.msra.mxu0 %v11532_v6  ;;  %8344 = vmatpush1.bf16.msra.mxu1 %v11535_v1  ;;  %v11574_v28 = vld [vmem:[%s15128_s15 + $0x3a0] ss:$16 sps:$4 sm:$0xff]   ;;  %v11577_v63 = vld [vmem:[%s15128_s15 + $0x3a8] ss:$16 sps:$4 sm:$0xff]   ;;  %v11582_v35 = vld [vmem:[%s15128_s15 + $0x3c4] ss:$16 sps:$4 sm:$0xff]  }
 0x6f5   : > { %8217 = vmatprep.mubr.bf16.mxu0 %v14672_v15  ;;  %8363 = vmatprep.mubr.bf16.mxu1 %v14672_v15  ;;  %v11547_v15 = vld [vmem:[%s15128_s15 + $0x308] ss:$16 sps:$4 sm:$0xff]   ;;  %v11585_v40 = vld [vmem:[%s15128_s15 + $0x3cc] ss:$16 sps:$4 sm:$0xff]   ;;  %v11580_v41 = vld [vmem:[%s15128_s15 + $0x3c0] ss:$16 sps:$4 sm:$0xff]  }
 0x6f6   : > { %8199 = vmatprep.subr.bf16.mxu0 %v11540_v14  ;;  %8345 = vmatprep.subr.bf16.mxu1 %v11543_v45  ;;  %v11583_v43 = vld [vmem:[%s15128_s15 + $0x3c8] ss:$16 sps:$4 sm:$0xff]   ;;  %v11588_v37 = vld [vmem:[%s15128_s15 + $0x3e4] ss:$16 sps:$4 sm:$0xff]   ;;  %v11591_v42 = vld [vmem:[%s15128_s15 + $0x3ec] ss:$16 sps:$4 sm:$0xff]  }
 0x6f7   : > { %v11586_v3 = vld [vmem:[%s15128_s15 + $0x3e0] ss:$16 sps:$4 sm:$0xff]   ;;  %v11589_v8 = vld [vmem:[%s15128_s15 + $0x3e8] ss:$16 sps:$4 sm:$0xff]  }
 0x6f8   : > { %8200 = vmatpush1.bf16.msra.mxu0 %v11538_v9  ;;  %8346 = vmatpush1.bf16.msra.mxu1 %v11541_v13  ;;  %v11592_v55 = vld [vmem:[%s15130_s17 + $0x40] sm:$0xff]   ;;  %v11596_v12 = vld [vmem:[%s15130_s17 + $0x48] sm:$0xff]   ;;  %v11602_v39 = vld [vmem:[%s15130_s17 + $0x10] sm:$0xff]  }
 0x6f9   : > { %8201 = vmatprep.subr.bf16.mxu0 %v11546_v20  ;;  %8347 = vmatprep.subr.bf16.mxu1 %v11549_v18  ;;  %v11593_v47 = vld [vmem:[%s15130_s17 + $0xc0] sm:$0xff]   ;;  %v11597_v62 = vld [vmem:[%s15130_s17 + $0xc8] sm:$0xff]   ;;  %v11603_v61 = vld [vmem:[%s15130_s17 + $0x90] sm:$0xff]  }
 0x6fa   : > { %v11594_v48 = vld [vmem:[%s15130_s17] sm:$0xff]   ;;  %v11598_v31 = vld [vmem:[%s15130_s17 + $0x8] sm:$0xff]   ;;  %v11604_v59 = vld [vmem:[%s15130_s17 + $0x58] sm:$0xff]  }
 0x6fb   : > { %v11595_v58 = vld [vmem:[%s15130_s17 + $0x80] sm:$0xff]   ;;  %v11599_v2 = vld [vmem:[%s15130_s17 + $0x88] sm:$0xff]   ;;  %v11605_v60 = vld [vmem:[%s15130_s17 + $0xd8] sm:$0xff]  }
 0x6fc   : > { %8202 = vmatpush1.bf16.msra.mxu0 %v11544_v7  ;;  %8348 = vmatpush1.bf16.msra.mxu1 %v11547_v15  ;;  %v11606_v5 = vld [vmem:[%s15130_s17 + $0x18] sm:$0xff]   ;;  %v11610_v4 = vld [vmem:[%s15130_s17 + $0x20] sm:$0xff]   ;;  %v11612_v1 = vld [vmem:[%s15130_s17 + $0x68] sm:$0xff]  }
 0x6fd   : > { %8203 = vmatprep.subr.bf16.mxu0 %v11552_v57  ;;  %8349 = vmatprep.subr.bf16.mxu1 %v11555_v17  ;;  %v11607_v49 = vld [vmem:[%s15130_s17 + $0x98] sm:$0xff]   ;;  %v11611_v6 = vld [vmem:[%s15130_s17 + $0xa0] sm:$0xff]   ;;  %v11613_v14 = vld [vmem:[%s15130_s17 + $0xe8] sm:$0xff]  }
 0x6fe   : > { %v11617_v45 = vld [vmem:[%s15130_s17 + $0xf0] sm:$0xff]   ;;  %v11620_v20 = vld [vmem:[%s15130_s17 + $0x78] sm:$0xff]   ;;  %v7450_v57 = vld [vmem:[%s15129_s16] sm:$0xf] }
 0x6ff   : > { %v11618_v9 = vld [vmem:[%s15130_s17 + $0x30] sm:$0xff]   ;;  %v11621_v18 = vld [vmem:[%s15130_s17 + $0xf8] sm:$0xff]   ;;  %v15031_v17 = vrot.slane %v7450_v57, %v12176_v50 }
 0x700   : > { %8204 = vmatpush1.bf16.msra.mxu0 %v11550_v36  ;;  %8350 = vmatpush1.bf16.msra.mxu1 %v11553_v19  ;;  %v11619_v13 = vld [vmem:[%s15130_s17 + $0xb0] sm:$0xff]   ;;  %v11622_v7 = vld [vmem:[%s15130_s17 + $0x38] sm:$0xff]   ;;  %v15034_v36 = vrot.slane %v7450_v57, %v12186_v54  ;;  %v15037_v19 = vrot.slane %v7450_v57, %v12178_v51 }
 0x701   : > { %8205 = vmatprep.subr.bf16.mxu0 %v11558_v52  ;;  %8351 = vmatprep.subr.bf16.mxu1 %v11561_v32  ;;  %v11623_v15 = vld [vmem:[%s15130_s17 + $0xb8] sm:$0xff]   ;;  %v15040_v52 = vrot.slane %v7450_v57, %v12188_v56 }
 0x704   : > { %8206 = vmatpush1.bf16.msra.mxu0 %v11556_v53  ;;  %8352 = vmatpush1.bf16.msra.mxu1 %v11559_v21 }
 0x705   : > { %8207 = vmatprep.subr.bf16.mxu0 %v11564_v0  ;;  %8353 = vmatprep.subr.bf16.mxu1 %v11567_v23 }
 0x708   : > { %8208 = vmatpush1.bf16.msra.mxu0 %v11562_v22  ;;  %8354 = vmatpush1.bf16.msra.mxu1 %v11565_v46 }
 0x709   : > { %8209 = vmatprep.subr.bf16.mxu0 %v11570_v24  ;;  %8355 = vmatprep.subr.bf16.mxu1 %v11573_v25 }
 0x70c   : > { %8210 = vmatpush1.bf16.msra.mxu0 %v11568_v33  ;;  %8356 = vmatpush1.bf16.msra.mxu1 %v11571_v27 }
 0x70d   : > { %8211 = vmatprep.subr.bf16.mxu0 %v11576_v11  ;;  %8357 = vmatprep.subr.bf16.mxu1 %v11579_v29 }
 0x710   : > { %8212 = vmatpush1.bf16.msra.mxu0 %v11574_v28  ;;  %8358 = vmatpush1.bf16.msra.mxu1 %v11577_v63 }
 0x711   : > { %8213 = vmatprep.subr.bf16.mxu0 %v11582_v35  ;;  %8359 = vmatprep.subr.bf16.mxu1 %v11585_v40 }
 0x714   : > { %8214 = vmatpush1.bf16.msra.mxu0 %v11580_v41  ;;  %8360 = vmatpush1.bf16.msra.mxu1 %v11583_v43 }
 0x715   : > { %8215 = vmatprep.subr.bf16.mxu0 %v11588_v37  ;;  %8361 = vmatprep.subr.bf16.mxu1 %v11591_v42 }
 0x718   : > { %8216 = vmatpush1.bf16.msra.mxu0 %v11586_v3  ;;  %8362 = vmatpush1.bf16.msra.mxu1 %v11589_v8 }
 0x719   : > { %9940 = vmatprep.subr.bf16.mxu0 %v11592_v55  ;;  %9980 = vmatprep.subr.bf16.mxu1 %v11593_v47 }
 0x71b   : > { %8218 = vmatmul.mubr.bf16.vlgmr.msra.gmra.mrb[96].mxu0 %v14655_v44  ;;  %8364 = vmatmul.mubr.bf16.vlgmr.msra.gmra.mrb[96].mxu1 %v14655_v44  ;;  %v11600_v44 = vld [vmem:[%s15130_s17 + $0x50] sm:$0xff]  }
 0x71c   : > { %8227 = vmatprep.mubr.bf16.mxu0 %v14754_v38  ;;  %8373 = vmatprep.mubr.bf16.mxu1 %v14754_v38  ;;  %v11601_v38 = vld [vmem:[%s15130_s17 + $0xd0] sm:$0xff]  }
 0x71d   : > { %9941 = vmatpush3.bf16.msra.mxu0 %v11594_v48  ;;  %9981 = vmatpush3.bf16.msra.mxu1 %v11595_v58 }
 0x71e   : > { %9942 = vmatprep.subr.bf16.mxu0 %v11596_v12  ;;  %9982 = vmatprep.subr.bf16.mxu1 %v11597_v62 }
 0x721   : > { %9943 = vmatpush3.bf16.msra.mxu0 %v11598_v31  ;;  %9983 = vmatpush3.bf16.msra.mxu1 %v11599_v2 }
 0x722   : > { %9944 = vmatprep.subr.bf16.mxu0 %v11600_v44  ;;  %9984 = vmatprep.subr.bf16.mxu1 %v11601_v38 }
 0x723   : > { %8228 = vmatmul.mubr.bf16.gmra.mrb[100].mxu0 %v14711_v34  ;;  %8374 = vmatmul.mubr.bf16.gmra.mrb[100].mxu1 %v14711_v34  ;;  %v11608_v34 = vld [vmem:[%s15130_s17 + $0x60] sm:$0xff]  }
 0x724   : > { %8237 = vmatprep.mubr.bf16.mxu0 %v14795_v30  ;;  %8383 = vmatprep.mubr.bf16.mxu1 %v14795_v30  ;;  %v11609_v30 = vld [vmem:[%s15130_s17 + $0xe0] sm:$0xff]  }
 0x725   : > { %9945 = vmatpush3.bf16.msra.mxu0 %v11602_v39  ;;  %9985 = vmatpush3.bf16.msra.mxu1 %v11603_v61 }
 0x726   : > { %9946 = vmatprep.subr.bf16.mxu0 %v11604_v59  ;;  %9986 = vmatprep.subr.bf16.mxu1 %v11605_v60 }
 0x729   : > { %9947 = vmatpush3.bf16.msra.mxu0 %v11606_v5  ;;  %9987 = vmatpush3.bf16.msra.mxu1 %v11607_v49 }
 0x72a   : > { %9948 = vmatprep.subr.bf16.mxu0 %v11608_v34  ;;  %9988 = vmatprep.subr.bf16.mxu1 %v11609_v30 }
 0x72b   : > { %8238 = vmatmul.mubr.bf16.gmra.mrb[104].mxu0 %v14768_v26  ;;  %8384 = vmatmul.mubr.bf16.gmra.mrb[104].mxu1 %v14768_v26  ;;  %v11614_v26 = vld [vmem:[%s15130_s17 + $0x28] sm:$0xff]  }
 0x72c   : > { %8247 = vmatprep.mubr.bf16.mxu0 %v14805_v10  ;;  %8393 = vmatprep.mubr.bf16.mxu1 %v14805_v10  ;;  %v11615_v10 = vld [vmem:[%s15130_s17 + $0xa8] sm:$0xff]  }
 0x72d   : > { %9949 = vmatpush3.bf16.msra.mxu0 %v11610_v4  ;;  %9989 = vmatpush3.bf16.msra.mxu1 %v11611_v6 }
 0x72e   : > { %9950 = vmatprep.subr.bf16.mxu0 %v11612_v1  ;;  %9990 = vmatprep.subr.bf16.mxu1 %v11613_v14 }
 0x731   : > { %9951 = vmatpush3.bf16.msra.mxu0 %v11614_v26  ;;  %9991 = vmatpush3.bf16.msra.mxu1 %v11615_v10 }
 0x732   : > { %9992 = vmatprep.subr.bf16.mxu1 %v11617_v45 }
 0x733   : > { %8248 = vmatmul.mubr.bf16.gmra.mrb[108].mxu0 %v14797_v16  ;;  %8394 = vmatmul.mubr.bf16.gmra.mrb[108].mxu1 %v14797_v16  ;;  %v11616_v16 = vld [vmem:[%s15130_s17 + $0x70] sm:$0xff]  }
 0x734   : > { %9952 = vmatprep.subr.bf16.mxu0 %v11616_v16 }
 0x735   : > { %9953 = vmatpush3.bf16.msra.mxu0 %v11618_v9  ;;  %9993 = vmatpush3.bf16.msra.mxu1 %v11619_v13 }
 0x736   : > { %9954 = vmatprep.subr.bf16.mxu0 %v11620_v20  ;;  %9994 = vmatprep.subr.bf16.mxu1 %v11621_v18 }
 0x739   : > { %9955 = vmatpush3.bf16.msra.mxu0 %v11622_v7  ;;  %9995 = vmatpush3.bf16.msra.mxu1 %v11623_v15 }
 0x7ee   : > { %v8219_v32 = vpop.f32.mrb[96].mxu0  ;;  %v8365_v53 = vpop.f32.mrb[96].mxu1 }
 0x7ef   : > { %v10116_v21 = vadd.f32 %v8219_v32, %v15031_v17  ;;  %v10132_v0 = vadd.f32 %v8365_v53, %v15034_v36  ;;  %v8221_v23 = vpop.f32.mrb[97].mxu0  ;;  %v8367_v22 = vpop.f32.mrb[97].mxu1 }
 0x7f0   : > { %v10117_v50 = vadd.f32 %v8221_v23, %v15037_v19  ;;  %v10133_v46 = vadd.f32 %v8367_v22, %v15040_v52  ;;  %v8223_v54 = vpop.f32.mrb[98].mxu0  ;;  %v8369_v24 = vpop.f32.mrb[98].mxu1 }
 0x7f1   : > { %v8404_v25 = vmul.f32 0.01, %v10116_v21  ;;  %v8406_v51 = vmul.f32 0.01, %v10132_v0  ;;  %v10118_v33 = vadd.f32 %v8223_v54, %v15031_v17  ;;  %v10134_v56 = vadd.f32 %v8369_v24, %v15034_v36  ;;  %v8225_v27 = vpop.f32.mrb[99].mxu0  ;;  %v8371_v11 = vpop.f32.mrb[99].mxu1 }
 0x7f2   : > { %v8405_v29 = vmul.f32 0.01, %v10117_v50  ;;  %v8407_v28 = vmul.f32 0.01, %v10133_v46  ;;  %v10119_v63 = vadd.f32 %v8225_v27, %v15037_v19  ;;  %v10135_v35 = vadd.f32 %v8371_v11, %v15040_v52 }
 0x7f3   : > { %v8408_v40 = vmul.f32 0.01, %v10118_v33  ;;  %v8410_v41 = vmul.f32 0.01, %v10134_v56  ;;  %v8436_v42 = vmax.f32 %v10116_v21, %v8404_v25  ;;  %v8438_v3 = vmax.f32 %v10132_v0, %v8406_v51 }
 0x7f4   : > { %v8409_v43 = vmul.f32 0.01, %v10119_v63  ;;  %v8411_v37 = vmul.f32 0.01, %v10135_v35  ;;  %v8437_v47 = vmax.f32 %v10117_v50, %v8405_v29  ;;  %v8439_v48 = vmax.f32 %v10133_v46, %v8407_v28 }
 0x7f5   : > { %v8440_v8 = vmax.f32 %v10118_v33, %v8408_v40  ;;  %v8442_v55 = vmax.f32 %v10134_v56, %v8410_v41 }
 0x7f6   : > { %v8441_v58 = vmax.f32 %v10119_v63, %v8409_v43  ;;  %v8443_v12 = vmax.f32 %v10135_v35, %v8411_v37  ;;  %v8229_v62 = vpop.f32.mrb[100].mxu0  ;;  %v8375_v31 = vpop.f32.mrb[100].mxu1 }
 0x7f7   : > { %v8468_v2 = vpack.c.bf16 %v8440_v8, %v8436_v42  ;;  %v8470_v44 = vpack.c.bf16 %v8442_v55, %v8438_v3  ;;  %v10120_v38 = vadd.f32 %v8229_v62, %v15031_v17  ;;  %v10136_v39 = vadd.f32 %v8375_v31, %v15034_v36  ;;  %v8231_v61 = vpop.f32.mrb[101].mxu0  ;;  %v8377_v59 = vpop.f32.mrb[101].mxu1 }
 0x7f8   : > { %v10121_v60 = vadd.f32 %v8231_v61, %v15037_v19  ;;  %v10137_v5 = vadd.f32 %v8377_v59, %v15040_v52  ;;  %v8233_v49 = vpop.f32.mrb[102].mxu0  ;;  %v8379_v34 = vpop.f32.mrb[102].mxu1  ;;  %v8469_v30 = vpack.c.bf16 %v8441_v58, %v8437_v47  ;;  %v8471_v4 = vpack.c.bf16 %v8443_v12, %v8439_v48 }
 0x7f9   : > { %v8412_v6 = vmul.f32 0.01, %v10120_v38  ;;  %v8414_v1 = vmul.f32 0.01, %v10136_v39  ;;  %v10122_v14 = vadd.f32 %v8233_v49, %v15031_v17  ;;  %v10138_v26 = vadd.f32 %v8379_v34, %v15034_v36  ;;  %v8235_v10 = vpop.f32.mrb[103].mxu0  ;;  %v8381_v16 = vpop.f32.mrb[103].mxu1 }
 0x7fa   : > { %v8413_v45 = vmul.f32 0.01, %v10121_v60  ;;  %v8415_v9 = vmul.f32 0.01, %v10137_v5  ;;  %v10123_v13 = vadd.f32 %v8235_v10, %v15037_v19  ;;  %v10139_v20 = vadd.f32 %v8381_v16, %v15040_v52  ;;  %8779 = vmatprep.mubr.bf16.mxu0 %v8469_v30  ;;  %8844 = vmatprep.mubr.bf16.mxu1 %v8471_v4 }
 0x7fb   : > { %v8416_v18 = vmul.f32 0.01, %v10122_v14  ;;  %v8418_v7 = vmul.f32 0.01, %v10138_v26  ;;  %8780 = vmatmul.mubr.bf16.vlgmr.msra.gmra.mrb[112].mxu0 %v8468_v2  ;;  %8845 = vmatmul.mubr.bf16.vlgmr.msra.gmra.mrb[112].mxu1 %v8470_v44  ;;  %v8444_v32 = vmax.f32 %v10120_v38, %v8412_v6  ;;  %v8446_v53 = vmax.f32 %v10136_v39, %v8414_v1 }
 0x7fc   : > { %v8417_v15 = vmul.f32 0.01, %v10123_v13  ;;  %v8419_v57 = vmul.f32 0.01, %v10139_v20  ;;  %v8445_v23 = vmax.f32 %v10121_v60, %v8413_v45  ;;  %v8447_v22 = vmax.f32 %v10137_v5, %v8415_v9 }
 0x7fd   : > { %v8448_v21 = vmax.f32 %v10122_v14, %v8416_v18  ;;  %v8450_v0 = vmax.f32 %v10138_v26, %v8418_v7 }
 0x7fe   : > { %v8449_v50 = vmax.f32 %v10123_v13, %v8417_v15  ;;  %v8451_v46 = vmax.f32 %v10139_v20, %v8419_v57  ;;  %v8239_v54 = vpop.f32.mrb[104].mxu0  ;;  %v8385_v24 = vpop.f32.mrb[104].mxu1 }
 0x7ff   : > { %v10124_v25 = vadd.f32 %v8239_v54, %v15031_v17  ;;  %v10140_v51 = vadd.f32 %v8385_v24, %v15034_v36  ;;  %v8241_v33 = vpop.f32.mrb[105].mxu0  ;;  %v8387_v56 = vpop.f32.mrb[105].mxu1  ;;  %v8472_v27 = vpack.c.bf16 %v8448_v21, %v8444_v32  ;;  %v8474_v11 = vpack.c.bf16 %v8450_v0, %v8446_v53 }
 0x800   : > { %v10125_v29 = vadd.f32 %v8241_v33, %v15037_v19  ;;  %v10141_v28 = vadd.f32 %v8387_v56, %v15040_v52  ;;  %v8243_v63 = vpop.f32.mrb[106].mxu0  ;;  %v8389_v35 = vpop.f32.mrb[106].mxu1  ;;  %v8473_v40 = vpack.c.bf16 %v8449_v50, %v8445_v23  ;;  %v8475_v41 = vpack.c.bf16 %v8451_v46, %v8447_v22 }
 0x801   : > { %v8420_v43 = vmul.f32 0.01, %v10124_v25  ;;  %v8422_v37 = vmul.f32 0.01, %v10140_v51  ;;  %v10126_v42 = vadd.f32 %v8243_v63, %v15031_v17  ;;  %v10142_v3 = vadd.f32 %v8389_v35, %v15034_v36  ;;  %v8245_v8 = vpop.f32.mrb[107].mxu0  ;;  %v8391_v55 = vpop.f32.mrb[107].mxu1 }
 0x802   : > { %v8421_v47 = vmul.f32 0.01, %v10125_v29  ;;  %v8423_v48 = vmul.f32 0.01, %v10141_v28  ;;  %v10127_v58 = vadd.f32 %v8245_v8, %v15037_v19  ;;  %v10143_v12 = vadd.f32 %v8391_v55, %v15040_v52  ;;  %8787 = vmatprep.mubr.bf16.mxu0 %v8473_v40  ;;  %8852 = vmatprep.mubr.bf16.mxu1 %v8475_v41 }
 0x803   : > { %v8424_v62 = vmul.f32 0.01, %v10126_v42  ;;  %v8426_v31 = vmul.f32 0.01, %v10142_v3  ;;  %8788 = vmatmul.mubr.bf16.gmra.mrb[116].mxu0 %v8472_v27  ;;  %8853 = vmatmul.mubr.bf16.gmra.mrb[116].mxu1 %v8474_v11  ;;  %v8452_v38 = vmax.f32 %v10124_v25, %v8420_v43  ;;  %v8454_v39 = vmax.f32 %v10140_v51, %v8422_v37  ;;  %v15074_v43 = vld [vmem:[#allocation2] ss:$0 sm:$0xff] }
 0x804   : > { %v8425_v2 = vmul.f32 0.01, %v10127_v58  ;;  %v8427_v44 = vmul.f32 0.01, %v10143_v12  ;;  %v8453_v60 = vmax.f32 %v10125_v29, %v8421_v47  ;;  %v8455_v5 = vmax.f32 %v10141_v28, %v8423_v48 }
 0x805   : > { %v8456_v61 = vmax.f32 %v10126_v42, %v8424_v62  ;;  %v8458_v59 = vmax.f32 %v10142_v3, %v8426_v31 }
 0x806   : > { %v8457_v49 = vmax.f32 %v10127_v58, %v8425_v2  ;;  %v8459_v34 = vmax.f32 %v10143_v12, %v8427_v44  ;;  %v8249_v30 = vpop.f32.mrb[108].mxu0  ;;  %v8395_v4 = vpop.f32.mrb[108].mxu1 }
 0x807   : > { %v10128_v6 = vadd.f32 %v8249_v30, %v15031_v17  ;;  %v10144_v1 = vadd.f32 %v8395_v4, %v15034_v36  ;;  %v8251_v14 = vpop.f32.mrb[109].mxu0  ;;  %v8397_v26 = vpop.f32.mrb[109].mxu1  ;;  %v8476_v10 = vpack.c.bf16 %v8456_v61, %v8452_v38  ;;  %v8478_v16 = vpack.c.bf16 %v8458_v59, %v8454_v39 }
 0x808   : > { %v10129_v45 = vadd.f32 %v8251_v14, %v15037_v19  ;;  %v10145_v9 = vadd.f32 %v8397_v26, %v15040_v52  ;;  %v8253_v13 = vpop.f32.mrb[110].mxu0  ;;  %v8399_v20 = vpop.f32.mrb[110].mxu1  ;;  %v8477_v18 = vpack.c.bf16 %v8457_v49, %v8453_v60  ;;  %v8479_v7 = vpack.c.bf16 %v8459_v34, %v8455_v5 }
 0x809   : > { %v8428_v15 = vmul.f32 0.01, %v10128_v6  ;;  %v8430_v57 = vmul.f32 0.01, %v10144_v1  ;;  %v10130_v32 = vadd.f32 %v8253_v13, %v15031_v17  ;;  %v10146_v53 = vadd.f32 %v8399_v20, %v15034_v36  ;;  %v8255_v21 = vpop.f32.mrb[111].mxu0  ;;  %v8401_v0 = vpop.f32.mrb[111].mxu1 }
 0x80a   : > { %v8429_v23 = vmul.f32 0.01, %v10129_v45  ;;  %v8431_v22 = vmul.f32 0.01, %v10145_v9  ;;  %v10131_v50 = vadd.f32 %v8255_v21, %v15037_v19  ;;  %v10147_v46 = vadd.f32 %v8401_v0, %v15040_v52  ;;  %8795 = vmatprep.mubr.bf16.mxu0 %v8477_v18  ;;  %8860 = vmatprep.mubr.bf16.mxu1 %v8479_v7 }
 0x80b   : > { %v8432_v54 = vmul.f32 0.01, %v10130_v32  ;;  %v8434_v24 = vmul.f32 0.01, %v10146_v53  ;;  %8796 = vmatmul.mubr.bf16.gmra.mrb[120].mxu0 %v8476_v10  ;;  %8861 = vmatmul.mubr.bf16.gmra.mrb[120].mxu1 %v8478_v16  ;;  %v8460_v33 = vmax.f32 %v10128_v6, %v8428_v15  ;;  %v8462_v17 = vmax.f32 %v10144_v1, %v8430_v57 }
 0x80c   : > { %v8433_v25 = vmul.f32 0.01, %v10131_v50  ;;  %v8435_v51 = vmul.f32 0.01, %v10147_v46  ;;  %v8461_v27 = vmax.f32 %v10129_v45, %v8429_v23  ;;  %v8463_v11 = vmax.f32 %v10145_v9, %v8431_v22 }
 0x80d   : > { %v8464_v56 = vmax.f32 %v10130_v32, %v8432_v54  ;;  %v8466_v36 = vmax.f32 %v10146_v53, %v8434_v24 }
 0x80e   : > { %v8465_v29 = vmax.f32 %v10131_v50, %v8433_v25  ;;  %v8467_v28 = vmax.f32 %v10147_v46, %v8435_v51 }
 0x80f   : > { %v8480_v63 = vpack.c.bf16 %v8464_v56, %v8460_v33  ;;  %v8482_v19 = vpack.c.bf16 %v8466_v36, %v8462_v17 }
 0x810   : > { %v8481_v35 = vpack.c.bf16 %v8465_v29, %v8461_v27  ;;  %v8483_v52 = vpack.c.bf16 %v8467_v28, %v8463_v11 }
 0x812   : > { %8803 = vmatprep.mubr.bf16.mxu0 %v8481_v35  ;;  %8868 = vmatprep.mubr.bf16.mxu1 %v8483_v52 }
 0x813   : > { %8804 = vmatmul.mubr.bf16.gmra.mrb[124].mxu0 %v8480_v63  ;;  %8869 = vmatmul.mubr.bf16.gmra.mrb[124].mxu1 %v8482_v19 }
 0x8ce   : > { %v9956_v40 = vpop.f32.mrb[112].mxu0  ;;  %v9996_v41 = vpop.f32.mrb[112].mxu1 }
 0x8cf   : > { %v9957_v37 = vpop.f32.mrb[113].mxu0  ;;  %v9997_v42 = vpop.f32.mrb[113].mxu1 }
 0x8d0   : > { %v9958_v3 = vadd.f32 %v9957_v37, %v9956_v40  ;;  %v9998_v8 = vadd.f32 %v9997_v42, %v9996_v41  ;;  %v9959_v55 = vpop.f32.mrb[114].mxu0  ;;  %v9999_v47 = vpop.f32.mrb[114].mxu1 }
 0x8d1   : > { %v9960_v48 = vpop.f32.mrb[115].mxu0  ;;  %v10000_v58 = vpop.f32.mrb[115].mxu1 }
 0x8d2   : > { %v8782_v12 = vadd.f32 %v9958_v3, %v15074_v43  ;;  %v9961_v62 = vadd.f32 %v9960_v48, %v9959_v55  ;;  %v10001_v31 = vadd.f32 %v10000_v58, %v9999_v47 }
 0x8d4   : > { %v8847_v2 = vadd.f32 %v9998_v8, %v8782_v12  ;;  %v8785_v44 = vadd.f32 %v9961_v62, %v15074_v43 }
 0x8d6   : > { %v9930_v38 = vmul.f32 -1.442695, %v8847_v2  ;;  %v8850_v39 = vadd.f32 %v10001_v31, %v8785_v44  ;;  %v9962_v61 = vpop.f32.mrb[116].mxu0  ;;  %v10002_v59 = vpop.f32.mrb[116].mxu1 }
 0x8d7   : > { %v9963_v60 = vpop.f32.mrb[117].mxu0  ;;  %v10003_v5 = vpop.f32.mrb[117].mxu1 }
 0x8d8   : > { %11624 = vpow2.f32 %v9930_v38  ;;  %v9931_v49 = vmul.f32 -1.442695, %v8850_v39  ;;  %v9964_v34 = vadd.f32 %v9963_v60, %v9962_v61  ;;  %v10004_v30 = vadd.f32 %v10003_v5, %v10002_v59  ;;  %v9965_v4 = vpop.f32.mrb[118].mxu0  ;;  %v10005_v6 = vpop.f32.mrb[118].mxu1 }
 0x8d9   : > { %v9966_v1 = vpop.f32.mrb[119].mxu0  ;;  %v10006_v14 = vpop.f32.mrb[119].mxu1 }
 0x8da   : > { %11626 = vpow2.f32 %v9931_v49  ;;  %v8790_v26 = vadd.f32 %v9964_v34, %v15074_v43  ;;  %v9967_v10 = vadd.f32 %v9966_v1, %v9965_v4  ;;  %v10007_v16 = vadd.f32 %v10006_v14, %v10005_v6 }
 0x8dc   : > { %v8855_v45 = vadd.f32 %v10004_v30, %v8790_v26  ;;  %v8793_v9 = vadd.f32 %v9967_v10, %v15074_v43 }
 0x8de   : > { %v9932_v13 = vmul.f32 -1.442695, %v8855_v45  ;;  %v8858_v20 = vadd.f32 %v10007_v16, %v8793_v9  ;;  %v9968_v18 = vpop.f32.mrb[120].mxu0  ;;  %v10008_v7 = vpop.f32.mrb[120].mxu1  ;;  %v8925_v9 = vld [vmem:[%s622_s26] sm:$0xff] }
 0x8df   : > { %v9969_v15 = vpop.f32.mrb[121].mxu0  ;;  %v10009_v57 = vpop.f32.mrb[121].mxu1 }
 0x8e0   : > { %11628 = vpow2.f32 %v9932_v13  ;;  %v9933_v32 = vmul.f32 -1.442695, %v8858_v20  ;;  %v9970_v53 = vadd.f32 %v9969_v15, %v9968_v18  ;;  %v10010_v21 = vadd.f32 %v10009_v57, %v10008_v7  ;;  %v9971_v0 = vpop.f32.mrb[122].mxu0  ;;  %v10011_v23 = vpop.f32.mrb[122].mxu1  ;;  %v8926_v18 = vld [vmem:[%s622_s26 + $0x8] sm:$0xff]  ;;  %v8927_v57 = vld [vmem:[%s622_s26 + $0x10] sm:$0xff] }
 0x8e1   : > { %v9972_v22 = vpop.f32.mrb[123].mxu0  ;;  %v10012_v50 = vpop.f32.mrb[123].mxu1 }
 0x8e2   : > { %v11625_v46 = vpop.eup %11624  ;;  %11630 = vpow2.f32 %v9933_v32  ;;  %v8798_v54 = vadd.f32 %v9970_v53, %v15074_v43  ;;  %v9973_v24 = vadd.f32 %v9972_v22, %v9971_v0  ;;  %v10013_v25 = vadd.f32 %v10012_v50, %v10011_v23  ;;  %v8929_v22 = vld [vmem:[%s622_s26 + $0x20] sm:$0xff] }
 0x8e3   : > { %v8901_v51 = vadd.f32 1.0, %v11625_v46  ;;  %v8930_v46 = vld [vmem:[%s622_s26 + $0x28] sm:$0xff] }
 0x8e4   : > { %v11627_v33 = vpop.eup %11626  ;;  %v8863_v17 = vadd.f32 %v10010_v21, %v8798_v54  ;;  %v8801_v56 = vadd.f32 %v9973_v24, %v15074_v43  ;;  %v8928_v21 = vld [vmem:[%s622_s26 + $0x18] sm:$0xff] }
 0x8e5   : > { %11632 = vrcp.f32 %v8901_v51  ;;  %v8902_v36 = vadd.f32 1.0, %v11627_v33  ;;  %v8931_v51 = vld [vmem:[%s622_s26 + $0x30] sm:$0xff] }
 0x8e6   : > { %v9934_v27 = vmul.f32 -1.442695, %v8863_v17  ;;  %v8866_v11 = vadd.f32 %v10013_v25, %v8801_v56  ;;  %v9974_v29 = vpop.f32.mrb[124].mxu0  ;;  %v10014_v28 = vpop.f32.mrb[124].mxu1  ;;  %v8932_v17 = vld [vmem:[%s622_s26 + $0x38] sm:$0xff] }
 0x8e7   : > { %v9975_v63 = vpop.f32.mrb[125].mxu0  ;;  %v10015_v19 = vpop.f32.mrb[125].mxu1 }
 0x8e8   : > { %11634 = vpow2.f32 %v9934_v27  ;;  %v9935_v35 = vmul.f32 -1.442695, %v8866_v11  ;;  %v9976_v52 = vadd.f32 %v9975_v63, %v9974_v29  ;;  %v10016_v40 = vadd.f32 %v10015_v19, %v10014_v28  ;;  %v9977_v41 = vpop.f32.mrb[126].mxu0  ;;  %v10017_v37 = vpop.f32.mrb[126].mxu1 }
 0x8e9   : > { %11636 = vrcp.f32 %v8902_v36  ;;  %v9978_v42 = vpop.f32.mrb[127].mxu0  ;;  %v10018_v3 = vpop.f32.mrb[127].mxu1 }
 0x8ea   : > { %v11629_v8 = vpop.eup %11628  ;;  %11638 = vpow2.f32 %v9935_v35  ;;  %v8806_v55 = vadd.f32 %v9976_v52, %v15074_v43  ;;  %v9979_v47 = vadd.f32 %v9978_v42, %v9977_v41  ;;  %v10019_v48 = vadd.f32 %v10018_v3, %v10017_v37 }
 0x8eb   : > { %v8903_v58 = vadd.f32 1.0, %v11629_v8 }
 0x8ec   : > { %v11631_v12 = vpop.eup %11630  ;;  %v8871_v62 = vadd.f32 %v10016_v40, %v8806_v55  ;;  %v8809_v31 = vadd.f32 %v9979_v47, %v15074_v43 }
 0x8ed   : > { %11640 = vrcp.f32 %v8903_v58  ;;  %v8904_v2 = vadd.f32 1.0, %v11631_v12 }
 0x8ee   : > { %v9936_v44 = vmul.f32 -1.442695, %v8871_v62  ;;  %v8874_v38 = vadd.f32 %v10019_v48, %v8809_v31 }
 0x8ef   : > { %v11633_v39 = vpop.eup %11632 }
 0x8f0   : > { %11642 = vpow2.f32 %v9936_v44  ;;  %v9937_v61 = vmul.f32 -1.442695, %v8874_v38  ;;  %8935 = vperm.xlu0 %10414, %v11633_v39  }
 0x8f1   : > { %11644 = vrcp.f32 %v8904_v2 }
 0x8f2   : > { %v11635_v59 = vpop.eup %11634  ;;  %11646 = vpow2.f32 %v9937_v61 }
 0x8f3   : > { %v11637_v60 = vpop.eup %11636  ;;  %v8905_v5 = vadd.f32 1.0, %v11635_v59 }
 0x8f4   : > { %v11639_v49 = vpop.eup %11638  ;;  %8940 = vperm.xlu0 %10414, %v11637_v60  }
 0x8f5   : > { %11648 = vrcp.f32 %v8905_v5  ;;  %v8906_v34 = vadd.f32 1.0, %v11639_v49 }
 0x8f7   : > { %v11641_v30 = vpop.eup %11640  ;;  %11650 = vrcp.f32 %v8906_v34 }
 0x8f8   : > { %8945 = vperm.xlu1 %10415, %v11641_v30  }
 0x8fa   : > { %v11643_v43 = vpop.eup %11642 }
 0x8fb   : > { %v11645_v4 = vpop.eup %11644  ;;  %v8907_v6 = vadd.f32 1.0, %v11643_v43 }
 0x8fc   : > { %v11647_v1 = vpop.eup %11646  ;;  %8950 = vperm.xlu1 %10415, %v11645_v4  }
 0x8fd   : > { %11652 = vrcp.f32 %v8907_v6  ;;  %v8908_v14 = vadd.f32 1.0, %v11647_v1 }
 0x8ff   : > { %v11649_v26 = vpop.eup %11648  ;;  %11654 = vrcp.f32 %v8908_v14 }
 0x900   : > { %8955 = vperm.xlu0 %10414, %v11649_v26  }
 0x901   : > { %v11651_v10 = vpop.eup %11650 }
 0x902   : > { %8960 = vperm.xlu1 %10415, %v11651_v10  }
 0x907   : > { %v11653_v16 = vpop.eup %11652 }
 0x908   : > { %8965 = vperm.xlu0 %10414, %v11653_v16  }
 0x909   : > { %v11655_v45 = vpop.eup %11654 }
 0x90a   : > { %8970 = vperm.xlu1 %10415, %v11655_v45  }
 0x96f   : > { %v8936_v13 = vpop.permute.xlu0 %8935 }
 0x970   : > { %v8973_v20 = vmul.f32 %v8936_v13, %v8925_v9 }
 0x972   : > { %8982 = vst.msk [vmem:[%s15092_s3] sm:$0xff] %vm8981_vm3, %v8973_v20 }
 0x973   : > { %v8941_v7 = vpop.permute.xlu0 %8940 }
 0x974   : > { %v8974_v15 = vmul.f32 %v8941_v7, %v8926_v18 }
 0x976   : > { %8983 = vst.msk [vmem:[%s15092_s3 + $0x8] sm:$0xff] %vm8981_vm3, %v8974_v15 }
 0x977   : > { %v8946_v32 = vpop.permute.xlu1 %8945 }
 0x978   : > { %v8975_v53 = vmul.f32 %v8946_v32, %v8927_v57 }
 0x97a   : > { %8984 = vst.msk [vmem:[%s15092_s3 + $0x10] sm:$0xff] %vm8981_vm3, %v8975_v53 }
 0x97b   : > { %v8951_v0 = vpop.permute.xlu1 %8950 }
 0x97c   : > { %v8976_v23 = vmul.f32 %v8951_v0, %v8928_v21 }
 0x97e   : > { %8985 = vst.msk [vmem:[%s15092_s3 + $0x18] sm:$0xff] %vm8981_vm3, %v8976_v23 }
 0x97f   : > { %v8956_v50 = vpop.permute.xlu0 %8955 }
 0x980   : > { %v8977_v54 = vmul.f32 %v8956_v50, %v8929_v22 }
 0x981   : > { %v8961_v24 = vpop.permute.xlu1 %8960 }
 0x982   : > { %8986 = vst.msk [vmem:[%s15092_s3 + $0x20] sm:$0xff] %vm8981_vm3, %v8977_v54  ;;  %v8978_v25 = vmul.f32 %v8961_v24, %v8930_v46 }
 0x984   : > { %8987 = vst.msk [vmem:[%s15092_s3 + $0x28] sm:$0xff] %vm8981_vm3, %v8978_v25 }
 0x987   : > { %v8966_v33 = vpop.permute.xlu0 %8965 }
 0x988   : > { %v8979_v56 = vmul.f32 %v8966_v33, %v8931_v51 }
 0x989   : > { %v8971_v36 = vpop.permute.xlu1 %8970 }
 0x98a   : > { %8988 = vst.msk [vmem:[%s15092_s3 + $0x30] sm:$0xff] %vm8981_vm3, %v8979_v56  ;;  %v8980_v27 = vmul.f32 %v8971_v36, %v8932_v17 }
 0x98c   : > { %8989 = vst.msk [vmem:[%s15092_s3 + $0x38] sm:$0xff] %vm8981_vm3, %v8980_v27 }
 0x98d PF: > { %s31_s20 = sadd.s32 1, %s11662_s20  }
 0x98e   : > { %p28_p4 = scmp.ge.s32.totalorder %s31_s20, 4  }
 0x990   :  { %30 = sbr.rel (!%p28_p4) target bundleno = 5 (0x5), region = 129 }

</bundles_post_ra>
